<compile_context>
chip_gen: v7x
topology: tpu7x:2x2x1
jax: 0.10.0
libtpu: 0.0.40
codegen_flags: <defaults>
</compile_context>

<pallas_src>
import functools

import numpy as np

import jax
import jax.numpy as jnp
from jax.experimental import pallas as pl
from jax.experimental.pallas import tpu as pltpu


LANES = 128          # TPU lane width; channel dims are padded to this
NEG_SLOPE = 0.2      # the module's forward uses F.leaky_relu(..., 0.2)


def _round_up(x, m):
    return ((x + m - 1) // m) * m


# ----------------------------------------------------------------------------
# Fused encoder kernel: conv1..conv4 (+BN+LeakyReLU) + packed FC heads
# ----------------------------------------------------------------------------

def _encoder_kernel(p1_ref, w1_ref, sc1_ref, sh1_ref,
                    g2_ref, w2_ref, sc2_ref, sh2_ref,
                    g3_ref, w3_hbm, sc3_ref, sh3_ref,
                    g4_ref, w4_hbm, sc4_ref, sh4_ref,
                    wh_ref, bh_ref, out_ref,
                    w3_vmem, w4_vmem, dma_sems):
    f32 = jnp.float32
    bf16 = jnp.bfloat16

    # Stream the late-layer weights (~1 MiB total) into VMEM while conv1/conv2
    # run, instead of paying for them in the exposed prologue DMA.
    cp3 = pltpu.make_async_copy(w3_hbm, w3_vmem, dma_sems.at[0])
    cp4 = pltpu.make_async_copy(w4_hbm, w4_vmem, dma_sems.at[1])
    cp3.start()
    cp4.start()

    def bn_lrelu(acc, sc_ref, sh_ref):
        # acc: (M, C_pad) f32 ; scale/shift: (1, C_pad) f32 (conv bias folded).
        y = acc * sc_ref[...] + sh_ref[...]
        return jnp.where(y > 0, y, NEG_SLOPE * y).astype(bf16)

    def conv_block(a_prev, g_ref, w_ref, sc_ref, sh_ref):
        # a_prev : (M_in, C_in_pad) bf16, rows in (n, y, x) raster order.
        # g_ref  : (16*M_out, M_in) bf16 0/1 im2col row-selection; rows are
        #          all-zero where the 4x4/stride2/pad1 window reads padding.
        # w_ref  : (16*C_in_pad, C_out_pad) bf16, rows ordered (tap, channel).
        taps = 16
        m_out = g_ref.shape[0] // taps
        # One MXU gather producing all 16 taps' rows at once (exact: 0/1
        # matrix, one nonzero per row, so no rounding).
        sel = jnp.dot(g_ref[...], a_prev,
                      preferred_element_type=f32).astype(bf16)
        # Re-lay the 16 row blocks into the K (lane) dimension: (M_out, 16*C).
        patches = jnp.concatenate(
            [sel[t * m_out:(t + 1) * m_out, :] for t in range(taps)], axis=1)
        # Single K-stacked conv matmul (K = 512..2048) with f32 accumulation.
        acc = jnp.dot(patches, w_ref[...], preferred_element_type=f32)
        return bn_lrelu(acc, sc_ref, sh_ref)

    # ---- conv1: patches were im2col'd on the host from the (tiny) network
    # input; K is zero-padded to a lane multiple.
    a1 = bn_lrelu(jnp.dot(p1_ref[...], w1_ref[...], preferred_element_type=f32),
                  sc1_ref, sh1_ref)

    # ---- conv2 (weights resident from the prologue DMA).
    a2 = conv_block(a1, g2_ref, w2_ref, sc2_ref, sh2_ref)

    # ---- conv3 / conv4 use the manually streamed weights.
    cp3.wait()
    a3 = conv_block(a2, g3_ref, w3_vmem, sc3_ref, sh3_ref)
    cp4.wait()
    a4 = conv_block(a3, g4_ref, w4_vmem, sc4_ref, sh4_ref)

    # ---- heads: torch's NCHW flatten is folded into the host-side packing of
    # wh; [W_mean | W_log_var] is one lane-padded matmul (unmasked store).
    n = out_ref.shape[0]
    hw = a4.shape[0] // n
    flat = a4 if hw == 1 else a4.reshape(n, hw * a4.shape[1])
    out_ref[...] = (jnp.dot(flat, wh_ref[...], preferred_element_type=f32)
                    + bh_ref[...])


def _full_spec(arr):
    nd = arr.ndim
    return pl.BlockSpec(arr.shape, lambda i, _n=nd: (0,) * _n)


# ----------------------------------------------------------------------------
# Host-side glue (shape-only constants + im2col of the network input only)
# ----------------------------------------------------------------------------

def _im2col(x_nhwc, k=4, stride=2, pad=1):
    x = jnp.pad(x_nhwc, ((0, 0), (pad, pad), (pad, pad), (0, 0)))
    n, h, w, c = x.shape
    oh = (h - k) // stride + 1
    ow = (w - k) // stride + 1
    pieces = []
    for kh in range(k):
        for kw in range(k):
            pieces.append(x[:, kh:kh + stride * oh:stride,
                            kw:kw + stride * ow:stride, :])
    p = jnp.stack(pieces, axis=3)                 # (n, oh, ow, 16, c)
    return p.reshape(n * oh * ow, k * k * c), (oh, ow)


def _make_im2col_select(n, hin, win, k=4, stride=2, pad=1):
    """Stacked 0/1 row-selection realizing im2col for a 4x4/stride2/pad1 conv.

    Returns g of shape (k*k * n*oh*ow, n*hin*win): row t*(n*oh*ow)+out_pixel
    selects the input pixel read by tap t (all-zero where the window reads
    conv zero-padding), plus (oh, ow).
    """
    oh = (hin + 2 * pad - k) // stride + 1
    ow = (win + 2 * pad - k) // stride + 1
    m_out = n * oh * ow
    g = np.zeros((k * k * m_out, n * hin * win), np.float32)
    for kh in range(k):
        for kw in range(k):
            t = kh * k + kw
            for b in range(n):
                for y in range(oh):
                    ih = stride * y + kh - pad
                    if ih < 0 or ih >= hin:
                        continue
                    for x in range(ow):
                        iw = stride * x + kw - pad
                        if iw < 0 or iw >= win:
                            continue
                        g[t * m_out + (b * oh + y) * ow + x,
                          (b * hin + ih) * win + iw] = 1.0
    return g, oh, ow


# ----------------------------------------------------------------------------
# Parameter construction (deterministic, synthetic)
# ----------------------------------------------------------------------------

def make_encoder_params(key, input_channels, input_size, latent_dim,
                        hidden_dims_factors=(2, 4, 8, 8)):
    hidden_dims = [f * input_size for f in hidden_dims_factors]
    scale_factor = input_size // (2 ** len(hidden_dims_factors))
    eps = 1e-5
    kparams, rparams = {}, {}

    cin = input_channels
    cin_pad = None
    for i, cout in enumerate(hidden_dims):
        key, k1, k2, k3, k4, k5, k6 = jax.random.split(key, 7)
        w = 0.05 * jax.random.normal(k1, (4, 4, cin, cout), jnp.float32)  # HWIO
        b = 0.05 * jax.random.normal(k2, (1, cout), jnp.float32)
        gamma = 1.0 + 0.1 * jax.random.normal(k3, (1, cout), jnp.float32)
        beta = 0.1 * jax.random.normal(k4, (1, cout), jnp.float32)
        run_mean = 0.1 * jax.random.normal(k5, (1, cout), jnp.float32)
        run_var = 1.0 + 0.1 * jnp.abs(jax.random.normal(k6, (1, cout), jnp.float32))
        scale = gamma / jnp.sqrt(run_var + eps)            # inference-mode BN
        shift = beta + (b - run_mean) * scale              # conv bias folded in
        rparams[f"conv{i + 1}"] = (w, scale, shift)

        cout_pad = _round_up(cout, LANES)
        if i == 0:
            # conv1: host-side im2col layout -> rows (kh, kw, cin); pad K to a
            # lane multiple so the matmul is lane-dense.
            k_raw = 16 * cin
            k_pad = _round_up(k_raw, LANES)
            wp = np.zeros((k_pad, cout_pad), np.float32)
            wp[:k_raw, :cout] = np.asarray(w).reshape(k_raw, cout)
        else:
            # conv2..4: rows ordered (tap, padded input channel) to match the
            # in-kernel K-stacked patch layout.
            wp = np.zeros((16 * cin_pad, cout_pad), np.float32)
            w_np = np.asarray(w)
            for a in range(4):
                for bk in range(4):
                    t = a * 4 + bk
                    wp[t * cin_pad:t * cin_pad + cin, :cout] = w_np[a, bk]
        kparams[f"w{i + 1}"] = jnp.asarray(wp, jnp.bfloat16)
        kparams[f"sc{i + 1}"] = jnp.pad(scale, ((0, 0), (0, cout_pad - cout)))
        kparams[f"sh{i + 1}"] = jnp.pad(shift, ((0, 0), (0, cout_pad - cout)))
        cin, cin_pad = cout, cout_pad

    c4 = hidden_dims[-1]
    c4_pad = _round_up(c4, LANES)
    hw = scale_factor * scale_factor
    feat = c4 * hw
    key, k1, k2, k3, k4 = jax.random.split(key, 5)
    wm = 0.05 * jax.random.normal(k1, (feat, latent_dim), jnp.float32)
    bm = 0.05 * jax.random.normal(k2, (1, latent_dim), jnp.float32)
    wv = 0.05 * jax.random.normal(k3, (feat, latent_dim), jnp.float32)
    bv = 0.05 * jax.random.normal(k4, (1, latent_dim), jnp.float32)
    rparams["heads"] = (wm, bm, wv, bv)

    # Pack [W_mean | W_log_var], pad lanes to a multiple of 128, and remap
    # torch's NCHW-flatten feature order (c*hw + p) to the kernel's (p, c).
    lp = _round_up(2 * latent_dim, LANES)
    wcat = np.asarray(jnp.concatenate([wm, wv], axis=1))     # (feat, 2*latent)
    whp = np.zeros((hw * c4_pad, lp), np.float32)
    for p in range(hw):
        whp[p * c4_pad:p * c4_pad + c4, :2 * latent_dim] = \
            wcat[np.arange(c4) * hw + p, :]
    kparams["wh"] = jnp.asarray(whp, jnp.bfloat16)
    bcat = jnp.concatenate([bm, bv], axis=1)
    kparams["bh"] = jnp.pad(bcat, ((0, 0), (0, lp - 2 * latent_dim)))
    return kparams, rparams


# ----------------------------------------------------------------------------
# Encoder forward (single fused pallas_call)
# ----------------------------------------------------------------------------

@functools.partial(jax.jit, static_argnames=("latent_dim",))
def encoder_forward(x_nchw, kparams, *, latent_dim):
    n = x_nchw.shape[0]

    # Host-side glue only on the (tiny) network input.
    x_nhwc = jnp.transpose(x_nchw, (0, 2, 3, 1))
    p1, (oh, ow) = _im2col(x_nhwc)
    k_pad = kparams["w1"].shape[0]
    p1 = jnp.pad(p1, ((0, 0), (0, k_pad - p1.shape[1]))).astype(jnp.bfloat16)

    # Shape-only 0/1 im2col selection constants (conv2..conv4), baked at trace
    # time.  TODO(synk): O(pixels^2) — replace with an in-kernel strided
    # window gather + spatially tiled grid before scaling the resolution.
    g_consts = []
    hh, ww = oh, ow
    for _ in range(3):
        g, hh, ww = _make_im2col_select(n, hh, ww)
        g_consts.append(jnp.asarray(g, jnp.bfloat16))
    hw = hh * ww

    wh, bh = kparams["wh"], kparams["bh"]
    lp = wh.shape[-1]
    c4_pad = kparams["sc4"].shape[-1]
    assert wh.shape[0] == hw * c4_pad, "head weight layout mismatch"

    inputs = (p1, kparams["w1"], kparams["sc1"], kparams["sh1"],
              g_consts[0], kparams["w2"], kparams["sc2"], kparams["sh2"],
              g_consts[1], kparams["w3"], kparams["sc3"], kparams["sh3"],
              g_consts[2], kparams["w4"], kparams["sc4"], kparams["sh4"],
              wh, bh)
    W3_IDX, W4_IDX = 9, 13
    in_specs = [pl.BlockSpec(memory_space=pl.ANY) if i in (W3_IDX, W4_IDX)
                else _full_spec(a) for i, a in enumerate(inputs)]

    # Advisory cost estimate for XLA scheduling of the surrounding glue.
    flops = 2 * p1.shape[0] * p1.shape[1] * kparams["w1"].shape[1]
    for g, wl in zip(g_consts, (kparams["w2"], kparams["w3"], kparams["w4"])):
        tm, mi = g.shape
        kk, co = wl.shape
        flops += 2 * tm * mi * (kk // 16)        # selection matmul
        flops += 2 * (tm // 16) * kk * co        # K-stacked conv matmul
    flops += 2 * n * wh.shape[0] * wh.shape[1]   # packed heads
    bytes_accessed = sum(int(np.prod(a.shape)) * a.dtype.itemsize
                         for a in inputs) + n * lp * 4

    out = pl.pallas_call(
        _encoder_kernel,
        out_shape=jax.ShapeDtypeStruct((n, lp), jnp.float32),
        grid=(1,),
        in_specs=in_specs,
        out_specs=pl.BlockSpec((n, lp), lambda i: (0, 0)),
        scratch_shapes=[
            pltpu.VMEM(kparams["w3"].shape, jnp.bfloat16),   # streamed w3
            pltpu.VMEM(kparams["w4"].shape, jnp.bfloat16),   # streamed w4
            pltpu.SemaphoreType.DMA((2,)),
        ],
        compiler_params=pltpu.CompilerParams(
            dimension_semantics=("arbitrary",)),
        cost_estimate=pl.CostEstimate(flops=int(flops), transcendentals=0,
                                      bytes_accessed=int(bytes_accessed)),
    )(*inputs)

    return out[:, :latent_dim], out[:, latent_dim:2 * latent_dim]


# ----------------------------------------------------------------------------
# Pure-JAX f32 reference (eval-mode BN with the same folded scale/shift)
# ----------------------------------------------------------------------------

def encoder_reference(x_nchw, rparams):
    x = jnp.transpose(x_nchw, (0, 2, 3, 1))
    for i in range(4):
        w, sc, sh = rparams[f"conv{i + 1}"]
        y = jax.lax.conv_general_dilated(
            x, w, window_strides=(2, 2), padding=((1, 1), (1, 1)),
            dimension_numbers=("NHWC", "HWIO", "NHWC"))
        y = y * sc.reshape(1, 1, 1, -1) + sh.reshape(1, 1, 1, -1)
        x = jnp.where(y > 0, y, NEG_SLOPE * y)
    n, h, w_, c = x.shape
    flat = jnp.transpose(x, (0, 3, 1, 2)).reshape(n, c * h * w_)  # NCHW flatten
    wm, bm, wv, bv = rparams["heads"]
    return flat @ wm + bm, flat @ wv + bv


# ----------------------------------------------------------------------------
# Main
# ----------------------------------------------------------------------------

if __name__ == "__main__":
    input_channels = 4
    input_size = 16          # hidden_dims = [32, 64, 128, 128], scale_factor = 1
    latent_dim = 8
    batch = 2

    key = jax.random.PRNGKey(0)
    key, xkey = jax.random.split(key)
    x = jax.random.normal(xkey, (batch, input_channels, input_size, input_size),
                          jnp.float32)

    kparams, rparams = make_encoder_params(key, input_channels, input_size,
                                           latent_dim)

    z_mean, z_log_var = encoder_forward(x, kparams, latent_dim=latent_dim)
    jax.block_until_ready((z_mean, z_log_var))

    assert z_mean.shape == (batch, latent_dim)
    assert z_log_var.shape == (batch, latent_dim)

    # Cross-check against the pure-JAX f32 reference (generous tolerance for
    # the bf16 MXU path).
    ref_mean, ref_logvar = encoder_reference(x, rparams)
    np.testing.assert_allclose(np.asarray(z_mean), np.asarray(ref_mean),
                               rtol=0.1, atol=0.05)
    np.testing.assert_allclose(np.asarray(z_log_var), np.asarray(ref_logvar),
                               rtol=0.1, atol=0.05)

    print("KERNEL_OK")
</pallas_src>

<mosaic_0001>
module attributes {stable_mosaic.version = 11 : i64} {
  func.func @_encoder_kernel(%arg0: i32, %arg1: memref<128x128xbf16, #tpu.memory_space<vmem>>, %arg2: memref<128x128xbf16, #tpu.memory_space<vmem>>, %arg3: memref<1x128xf32, #tpu.memory_space<vmem>>, %arg4: memref<1x128xf32, #tpu.memory_space<vmem>>, %arg5: memref<512x128xbf16, #tpu.memory_space<vmem>>, %arg6: memref<2048x128xbf16, #tpu.memory_space<vmem>>, %arg7: memref<1x128xf32, #tpu.memory_space<vmem>>, %arg8: memref<1x128xf32, #tpu.memory_space<vmem>>, %arg9: memref<128x32xbf16, #tpu.memory_space<vmem>>, %arg10: memref<2048x128xbf16, #tpu.memory_space<any>>, %arg11: memref<1x128xf32, #tpu.memory_space<vmem>>, %arg12: memref<1x128xf32, #tpu.memory_space<vmem>>, %arg13: memref<32x8xbf16, #tpu.memory_space<vmem>>, %arg14: memref<2048x128xbf16, #tpu.memory_space<any>>, %arg15: memref<1x128xf32, #tpu.memory_space<vmem>>, %arg16: memref<1x128xf32, #tpu.memory_space<vmem>>, %arg17: memref<128x128xbf16, #tpu.memory_space<vmem>>, %arg18: memref<1x128xf32, #tpu.memory_space<vmem>>, %arg19: memref<2x128xf32, #tpu.memory_space<vmem>>, %arg20: memref<2048x128xbf16, #tpu.memory_space<vmem>>, %arg21: memref<2048x128xbf16, #tpu.memory_space<vmem>>, %arg22: memref<2x!tpu.dma_semaphore, #tpu.memory_space<semaphore_mem>>) attributes {dimension_semantics = [#tpu.dimension_semantics<arbitrary>], iteration_bounds = array<i64: 1>, scalar_prefetch = 0 : i64, scratch_operands = 3 : i64, tpu.core_type = #tpu.core_type<tc>, window_params = [{pipeline_mode = #tpu.pipeline_mode<synchronous>, transform_indices = @transform_0, window_bounds = array<i64: 128, 128>}, {pipeline_mode = #tpu.pipeline_mode<synchronous>, transform_indices = @transform_1, window_bounds = array<i64: 128, 128>}, {pipeline_mode = #tpu.pipeline_mode<synchronous>, transform_indices = @transform_2, window_bounds = array<i64: 1, 128>}, {pipeline_mode = #tpu.pipeline_mode<synchronous>, transform_indices = @transform_3, window_bounds = array<i64: 1, 128>}, {pipeline_mode = #tpu.pipeline_mode<synchronous>, transform_indices = @transform_4, window_bounds = array<i64: 512, 128>}, {pipeline_mode = #tpu.pipeline_mode<synchronous>, transform_indices = @transform_5, window_bounds = array<i64: 2048, 128>}, {pipeline_mode = #tpu.pipeline_mode<synchronous>, transform_indices = @transform_6, window_bounds = array<i64: 1, 128>}, {pipeline_mode = #tpu.pipeline_mode<synchronous>, transform_indices = @transform_7, window_bounds = array<i64: 1, 128>}, {pipeline_mode = #tpu.pipeline_mode<synchronous>, transform_indices = @transform_8, window_bounds = array<i64: 128, 32>}, {}, {pipeline_mode = #tpu.pipeline_mode<synchronous>, transform_indices = @transform_10, window_bounds = array<i64: 1, 128>}, {pipeline_mode = #tpu.pipeline_mode<synchronous>, transform_indices = @transform_11, window_bounds = array<i64: 1, 128>}, {pipeline_mode = #tpu.pipeline_mode<synchronous>, transform_indices = @transform_12, window_bounds = array<i64: 32, 8>}, {}, {pipeline_mode = #tpu.pipeline_mode<synchronous>, transform_indices = @transform_14, window_bounds = array<i64: 1, 128>}, {pipeline_mode = #tpu.pipeline_mode<synchronous>, transform_indices = @transform_15, window_bounds = array<i64: 1, 128>}, {pipeline_mode = #tpu.pipeline_mode<synchronous>, transform_indices = @transform_16, window_bounds = array<i64: 128, 128>}, {pipeline_mode = #tpu.pipeline_mode<synchronous>, transform_indices = @transform_17, window_bounds = array<i64: 1, 128>}, {pipeline_mode = #tpu.pipeline_mode<synchronous>, transform_indices = @transform_18, window_bounds = array<i64: 2, 128>}]} {
    %c0_i32 = arith.constant 0 : i32
    %0 = tpu.memref_slice %arg22[%c0_i32] : memref<2x!tpu.dma_semaphore, #tpu.memory_space<semaphore_mem>> -> memref<1x!tpu.dma_semaphore, #tpu.memory_space<semaphore_mem>>
    %1 = tpu.memref_squeeze %0 : memref<1x!tpu.dma_semaphore, #tpu.memory_space<semaphore_mem>> -> memref<!tpu.dma_semaphore, #tpu.memory_space<semaphore_mem>>
    tpu.enqueue_dma source(%arg10 : memref<2048x128xbf16, #tpu.memory_space<any>>) target(%arg20 : memref<2048x128xbf16, #tpu.memory_space<vmem>>) target_semaphore(%1 : memref<!tpu.dma_semaphore, #tpu.memory_space<semaphore_mem>>)
    %c1_i32 = arith.constant 1 : i32
    %2 = tpu.memref_slice %arg22[%c1_i32] : memref<2x!tpu.dma_semaphore, #tpu.memory_space<semaphore_mem>> -> memref<1x!tpu.dma_semaphore, #tpu.memory_space<semaphore_mem>>
    %3 = tpu.memref_squeeze %2 : memref<1x!tpu.dma_semaphore, #tpu.memory_space<semaphore_mem>> -> memref<!tpu.dma_semaphore, #tpu.memory_space<semaphore_mem>>
    tpu.enqueue_dma source(%arg14 : memref<2048x128xbf16, #tpu.memory_space<any>>) target(%arg21 : memref<2048x128xbf16, #tpu.memory_space<vmem>>) target_semaphore(%3 : memref<!tpu.dma_semaphore, #tpu.memory_space<semaphore_mem>>)
    %c0 = arith.constant 0 : index
    %c0_0 = arith.constant 0 : index
    %4 = vector.load %arg1[%c0, %c0_0] : memref<128x128xbf16, #tpu.memory_space<vmem>>, vector<128x128xbf16>
    %c0_1 = arith.constant 0 : index
    %c0_2 = arith.constant 0 : index
    %5 = vector.load %arg2[%c0_1, %c0_2] : memref<128x128xbf16, #tpu.memory_space<vmem>>, vector<128x128xbf16>
    %cst = arith.constant dense<0.000000e+00> : vector<128x128xf32>
    %6 = tpu.matmul %4, %5, %cst {dimension_numbers = #tpu.dot_dimension_numbers<[1], [0], [0], [1], [0, 0, 1, 1], [], []>} : vector<128x128xbf16>, vector<128x128xbf16>, vector<128x128xf32> -> vector<128x128xf32>
    %c0_3 = arith.constant 0 : index
    %c0_4 = arith.constant 0 : index
    %7 = vector.load %arg3[%c0_3, %c0_4] : memref<1x128xf32, #tpu.memory_space<vmem>>, vector<1x128xf32>
    %8 = vector.broadcast %7 : vector<1x128xf32> to vector<128x128xf32>
    %9 = arith.mulf %6, %8 : vector<128x128xf32>
    %c0_5 = arith.constant 0 : index
    %c0_6 = arith.constant 0 : index
    %10 = vector.load %arg4[%c0_5, %c0_6] : memref<1x128xf32, #tpu.memory_space<vmem>>, vector<1x128xf32>
    %11 = vector.broadcast %10 : vector<1x128xf32> to vector<128x128xf32>
    %12 = arith.addf %9, %11 : vector<128x128xf32>
    %cst_7 = arith.constant 0.000000e+00 : f32
    %13 = vector.broadcast %cst_7 : f32 to vector<128x128xf32>
    %14 = arith.cmpf ogt, %12, %13 : vector<128x128xf32>
    %cst_8 = arith.constant 2.000000e-01 : f32
    %15 = vector.broadcast %cst_8 : f32 to vector<128x128xf32>
    %16 = arith.mulf %15, %12 : vector<128x128xf32>
    %17 = arith.select %14, %12, %16 : vector<128x128xi1>, vector<128x128xf32>
    %18 = arith.truncf %17 : vector<128x128xf32> to vector<128x128xbf16>
    %c0_9 = arith.constant 0 : index
    %c0_10 = arith.constant 0 : index
    %19 = vector.load %arg5[%c0_9, %c0_10] : memref<512x128xbf16, #tpu.memory_space<vmem>>, vector<512x128xbf16>
    %cst_11 = arith.constant dense<0.000000e+00> : vector<512x128xf32>
    %20 = tpu.matmul %19, %18, %cst_11 {dimension_numbers = #tpu.dot_dimension_numbers<[1], [0], [0], [1], [0, 0, 1, 1], [], []>} : vector<512x128xbf16>, vector<128x128xbf16>, vector<512x128xf32> -> vector<512x128xf32>
    %21 = arith.truncf %20 : vector<512x128xf32> to vector<512x128xbf16>
    %22 = vector.extract_strided_slice %21 {offsets = [0, 0], sizes = [32, 128], strides = [1, 1]} : vector<512x128xbf16> to vector<32x128xbf16>
    %23 = vector.extract_strided_slice %21 {offsets = [32, 0], sizes = [32, 128], strides = [1, 1]} : vector<512x128xbf16> to vector<32x128xbf16>
    %24 = vector.extract_strided_slice %21 {offsets = [64, 0], sizes = [32, 128], strides = [1, 1]} : vector<512x128xbf16> to vector<32x128xbf16>
    %25 = vector.extract_strided_slice %21 {offsets = [96, 0], sizes = [32, 128], strides = [1, 1]} : vector<512x128xbf16> to vector<32x128xbf16>
    %26 = vector.extract_strided_slice %21 {offsets = [128, 0], sizes = [32, 128], strides = [1, 1]} : vector<512x128xbf16> to vector<32x128xbf16>
    %27 = vector.extract_strided_slice %21 {offsets = [160, 0], sizes = [32, 128], strides = [1, 1]} : vector<512x128xbf16> to vector<32x128xbf16>
    %28 = vector.extract_strided_slice %21 {offsets = [192, 0], sizes = [32, 128], strides = [1, 1]} : vector<512x128xbf16> to vector<32x128xbf16>
    %29 = vector.extract_strided_slice %21 {offsets = [224, 0], sizes = [32, 128], strides = [1, 1]} : vector<512x128xbf16> to vector<32x128xbf16>
    %30 = vector.extract_strided_slice %21 {offsets = [256, 0], sizes = [32, 128], strides = [1, 1]} : vector<512x128xbf16> to vector<32x128xbf16>
    %31 = vector.extract_strided_slice %21 {offsets = [288, 0], sizes = [32, 128], strides = [1, 1]} : vector<512x128xbf16> to vector<32x128xbf16>
    %32 = vector.extract_strided_slice %21 {offsets = [320, 0], sizes = [32, 128], strides = [1, 1]} : vector<512x128xbf16> to vector<32x128xbf16>
    %33 = vector.extract_strided_slice %21 {offsets = [352, 0], sizes = [32, 128], strides = [1, 1]} : vector<512x128xbf16> to vector<32x128xbf16>
    %34 = vector.extract_strided_slice %21 {offsets = [384, 0], sizes = [32, 128], strides = [1, 1]} : vector<512x128xbf16> to vector<32x128xbf16>
    %35 = vector.extract_strided_slice %21 {offsets = [416, 0], sizes = [32, 128], strides = [1, 1]} : vector<512x128xbf16> to vector<32x128xbf16>
    %36 = vector.extract_strided_slice %21 {offsets = [448, 0], sizes = [32, 128], strides = [1, 1]} : vector<512x128xbf16> to vector<32x128xbf16>
    %37 = vector.extract_strided_slice %21 {offsets = [480, 0], sizes = [32, 128], strides = [1, 1]} : vector<512x128xbf16> to vector<32x128xbf16>
    %38 = tpu.concatenate %22, %23, %24, %25, %26, %27, %28, %29, %30, %31, %32, %33, %34, %35, %36, %37 in 1 : vector<32x128xbf16>, vector<32x128xbf16>, vector<32x128xbf16>, vector<32x128xbf16>, vector<32x128xbf16>, vector<32x128xbf16>, vector<32x128xbf16>, vector<32x128xbf16>, vector<32x128xbf16>, vector<32x128xbf16>, vector<32x128xbf16>, vector<32x128xbf16>, vector<32x128xbf16>, vector<32x128xbf16>, vector<32x128xbf16>, vector<32x128xbf16> -> vector<32x2048xbf16>
    %c0_12 = arith.constant 0 : index
    %c0_13 = arith.constant 0 : index
    %39 = vector.load %arg6[%c0_12, %c0_13] : memref<2048x128xbf16, #tpu.memory_space<vmem>>, vector<2048x128xbf16>
    %cst_14 = arith.constant dense<0.000000e+00> : vector<32x128xf32>
    %40 = tpu.matmul %38, %39, %cst_14 {dimension_numbers = #tpu.dot_dimension_numbers<[1], [0], [0], [1], [0, 0, 1, 1], [], []>} : vector<32x2048xbf16>, vector<2048x128xbf16>, vector<32x128xf32> -> vector<32x128xf32>
    %c0_15 = arith.constant 0 : index
    %c0_16 = arith.constant 0 : index
    %41 = vector.load %arg7[%c0_15, %c0_16] : memref<1x128xf32, #tpu.memory_space<vmem>>, vector<1x128xf32>
    %42 = vector.broadcast %41 : vector<1x128xf32> to vector<32x128xf32>
    %43 = arith.mulf %40, %42 : vector<32x128xf32>
    %c0_17 = arith.constant 0 : index
    %c0_18 = arith.constant 0 : index
    %44 = vector.load %arg8[%c0_17, %c0_18] : memref<1x128xf32, #tpu.memory_space<vmem>>, vector<1x128xf32>
    %45 = vector.broadcast %44 : vector<1x128xf32> to vector<32x128xf32>
    %46 = arith.addf %43, %45 : vector<32x128xf32>
    %cst_19 = arith.constant 0.000000e+00 : f32
    %47 = vector.broadcast %cst_19 : f32 to vector<32x128xf32>
    %48 = arith.cmpf ogt, %46, %47 : vector<32x128xf32>
    %cst_20 = arith.constant 2.000000e-01 : f32
    %49 = vector.broadcast %cst_20 : f32 to vector<32x128xf32>
    %50 = arith.mulf %49, %46 : vector<32x128xf32>
    %51 = arith.select %48, %46, %50 : vector<32x128xi1>, vector<32x128xf32>
    %52 = arith.truncf %51 : vector<32x128xf32> to vector<32x128xbf16>
    %c0_i32_21 = arith.constant 0 : i32
    %53 = tpu.memref_slice %arg22[%c0_i32_21] : memref<2x!tpu.dma_semaphore, #tpu.memory_space<semaphore_mem>> -> memref<1x!tpu.dma_semaphore, #tpu.memory_space<semaphore_mem>>
    %54 = tpu.memref_squeeze %53 : memref<1x!tpu.dma_semaphore, #tpu.memory_space<semaphore_mem>> -> memref<!tpu.dma_semaphore, #tpu.memory_space<semaphore_mem>>
    tpu.wait_dma2 semaphore(%54 : memref<!tpu.dma_semaphore, #tpu.memory_space<semaphore_mem>>) src(%arg10 : memref<2048x128xbf16, #tpu.memory_space<any>>) dst(%arg20 : memref<2048x128xbf16, #tpu.memory_space<vmem>>)
    %c0_22 = arith.constant 0 : index
    %c0_23 = arith.constant 0 : index
    %55 = vector.load %arg9[%c0_22, %c0_23] : memref<128x32xbf16, #tpu.memory_space<vmem>>, vector<128x32xbf16>
    %cst_24 = arith.constant dense<0.000000e+00> : vector<128x128xf32>
    %56 = tpu.matmul %55, %52, %cst_24 {dimension_numbers = #tpu.dot_dimension_numbers<[1], [0], [0], [1], [0, 0, 1, 1], [], []>} : vector<128x32xbf16>, vector<32x128xbf16>, vector<128x128xf32> -> vector<128x128xf32>
    %57 = arith.truncf %56 : vector<128x128xf32> to vector<128x128xbf16>
    %58 = vector.extract_strided_slice %57 {offsets = [0, 0], sizes = [8, 128], strides = [1, 1]} : vector<128x128xbf16> to vector<8x128xbf16>
    %59 = vector.extract_strided_slice %57 {offsets = [8, 0], sizes = [8, 128], strides = [1, 1]} : vector<128x128xbf16> to vector<8x128xbf16>
    %60 = vector.extract_strided_slice %57 {offsets = [16, 0], sizes = [8, 128], strides = [1, 1]} : vector<128x128xbf16> to vector<8x128xbf16>
    %61 = vector.extract_strided_slice %57 {offsets = [24, 0], sizes = [8, 128], strides = [1, 1]} : vector<128x128xbf16> to vector<8x128xbf16>
    %62 = vector.extract_strided_slice %57 {offsets = [32, 0], sizes = [8, 128], strides = [1, 1]} : vector<128x128xbf16> to vector<8x128xbf16>
    %63 = vector.extract_strided_slice %57 {offsets = [40, 0], sizes = [8, 128], strides = [1, 1]} : vector<128x128xbf16> to vector<8x128xbf16>
    %64 = vector.extract_strided_slice %57 {offsets = [48, 0], sizes = [8, 128], strides = [1, 1]} : vector<128x128xbf16> to vector<8x128xbf16>
    %65 = vector.extract_strided_slice %57 {offsets = [56, 0], sizes = [8, 128], strides = [1, 1]} : vector<128x128xbf16> to vector<8x128xbf16>
    %66 = vector.extract_strided_slice %57 {offsets = [64, 0], sizes = [8, 128], strides = [1, 1]} : vector<128x128xbf16> to vector<8x128xbf16>
    %67 = vector.extract_strided_slice %57 {offsets = [72, 0], sizes = [8, 128], strides = [1, 1]} : vector<128x128xbf16> to vector<8x128xbf16>
    %68 = vector.extract_strided_slice %57 {offsets = [80, 0], sizes = [8, 128], strides = [1, 1]} : vector<128x128xbf16> to vector<8x128xbf16>
    %69 = vector.extract_strided_slice %57 {offsets = [88, 0], sizes = [8, 128], strides = [1, 1]} : vector<128x128xbf16> to vector<8x128xbf16>
    %70 = vector.extract_strided_slice %57 {offsets = [96, 0], sizes = [8, 128], strides = [1, 1]} : vector<128x128xbf16> to vector<8x128xbf16>
    %71 = vector.extract_strided_slice %57 {offsets = [104, 0], sizes = [8, 128], strides = [1, 1]} : vector<128x128xbf16> to vector<8x128xbf16>
    %72 = vector.extract_strided_slice %57 {offsets = [112, 0], sizes = [8, 128], strides = [1, 1]} : vector<128x128xbf16> to vector<8x128xbf16>
    %73 = vector.extract_strided_slice %57 {offsets = [120, 0], sizes = [8, 128], strides = [1, 1]} : vector<128x128xbf16> to vector<8x128xbf16>
    %74 = tpu.concatenate %58, %59, %60, %61, %62, %63, %64, %65, %66, %67, %68, %69, %70, %71, %72, %73 in 1 : vector<8x128xbf16>, vector<8x128xbf16>, vector<8x128xbf16>, vector<8x128xbf16>, vector<8x128xbf16>, vector<8x128xbf16>, vector<8x128xbf16>, vector<8x128xbf16>, vector<8x128xbf16>, vector<8x128xbf16>, vector<8x128xbf16>, vector<8x128xbf16>, vector<8x128xbf16>, vector<8x128xbf16>, vector<8x128xbf16>, vector<8x128xbf16> -> vector<8x2048xbf16>
    %c0_25 = arith.constant 0 : index
    %c0_26 = arith.constant 0 : index
    %75 = vector.load %arg20[%c0_25, %c0_26] : memref<2048x128xbf16, #tpu.memory_space<vmem>>, vector<2048x128xbf16>
    %cst_27 = arith.constant dense<0.000000e+00> : vector<8x128xf32>
    %76 = tpu.matmul %74, %75, %cst_27 {dimension_numbers = #tpu.dot_dimension_numbers<[1], [0], [0], [1], [0, 0, 1, 1], [], []>} : vector<8x2048xbf16>, vector<2048x128xbf16>, vector<8x128xf32> -> vector<8x128xf32>
    %c0_28 = arith.constant 0 : index
    %c0_29 = arith.constant 0 : index
    %77 = vector.load %arg11[%c0_28, %c0_29] : memref<1x128xf32, #tpu.memory_space<vmem>>, vector<1x128xf32>
    %78 = vector.broadcast %77 : vector<1x128xf32> to vector<8x128xf32>
    %79 = arith.mulf %76, %78 : vector<8x128xf32>
    %c0_30 = arith.constant 0 : index
    %c0_31 = arith.constant 0 : index
    %80 = vector.load %arg12[%c0_30, %c0_31] : memref<1x128xf32, #tpu.memory_space<vmem>>, vector<1x128xf32>
    %81 = vector.broadcast %80 : vector<1x128xf32> to vector<8x128xf32>
    %82 = arith.addf %79, %81 : vector<8x128xf32>
    %cst_32 = arith.constant 0.000000e+00 : f32
    %83 = vector.broadcast %cst_32 : f32 to vector<8x128xf32>
    %84 = arith.cmpf ogt, %82, %83 : vector<8x128xf32>
    %cst_33 = arith.constant 2.000000e-01 : f32
    %85 = vector.broadcast %cst_33 : f32 to vector<8x128xf32>
    %86 = arith.mulf %85, %82 : vector<8x128xf32>
    %87 = arith.select %84, %82, %86 : vector<8x128xi1>, vector<8x128xf32>
    %88 = arith.truncf %87 : vector<8x128xf32> to vector<8x128xbf16>
    %c1_i32_34 = arith.constant 1 : i32
    %89 = tpu.memref_slice %arg22[%c1_i32_34] : memref<2x!tpu.dma_semaphore, #tpu.memory_space<semaphore_mem>> -> memref<1x!tpu.dma_semaphore, #tpu.memory_space<semaphore_mem>>
    %90 = tpu.memref_squeeze %89 : memref<1x!tpu.dma_semaphore, #tpu.memory_space<semaphore_mem>> -> memref<!tpu.dma_semaphore, #tpu.memory_space<semaphore_mem>>
    tpu.wait_dma2 semaphore(%90 : memref<!tpu.dma_semaphore, #tpu.memory_space<semaphore_mem>>) src(%arg14 : memref<2048x128xbf16, #tpu.memory_space<any>>) dst(%arg21 : memref<2048x128xbf16, #tpu.memory_space<vmem>>)
    %c0_35 = arith.constant 0 : index
    %c0_36 = arith.constant 0 : index
    %91 = vector.load %arg13[%c0_35, %c0_36] : memref<32x8xbf16, #tpu.memory_space<vmem>>, vector<32x8xbf16>
    %cst_37 = arith.constant dense<0.000000e+00> : vector<32x128xf32>
    %92 = tpu.matmul %91, %88, %cst_37 {dimension_numbers = #tpu.dot_dimension_numbers<[1], [0], [0], [1], [0, 0, 1, 1], [], []>} : vector<32x8xbf16>, vector<8x128xbf16>, vector<32x128xf32> -> vector<32x128xf32>
    %93 = arith.truncf %92 : vector<32x128xf32> to vector<32x128xbf16>
    %94 = vector.extract_strided_slice %93 {offsets = [0, 0], sizes = [2, 128], strides = [1, 1]} : vector<32x128xbf16> to vector<2x128xbf16>
    %95 = vector.extract_strided_slice %93 {offsets = [2, 0], sizes = [2, 128], strides = [1, 1]} : vector<32x128xbf16> to vector<2x128xbf16>
    %96 = vector.extract_strided_slice %93 {offsets = [4, 0], sizes = [2, 128], strides = [1, 1]} : vector<32x128xbf16> to vector<2x128xbf16>
    %97 = vector.extract_strided_slice %93 {offsets = [6, 0], sizes = [2, 128], strides = [1, 1]} : vector<32x128xbf16> to vector<2x128xbf16>
    %98 = vector.extract_strided_slice %93 {offsets = [8, 0], sizes = [2, 128], strides = [1, 1]} : vector<32x128xbf16> to vector<2x128xbf16>
    %99 = vector.extract_strided_slice %93 {offsets = [10, 0], sizes = [2, 128], strides = [1, 1]} : vector<32x128xbf16> to vector<2x128xbf16>
    %100 = vector.extract_strided_slice %93 {offsets = [12, 0], sizes = [2, 128], strides = [1, 1]} : vector<32x128xbf16> to vector<2x128xbf16>
    %101 = vector.extract_strided_slice %93 {offsets = [14, 0], sizes = [2, 128], strides = [1, 1]} : vector<32x128xbf16> to vector<2x128xbf16>
    %102 = vector.extract_strided_slice %93 {offsets = [16, 0], sizes = [2, 128], strides = [1, 1]} : vector<32x128xbf16> to vector<2x128xbf16>
    %103 = vector.extract_strided_slice %93 {offsets = [18, 0], sizes = [2, 128], strides = [1, 1]} : vector<32x128xbf16> to vector<2x128xbf16>
    %104 = vector.extract_strided_slice %93 {offsets = [20, 0], sizes = [2, 128], strides = [1, 1]} : vector<32x128xbf16> to vector<2x128xbf16>
    %105 = vector.extract_strided_slice %93 {offsets = [22, 0], sizes = [2, 128], strides = [1, 1]} : vector<32x128xbf16> to vector<2x128xbf16>
    %106 = vector.extract_strided_slice %93 {offsets = [24, 0], sizes = [2, 128], strides = [1, 1]} : vector<32x128xbf16> to vector<2x128xbf16>
    %107 = vector.extract_strided_slice %93 {offsets = [26, 0], sizes = [2, 128], strides = [1, 1]} : vector<32x128xbf16> to vector<2x128xbf16>
    %108 = vector.extract_strided_slice %93 {offsets = [28, 0], sizes = [2, 128], strides = [1, 1]} : vector<32x128xbf16> to vector<2x128xbf16>
    %109 = vector.extract_strided_slice %93 {offsets = [30, 0], sizes = [2, 128], strides = [1, 1]} : vector<32x128xbf16> to vector<2x128xbf16>
    %110 = tpu.concatenate %94, %95, %96, %97, %98, %99, %100, %101, %102, %103, %104, %105, %106, %107, %108, %109 in 1 : vector<2x128xbf16>, vector<2x128xbf16>, vector<2x128xbf16>, vector<2x128xbf16>, vector<2x128xbf16>, vector<2x128xbf16>, vector<2x128xbf16>, vector<2x128xbf16>, vector<2x128xbf16>, vector<2x128xbf16>, vector<2x128xbf16>, vector<2x128xbf16>, vector<2x128xbf16>, vector<2x128xbf16>, vector<2x128xbf16>, vector<2x128xbf16> -> vector<2x2048xbf16>
    %c0_38 = arith.constant 0 : index
    %c0_39 = arith.constant 0 : index
    %111 = vector.load %arg21[%c0_38, %c0_39] : memref<2048x128xbf16, #tpu.memory_space<vmem>>, vector<2048x128xbf16>
    %cst_40 = arith.constant dense<0.000000e+00> : vector<2x128xf32>
    %112 = tpu.matmul %110, %111, %cst_40 {dimension_numbers = #tpu.dot_dimension_numbers<[1], [0], [0], [1], [0, 0, 1, 1], [], []>} : vector<2x2048xbf16>, vector<2048x128xbf16>, vector<2x128xf32> -> vector<2x128xf32>
    %c0_41 = arith.constant 0 : index
    %c0_42 = arith.constant 0 : index
    %113 = vector.load %arg15[%c0_41, %c0_42] : memref<1x128xf32, #tpu.memory_space<vmem>>, vector<1x128xf32>
    %114 = vector.broadcast %113 : vector<1x128xf32> to vector<2x128xf32>
    %115 = arith.mulf %112, %114 : vector<2x128xf32>
    %c0_43 = arith.constant 0 : index
    %c0_44 = arith.constant 0 : index
    %116 = vector.load %arg16[%c0_43, %c0_44] : memref<1x128xf32, #tpu.memory_space<vmem>>, vector<1x128xf32>
    %117 = vector.broadcast %116 : vector<1x128xf32> to vector<2x128xf32>
    %118 = arith.addf %115, %117 : vector<2x128xf32>
    %cst_45 = arith.constant 0.000000e+00 : f32
    %119 = vector.broadcast %cst_45 : f32 to vector<2x128xf32>
    %120 = arith.cmpf ogt, %118, %119 : vector<2x128xf32>
    %cst_46 = arith.constant 2.000000e-01 : f32
    %121 = vector.broadcast %cst_46 : f32 to vector<2x128xf32>
    %122 = arith.mulf %121, %118 : vector<2x128xf32>
    %123 = arith.select %120, %118, %122 : vector<2x128xi1>, vector<2x128xf32>
    %124 = arith.truncf %123 : vector<2x128xf32> to vector<2x128xbf16>
    %c0_47 = arith.constant 0 : index
    %c0_48 = arith.constant 0 : index
    %125 = vector.load %arg17[%c0_47, %c0_48] : memref<128x128xbf16, #tpu.memory_space<vmem>>, vector<128x128xbf16>
    %cst_49 = arith.constant dense<0.000000e+00> : vector<2x128xf32>
    %126 = tpu.matmul %124, %125, %cst_49 {dimension_numbers = #tpu.dot_dimension_numbers<[1], [0], [0], [1], [0, 0, 1, 1], [], []>} : vector<2x128xbf16>, vector<128x128xbf16>, vector<2x128xf32> -> vector<2x128xf32>
    %c0_50 = arith.constant 0 : index
    %c0_51 = arith.constant 0 : index
    %127 = vector.load %arg18[%c0_50, %c0_51] : memref<1x128xf32, #tpu.memory_space<vmem>>, vector<1x128xf32>
    %128 = vector.broadcast %127 : vector<1x128xf32> to vector<2x128xf32>
    %129 = arith.addf %126, %128 : vector<2x128xf32>
    %c0_52 = arith.constant 0 : index
    %c0_53 = arith.constant 0 : index
    %130 = vector.load %arg19[%c0_52, %c0_53] : memref<2x128xf32, #tpu.memory_space<vmem>>, vector<2x128xf32>
    tpu.vector_store %arg19[%c0_52, %c0_53], %129 {strides = array<i32>} : memref<2x128xf32, #tpu.memory_space<vmem>>, vector<2x128xf32>,
    return
  }
  func.func @transform_0(%arg0: i32) -> (i32, i32) {
    %c0_i32 = arith.constant 0 : i32
    %c0_i32_0 = arith.constant 0 : i32
    %c0_i32_1 = arith.constant 0 : i32
    return %c0_i32, %c0_i32_0 : i32, i32
  }
  func.func @transform_1(%arg0: i32) -> (i32, i32) {
    %c0_i32 = arith.constant 0 : i32
    %c0_i32_0 = arith.constant 0 : i32
    %c0_i32_1 = arith.constant 0 : i32
    return %c0_i32, %c0_i32_0 : i32, i32
  }
  func.func @transform_2(%arg0: i32) -> (i32, i32) {
    %c0_i32 = arith.constant 0 : i32
    %c0_i32_0 = arith.constant 0 : i32
    %c0_i32_1 = arith.constant 0 : i32
    return %c0_i32, %c0_i32_0 : i32, i32
  }
  func.func @transform_3(%arg0: i32) -> (i32, i32) {
    %c0_i32 = arith.constant 0 : i32
    %c0_i32_0 = arith.constant 0 : i32
    %c0_i32_1 = arith.constant 0 : i32
    return %c0_i32, %c0_i32_0 : i32, i32
  }
  func.func @transform_4(%arg0: i32) -> (i32, i32) {
    %c0_i32 = arith.constant 0 : i32
    %c0_i32_0 = arith.constant 0 : i32
    %c0_i32_1 = arith.constant 0 : i32
    return %c0_i32, %c0_i32_0 : i32, i32
  }
  func.func @transform_5(%arg0: i32) -> (i32, i32) {
    %c0_i32 = arith.constant 0 : i32
    %c0_i32_0 = arith.constant 0 : i32
    %c0_i32_1 = arith.constant 0 : i32
    return %c0_i32, %c0_i32_0 : i32, i32
  }
  func.func @transform_6(%arg0: i32) -> (i32, i32) {
    %c0_i32 = arith.constant 0 : i32
    %c0_i32_0 = arith.constant 0 : i32
    %c0_i32_1 = arith.constant 0 : i32
    return %c0_i32, %c0_i32_0 : i32, i32
  }
  func.func @transform_7(%arg0: i32) -> (i32, i32) {
    %c0_i32 = arith.constant 0 : i32
    %c0_i32_0 = arith.constant 0 : i32
    %c0_i32_1 = arith.constant 0 : i32
    return %c0_i32, %c0_i32_0 : i32, i32
  }
  func.func @transform_8(%arg0: i32) -> (i32, i32) {
    %c0_i32 = arith.constant 0 : i32
    %c0_i32_0 = arith.constant 0 : i32
    %c0_i32_1 = arith.constant 0 : i32
    return %c0_i32, %c0_i32_0 : i32, i32
  }
  func.func @transform_10(%arg0: i32) -> (i32, i32) {
    %c0_i32 = arith.constant 0 : i32
    %c0_i32_0 = arith.constant 0 : i32
    %c0_i32_1 = arith.constant 0 : i32
    return %c0_i32, %c0_i32_0 : i32, i32
  }
  func.func @transform_11(%arg0: i32) -> (i32, i32) {
    %c0_i32 = arith.constant 0 : i32
    %c0_i32_0 = arith.constant 0 : i32
    %c0_i32_1 = arith.constant 0 : i32
    return %c0_i32, %c0_i32_0 : i32, i32
  }
  func.func @transform_12(%arg0: i32) -> (i32, i32) {
    %c0_i32 = arith.constant 0 : i32
    %c0_i32_0 = arith.constant 0 : i32
    %c0_i32_1 = arith.constant 0 : i32
    return %c0_i32, %c0_i32_0 : i32, i32
  }
  func.func @transform_14(%arg0: i32) -> (i32, i32) {
    %c0_i32 = arith.constant 0 : i32
    %c0_i32_0 = arith.constant 0 : i32
    %c0_i32_1 = arith.constant 0 : i32
    return %c0_i32, %c0_i32_0 : i32, i32
  }
  func.func @transform_15(%arg0: i32) -> (i32, i32) {
    %c0_i32 = arith.constant 0 : i32
    %c0_i32_0 = arith.constant 0 : i32
    %c0_i32_1 = arith.constant 0 : i32
    return %c0_i32, %c0_i32_0 : i32, i32
  }
  func.func @transform_16(%arg0: i32) -> (i32, i32) {
    %c0_i32 = arith.constant 0 : i32
    %c0_i32_0 = arith.constant 0 : i32
    %c0_i32_1 = arith.constant 0 : i32
    return %c0_i32, %c0_i32_0 : i32, i32
  }
  func.func @transform_17(%arg0: i32) -> (i32, i32) {
    %c0_i32 = arith.constant 0 : i32
    %c0_i32_0 = arith.constant 0 : i32
    %c0_i32_1 = arith.constant 0 : i32
    return %c0_i32, %c0_i32_0 : i32, i32
  }
  func.func @transform_18(%arg0: i32) -> (i32, i32) {
    %c0_i32 = arith.constant 0 : i32
    %c0_i32_0 = arith.constant 0 : i32
    %c0_i32_1 = arith.constant 0 : i32
    return %c0_i32, %c0_i32_0 : i32, i32
  }
}

</mosaic_0001>

<bundles_post_ra>
// kernel: encoder_forward.1
= control target key start
LH: loop header
LB: loop body
LE: loop exit
PB: predicated region body
PF: predicated region fallthrough
CT: control target
= control target key end

     0   :  { %s8080_s0 = inlined_call_operand.vmem [shape: bf16[128,128], index: 0, kind: input, shape index: {}]   ;;  %s8081_s1 = inlined_call_operand.vmem [shape: bf16[128,128], index: 1, kind: input, shape index: {}]   ;;  %s8082_s2 = inlined_call_operand.vmem [shape: f32[1,128], index: 2, kind: input, shape index: {}]   ;;  %s8083_s3 = inlined_call_operand.vmem [shape: f32[1,128], index: 3, kind: input, shape index: {}]   ;;  %s8084_s4 = inlined_call_operand.vmem [shape: bf16[512,128], index: 4, kind: input, shape index: {}]   ;;  %s8085_s5 = inlined_call_operand.vmem [shape: bf16[2048,128], index: 5, kind: input, shape index: {}]   ;;  %s8086_s6 = inlined_call_operand.vmem [shape: f32[1,128], index: 6, kind: input, shape index: {}]   ;;  %s8087_s7 = inlined_call_operand.vmem [shape: f32[1,128], index: 7, kind: input, shape index: {}]   ;;  %s8088_s8 = inlined_call_operand.vmem [shape: bf16[128,32], index: 8, kind: input, shape index: {}]   ;;  %s8089_s9 = inlined_call_operand.vmem [shape: bf16[2048,128], index: 9, kind: input, shape index: {}]   ;;  %s8090_s10 = inlined_call_operand.vmem [shape: f32[1,128], index: 10, kind: input, shape index: {}]   ;;  %s8091_s11 = inlined_call_operand.vmem [shape: f32[1,128], index: 11, kind: input, shape index: {}]   ;;  %s8092_s12 = inlined_call_operand.vmem [shape: bf16[32,8], index: 12, kind: input, shape index: {}]   ;;  %s8093_s13 = inlined_call_operand.vmem [shape: bf16[2048,128], index: 13, kind: input, shape index: {}]   ;;  %s8094_s14 = inlined_call_operand.vmem [shape: f32[1,128], index: 14, kind: input, shape index: {}]   ;;  %s8095_s15 = inlined_call_operand.vmem [shape: f32[1,128], index: 15, kind: input, shape index: {}]   ;;  %s8096_s16 = inlined_call_operand.vmem [shape: bf16[128,128], index: 16, kind: input, shape index: {}]   ;;  %s8097_s17 = inlined_call_operand.vmem [shape: f32[1,128], index: 17, kind: input, shape index: {}]   ;;  %s8098_s18 = inlined_call_operand.vmem [shape: f32[2,128], index: 18, kind: output, shape index: {}]  }
   0x1   :  { %8101 = sst [smem:[#allocation234_spill]] %s8080_s0  ;;  %v5736_v0 = vld [vmem:[%s8089_s9] sm:$0xff]  ;;  %v5741_v1 = vld [vmem:[%s8089_s9 + $0x8] sm:$0xff]  ;;  %v5746_v2 = vld [vmem:[%s8089_s9 + $0x10] sm:$0xff] }
   0x2   :  { %8102 = sst [smem:[#allocation235_spill]] %s8081_s1  ;;  %v5751_v3 = vld [vmem:[%s8089_s9 + $0x18] sm:$0xff]  ;;  %v5756_v4 = vld [vmem:[%s8089_s9 + $0x20] sm:$0xff]  ;;  %v5761_v5 = vld [vmem:[%s8089_s9 + $0x28] sm:$0xff] }
   0x3   :  { %8103 = sst [smem:[#allocation236_spill]] %s8082_s2  ;;  %v5766_v6 = vld [vmem:[%s8089_s9 + $0x30] sm:$0xff]  ;;  %v5771_v7 = vld [vmem:[%s8089_s9 + $0x38] sm:$0xff]  ;;  %v5776_v8 = vld [vmem:[%s8089_s9 + $0x40] sm:$0xff] }
   0x4   :  { %v5781_v9 = vld [vmem:[%s8089_s9 + $0x48] sm:$0xff]  ;;  %v5786_v10 = vld [vmem:[%s8089_s9 + $0x50] sm:$0xff]  ;;  %v5791_v11 = vld [vmem:[%s8089_s9 + $0x58] sm:$0xff] }
   0x5   :  { %v5796_v12 = vld [vmem:[%s8089_s9 + $0x60] sm:$0xff]  ;;  %v5801_v13 = vld [vmem:[%s8089_s9 + $0x68] sm:$0xff]  ;;  %v5806_v14 = vld [vmem:[%s8089_s9 + $0x70] sm:$0xff] }
   0x6   :  { %v5811_v15 = vld [vmem:[%s8089_s9 + $0x78] sm:$0xff]  ;;  %v5816_v16 = vld [vmem:[%s8089_s9 + $0x80] sm:$0xff]  ;;  %v5821_v17 = vld [vmem:[%s8089_s9 + $0x88] sm:$0xff] }
   0x7   :  { %v5826_v18 = vld [vmem:[%s8089_s9 + $0x90] sm:$0xff]  ;;  %v5831_v19 = vld [vmem:[%s8089_s9 + $0x98] sm:$0xff]  ;;  %v5836_v20 = vld [vmem:[%s8089_s9 + $0xa0] sm:$0xff] }
   0x8   :  { %v5841_v21 = vld [vmem:[%s8089_s9 + $0xa8] sm:$0xff]  ;;  %v5846_v22 = vld [vmem:[%s8089_s9 + $0xb0] sm:$0xff]  ;;  %v5851_v23 = vld [vmem:[%s8089_s9 + $0xb8] sm:$0xff] }
   0x9   :  { %8104 = vst [vmem:[#allocation9_spill] sm:$0xff] %v5851_v23  ;;  %v5856_v24 = vld [vmem:[%s8089_s9 + $0xc0] sm:$0xff]  ;;  %v5861_v25 = vld [vmem:[%s8089_s9 + $0xc8] sm:$0xff]  ;;  %v5866_v26 = vld [vmem:[%s8089_s9 + $0xd0] sm:$0xff] }
   0xa   :  { %v5871_v27 = vld [vmem:[%s8089_s9 + $0xd8] sm:$0xff]  ;;  %v5876_v28 = vld [vmem:[%s8089_s9 + $0xe0] sm:$0xff]  ;;  %v5881_v29 = vld [vmem:[%s8089_s9 + $0xe8] sm:$0xff] }
   0xb   :  { %v5886_v30 = vld [vmem:[%s8089_s9 + $0xf0] sm:$0xff]  ;;  %v5891_v31 = vld [vmem:[%s8089_s9 + $0xf8] sm:$0xff]  ;;  %v5896_v32 = vld [vmem:[%s8089_s9 + $0x100] sm:$0xff] }
   0xc   :  { %8105 = vst [vmem:[#allocation10_spill] sm:$0xff] %v5891_v31  ;;  %8106 = vst [vmem:[#allocation11_spill] sm:$0xff] %v5896_v32  ;;  %v5901_v33 = vld [vmem:[%s8089_s9 + $0x108] sm:$0xff]  ;;  %v5906_v34 = vld [vmem:[%s8089_s9 + $0x110] sm:$0xff] }
   0xd   :  { %8107 = vst [vmem:[#allocation12_spill] sm:$0xff] %v5901_v33  ;;  %8108 = vst [vmem:[#allocation13_spill] sm:$0xff] %v5906_v34  ;;  %v5911_v35 = vld [vmem:[%s8089_s9 + $0x118] sm:$0xff]  ;;  %v5916_v36 = vld [vmem:[%s8089_s9 + $0x120] sm:$0xff] }
   0xe   :  { %8109 = vst [vmem:[#allocation14_spill] sm:$0xff] %v5911_v35  ;;  %8110 = vst [vmem:[#allocation15_spill] sm:$0xff] %v5916_v36  ;;  %v5921_v37 = vld [vmem:[%s8089_s9 + $0x128] sm:$0xff]  ;;  %v5926_v38 = vld [vmem:[%s8089_s9 + $0x130] sm:$0xff] }
   0xf   :  { %8111 = vst [vmem:[#allocation16_spill] sm:$0xff] %v5921_v37  ;;  %8112 = vst [vmem:[#allocation17_spill] sm:$0xff] %v5926_v38  ;;  %v5931_v39 = vld [vmem:[%s8089_s9 + $0x138] sm:$0xff]  ;;  %v5936_v40 = vld [vmem:[%s8089_s9 + $0x140] sm:$0xff] }
  0x10   :  { %8113 = vst [vmem:[#allocation18_spill] sm:$0xff] %v5931_v39  ;;  %v5941_v41 = vld [vmem:[%s8089_s9 + $0x148] sm:$0xff]  ;;  %v5946_v42 = vld [vmem:[%s8089_s9 + $0x150] sm:$0xff]  ;;  %v5951_v43 = vld [vmem:[%s8089_s9 + $0x158] sm:$0xff] }
  0x11   :  { %8114 = vst [vmem:[#allocation19_spill] sm:$0xff] %v5941_v41  ;;  %8115 = vst [vmem:[#allocation20_spill] sm:$0xff] %v5946_v42  ;;  %v5956_v44 = vld [vmem:[%s8089_s9 + $0x160] sm:$0xff]  ;;  %v5961_v45 = vld [vmem:[%s8089_s9 + $0x168] sm:$0xff] }
  0x12   :  { %8116 = vst [vmem:[#allocation21_spill] sm:$0xff] %v5951_v43  ;;  %8117 = vst [vmem:[#allocation22_spill] sm:$0xff] %v5956_v44  ;;  %v5966_v46 = vld [vmem:[%s8089_s9 + $0x170] sm:$0xff]  ;;  %v5971_v47 = vld [vmem:[%s8089_s9 + $0x178] sm:$0xff] }
  0x13   :  { %8118 = vst [vmem:[#allocation23_spill] sm:$0xff] %v5961_v45  ;;  %8119 = vst [vmem:[#allocation24_spill] sm:$0xff] %v5966_v46  ;;  %v5976_v48 = vld [vmem:[%s8089_s9 + $0x180] sm:$0xff]  ;;  %v5981_v49 = vld [vmem:[%s8089_s9 + $0x188] sm:$0xff] }
  0x14   :  { %8120 = vst [vmem:[#allocation25_spill] sm:$0xff] %v5971_v47  ;;  %8121 = vst [vmem:[#allocation26_spill] sm:$0xff] %v5976_v48  ;;  %v5986_v50 = vld [vmem:[%s8089_s9 + $0x190] sm:$0xff]  ;;  %v5991_v51 = vld [vmem:[%s8089_s9 + $0x198] sm:$0xff] }
  0x15   :  { %8122 = vst [vmem:[#allocation27_spill] sm:$0xff] %v5981_v49  ;;  %8123 = vst [vmem:[#allocation28_spill] sm:$0xff] %v5986_v50  ;;  %v5996_v52 = vld [vmem:[%s8089_s9 + $0x1a0] sm:$0xff]  ;;  %v6001_v53 = vld [vmem:[%s8089_s9 + $0x1a8] sm:$0xff] }
  0x16   :  { %8124 = vst [vmem:[#allocation29_spill] sm:$0xff] %v5991_v51  ;;  %8125 = vst [vmem:[#allocation30_spill] sm:$0xff] %v5996_v52  ;;  %v6006_v54 = vld [vmem:[%s8089_s9 + $0x1b0] sm:$0xff]  ;;  %v6011_v55 = vld [vmem:[%s8089_s9 + $0x1b8] sm:$0xff] }
  0x17   :  { %8126 = vst [vmem:[#allocation31_spill] sm:$0xff] %v6001_v53  ;;  %8127 = vst [vmem:[#allocation32_spill] sm:$0xff] %v6006_v54  ;;  %v6016_v56 = vld [vmem:[%s8089_s9 + $0x1c0] sm:$0xff]  ;;  %v6021_v57 = vld [vmem:[%s8089_s9 + $0x1c8] sm:$0xff] }
  0x18   :  { %8128 = vst [vmem:[#allocation33_spill] sm:$0xff] %v6011_v55  ;;  %8129 = vst [vmem:[#allocation34_spill] sm:$0xff] %v6016_v56  ;;  %v6026_v58 = vld [vmem:[%s8089_s9 + $0x1d0] sm:$0xff]  ;;  %v6031_v59 = vld [vmem:[%s8089_s9 + $0x1d8] sm:$0xff] }
  0x19   :  { %8130 = vst [vmem:[#allocation35_spill] sm:$0xff] %v6021_v57  ;;  %8131 = vst [vmem:[#allocation36_spill] sm:$0xff] %v6026_v58  ;;  %v6036_v60 = vld [vmem:[%s8089_s9 + $0x1e0] sm:$0xff]  ;;  %v6041_v61 = vld [vmem:[%s8089_s9 + $0x1e8] sm:$0xff] }
  0x1a   :  { %8132 = vst [vmem:[#allocation37_spill] sm:$0xff] %v6031_v59  ;;  %8133 = vst [vmem:[#allocation38_spill] sm:$0xff] %v6036_v60  ;;  %v6046_v62 = vld [vmem:[%s8089_s9 + $0x1f0] sm:$0xff]  ;;  %v6051_v63 = vld [vmem:[%s8089_s9 + $0x1f8] sm:$0xff] }
  0x1b   :  { %8134 = vst [vmem:[#allocation39_spill] sm:$0xff] %v6041_v61  ;;  %8135 = vst [vmem:[#allocation40_spill] sm:$0xff] %v6046_v62  ;;  %v6056_v39 = vld [vmem:[%s8089_s9 + $0x200] sm:$0xff]  ;;  %v6061_v55 = vld [vmem:[%s8089_s9 + $0x208] sm:$0xff] }
  0x1c   :  { %8136 = vst [vmem:[#allocation41_spill] sm:$0xff] %v6051_v63  ;;  %8137 = vst [vmem:[#allocation42_spill] sm:$0xff] %v6056_v39  ;;  %v6066_v47 = vld [vmem:[%s8089_s9 + $0x210] sm:$0xff]  ;;  %v6071_v38 = vld [vmem:[%s8089_s9 + $0x218] sm:$0xff] }
  0x1d   :  { %8138 = vst [vmem:[#allocation43_spill] sm:$0xff] %v6061_v55  ;;  %8139 = vst [vmem:[#allocation44_spill] sm:$0xff] %v6066_v47  ;;  %v6076_v63 = vld [vmem:[%s8089_s9 + $0x220] sm:$0xff]  ;;  %v6081_v39 = vld [vmem:[%s8089_s9 + $0x228] sm:$0xff] }
  0x1e   :  { %8140 = vst [vmem:[#allocation45_spill] sm:$0xff] %v6071_v38  ;;  %8141 = vst [vmem:[#allocation46_spill] sm:$0xff] %v6076_v63  ;;  %v6086_v55 = vld [vmem:[%s8089_s9 + $0x230] sm:$0xff]  ;;  %v6091_v47 = vld [vmem:[%s8089_s9 + $0x238] sm:$0xff] }
  0x1f   :  { %8142 = vst [vmem:[#allocation47_spill] sm:$0xff] %v6081_v39  ;;  %8143 = vst [vmem:[#allocation48_spill] sm:$0xff] %v6086_v55  ;;  %v6096_v38 = vld [vmem:[%s8089_s9 + $0x240] sm:$0xff]  ;;  %v6101_v63 = vld [vmem:[%s8089_s9 + $0x248] sm:$0xff] }
  0x20   :  { %8144 = vst [vmem:[#allocation49_spill] sm:$0xff] %v6091_v47  ;;  %8145 = vst [vmem:[#allocation50_spill] sm:$0xff] %v6096_v38  ;;  %v6106_v39 = vld [vmem:[%s8089_s9 + $0x250] sm:$0xff]  ;;  %v6111_v55 = vld [vmem:[%s8089_s9 + $0x258] sm:$0xff] }
  0x21   :  { %8146 = vst [vmem:[#allocation51_spill] sm:$0xff] %v6101_v63  ;;  %8147 = vst [vmem:[#allocation52_spill] sm:$0xff] %v6106_v39  ;;  %v6116_v47 = vld [vmem:[%s8089_s9 + $0x260] sm:$0xff]  ;;  %v6121_v38 = vld [vmem:[%s8089_s9 + $0x268] sm:$0xff] }
  0x22   :  { %8148 = vst [vmem:[#allocation53_spill] sm:$0xff] %v6111_v55  ;;  %8149 = vst [vmem:[#allocation54_spill] sm:$0xff] %v6116_v47  ;;  %v6126_v63 = vld [vmem:[%s8089_s9 + $0x270] sm:$0xff]  ;;  %v6131_v39 = vld [vmem:[%s8089_s9 + $0x278] sm:$0xff] }
  0x23   :  { %8150 = vst [vmem:[#allocation55_spill] sm:$0xff] %v6121_v38  ;;  %8151 = vst [vmem:[#allocation56_spill] sm:$0xff] %v6126_v63  ;;  %v6136_v55 = vld [vmem:[%s8089_s9 + $0x280] sm:$0xff]  ;;  %v6141_v47 = vld [vmem:[%s8089_s9 + $0x288] sm:$0xff] }
  0x24   :  { %8152 = vst [vmem:[#allocation57_spill] sm:$0xff] %v6131_v39  ;;  %8153 = vst [vmem:[#allocation58_spill] sm:$0xff] %v6136_v55  ;;  %v6146_v38 = vld [vmem:[%s8089_s9 + $0x290] sm:$0xff]  ;;  %v6151_v63 = vld [vmem:[%s8089_s9 + $0x298] sm:$0xff] }
  0x25   :  { %8154 = vst [vmem:[#allocation59_spill] sm:$0xff] %v6141_v47  ;;  %8155 = vst [vmem:[#allocation60_spill] sm:$0xff] %v6146_v38  ;;  %v6156_v39 = vld [vmem:[%s8089_s9 + $0x2a0] sm:$0xff]  ;;  %v6161_v55 = vld [vmem:[%s8089_s9 + $0x2a8] sm:$0xff] }
  0x26   :  { %8156 = vst [vmem:[#allocation61_spill] sm:$0xff] %v6151_v63  ;;  %8157 = vst [vmem:[#allocation62_spill] sm:$0xff] %v6156_v39  ;;  %v6166_v47 = vld [vmem:[%s8089_s9 + $0x2b0] sm:$0xff]  ;;  %v6171_v38 = vld [vmem:[%s8089_s9 + $0x2b8] sm:$0xff] }
  0x27   :  { %8158 = vst [vmem:[#allocation63_spill] sm:$0xff] %v6161_v55  ;;  %8159 = vst [vmem:[#allocation64_spill] sm:$0xff] %v6166_v47  ;;  %v6176_v63 = vld [vmem:[%s8089_s9 + $0x2c0] sm:$0xff]  ;;  %v6181_v39 = vld [vmem:[%s8089_s9 + $0x2c8] sm:$0xff] }
  0x28   :  { %8160 = vst [vmem:[#allocation65_spill] sm:$0xff] %v6171_v38  ;;  %8161 = vst [vmem:[#allocation66_spill] sm:$0xff] %v6176_v63  ;;  %v6186_v55 = vld [vmem:[%s8089_s9 + $0x2d0] sm:$0xff]  ;;  %v6191_v47 = vld [vmem:[%s8089_s9 + $0x2d8] sm:$0xff] }
  0x29   :  { %8162 = vst [vmem:[#allocation67_spill] sm:$0xff] %v6181_v39  ;;  %8163 = vst [vmem:[#allocation68_spill] sm:$0xff] %v6186_v55  ;;  %v6196_v38 = vld [vmem:[%s8089_s9 + $0x2e0] sm:$0xff]  ;;  %v6201_v63 = vld [vmem:[%s8089_s9 + $0x2e8] sm:$0xff] }
  0x2a   :  { %8164 = vst [vmem:[#allocation69_spill] sm:$0xff] %v6191_v47  ;;  %8165 = vst [vmem:[#allocation70_spill] sm:$0xff] %v6196_v38  ;;  %v6206_v39 = vld [vmem:[%s8089_s9 + $0x2f0] sm:$0xff]  ;;  %v6211_v55 = vld [vmem:[%s8089_s9 + $0x2f8] sm:$0xff] }
  0x2b   :  { %8166 = vst [vmem:[#allocation71_spill] sm:$0xff] %v6201_v63  ;;  %8167 = vst [vmem:[#allocation72_spill] sm:$0xff] %v6206_v39  ;;  %v6216_v47 = vld [vmem:[%s8089_s9 + $0x300] sm:$0xff]  ;;  %v6221_v38 = vld [vmem:[%s8089_s9 + $0x308] sm:$0xff] }
  0x2c   :  { %8168 = vst [vmem:[#allocation73_spill] sm:$0xff] %v6211_v55  ;;  %8169 = vst [vmem:[#allocation74_spill] sm:$0xff] %v6216_v47  ;;  %v6226_v63 = vld [vmem:[%s8089_s9 + $0x310] sm:$0xff]  ;;  %v6231_v39 = vld [vmem:[%s8089_s9 + $0x318] sm:$0xff] }
  0x2d   :  { %8170 = vst [vmem:[#allocation75_spill] sm:$0xff] %v6221_v38  ;;  %8171 = vst [vmem:[#allocation76_spill] sm:$0xff] %v6226_v63  ;;  %v6236_v55 = vld [vmem:[%s8089_s9 + $0x320] sm:$0xff]  ;;  %v6241_v47 = vld [vmem:[%s8089_s9 + $0x328] sm:$0xff] }
  0x2e   :  { %8172 = vst [vmem:[#allocation77_spill] sm:$0xff] %v6231_v39  ;;  %8173 = vst [vmem:[#allocation78_spill] sm:$0xff] %v6236_v55  ;;  %v6246_v38 = vld [vmem:[%s8089_s9 + $0x330] sm:$0xff]  ;;  %v6251_v63 = vld [vmem:[%s8089_s9 + $0x338] sm:$0xff] }
  0x2f   :  { %8174 = vst [vmem:[#allocation79_spill] sm:$0xff] %v6241_v47  ;;  %8175 = vst [vmem:[#allocation80_spill] sm:$0xff] %v6246_v38  ;;  %v6256_v39 = vld [vmem:[%s8089_s9 + $0x340] sm:$0xff]  ;;  %v6261_v55 = vld [vmem:[%s8089_s9 + $0x348] sm:$0xff] }
  0x30   :  { %8176 = vst [vmem:[#allocation81_spill] sm:$0xff] %v6251_v63  ;;  %8177 = vst [vmem:[#allocation82_spill] sm:$0xff] %v6256_v39  ;;  %v6266_v47 = vld [vmem:[%s8089_s9 + $0x350] sm:$0xff]  ;;  %v6271_v38 = vld [vmem:[%s8089_s9 + $0x358] sm:$0xff] }
  0x31   :  { %8178 = vst [vmem:[#allocation83_spill] sm:$0xff] %v6261_v55  ;;  %8179 = vst [vmem:[#allocation84_spill] sm:$0xff] %v6266_v47  ;;  %v6276_v63 = vld [vmem:[%s8089_s9 + $0x360] sm:$0xff]  ;;  %v6281_v39 = vld [vmem:[%s8089_s9 + $0x368] sm:$0xff] }
  0x32   :  { %8180 = vst [vmem:[#allocation85_spill] sm:$0xff] %v6271_v38  ;;  %8181 = vst [vmem:[#allocation86_spill] sm:$0xff] %v6276_v63  ;;  %v6286_v55 = vld [vmem:[%s8089_s9 + $0x370] sm:$0xff]  ;;  %v6291_v47 = vld [vmem:[%s8089_s9 + $0x378] sm:$0xff] }
  0x33   :  { %8182 = vst [vmem:[#allocation87_spill] sm:$0xff] %v6281_v39  ;;  %8183 = vst [vmem:[#allocation88_spill] sm:$0xff] %v6286_v55  ;;  %v6296_v38 = vld [vmem:[%s8089_s9 + $0x380] sm:$0xff]  ;;  %v6301_v63 = vld [vmem:[%s8089_s9 + $0x388] sm:$0xff] }
  0x34   :  { %8184 = vst [vmem:[#allocation89_spill] sm:$0xff] %v6291_v47  ;;  %8185 = vst [vmem:[#allocation90_spill] sm:$0xff] %v6296_v38  ;;  %v6306_v39 = vld [vmem:[%s8089_s9 + $0x390] sm:$0xff]  ;;  %v6311_v55 = vld [vmem:[%s8089_s9 + $0x398] sm:$0xff] }
  0x35   :  { %8186 = vst [vmem:[#allocation91_spill] sm:$0xff] %v6301_v63  ;;  %8187 = vst [vmem:[#allocation92_spill] sm:$0xff] %v6306_v39  ;;  %v6316_v47 = vld [vmem:[%s8089_s9 + $0x3a0] sm:$0xff]  ;;  %v6321_v38 = vld [vmem:[%s8089_s9 + $0x3a8] sm:$0xff] }
  0x36   :  { %8188 = vst [vmem:[#allocation93_spill] sm:$0xff] %v6311_v55  ;;  %8189 = vst [vmem:[#allocation94_spill] sm:$0xff] %v6316_v47  ;;  %v6326_v63 = vld [vmem:[%s8089_s9 + $0x3b0] sm:$0xff]  ;;  %v6331_v39 = vld [vmem:[%s8089_s9 + $0x3b8] sm:$0xff] }
  0x37   :  { %8190 = vst [vmem:[#allocation95_spill] sm:$0xff] %v6321_v38  ;;  %8191 = vst [vmem:[#allocation96_spill] sm:$0xff] %v6326_v63  ;;  %v6336_v55 = vld [vmem:[%s8089_s9 + $0x3c0] sm:$0xff]  ;;  %v6341_v47 = vld [vmem:[%s8089_s9 + $0x3c8] sm:$0xff] }
  0x38   :  { %8192 = vst [vmem:[#allocation97_spill] sm:$0xff] %v6331_v39  ;;  %8193 = vst [vmem:[#allocation98_spill] sm:$0xff] %v6336_v55  ;;  %v6346_v38 = vld [vmem:[%s8089_s9 + $0x3d0] sm:$0xff]  ;;  %v6351_v63 = vld [vmem:[%s8089_s9 + $0x3d8] sm:$0xff] }
  0x39   :  { %8194 = vst [vmem:[#allocation99_spill] sm:$0xff] %v6341_v47  ;;  %8195 = vst [vmem:[#allocation100_spill] sm:$0xff] %v6346_v38  ;;  %v6356_v39 = vld [vmem:[%s8089_s9 + $0x3e0] sm:$0xff]  ;;  %v6361_v55 = vld [vmem:[%s8089_s9 + $0x3e8] sm:$0xff] }
  0x3a   :  { %8196 = vst [vmem:[#allocation101_spill] sm:$0xff] %v6351_v63  ;;  %8197 = vst [vmem:[#allocation102_spill] sm:$0xff] %v6356_v39  ;;  %v6366_v47 = vld [vmem:[%s8089_s9 + $0x3f0] sm:$0xff]  ;;  %v6371_v38 = vld [vmem:[%s8089_s9 + $0x3f8] sm:$0xff] }
  0x3b   :  { %8198 = vst [vmem:[#allocation103_spill] sm:$0xff] %v6361_v55  ;;  %8199 = vst [vmem:[#allocation104_spill] sm:$0xff] %v6366_v47 }
  0x3c   :  { %8200 = vst [vmem:[#allocation105_spill] sm:$0xff] %v6371_v38 }
  0x3d   :  { %351 = vsyncadd [#allocation4], 16384  ;;  %v6376_v39 = vld [vmem:[%s8093_s13] sm:$0xff]  ;;  %v6381_v55 = vld [vmem:[%s8093_s13 + $0x8] sm:$0xff] }
  0x3e   :  { %8201 = vst [vmem:[#allocation106_spill] sm:$0xff] %v6376_v39  ;;  %8202 = vst [vmem:[#allocation107_spill] sm:$0xff] %v6381_v55  ;;  %v6386_v47 = vld [vmem:[%s8093_s13 + $0x10] sm:$0xff]  ;;  %v6391_v38 = vld [vmem:[%s8093_s13 + $0x18] sm:$0xff] }
  0x3f   :  { %8203 = vst [vmem:[#allocation108_spill] sm:$0xff] %v6386_v47  ;;  %8204 = vst [vmem:[#allocation109_spill] sm:$0xff] %v6391_v38  ;;  %v6396_v63 = vld [vmem:[%s8093_s13 + $0x20] sm:$0xff]  ;;  %v6401_v39 = vld [vmem:[%s8093_s13 + $0x28] sm:$0xff] }
  0x40   :  { %8205 = vst [vmem:[#allocation110_spill] sm:$0xff] %v6396_v63  ;;  %8206 = vst [vmem:[#allocation111_spill] sm:$0xff] %v6401_v39  ;;  %v6406_v55 = vld [vmem:[%s8093_s13 + $0x30] sm:$0xff]  ;;  %v6411_v47 = vld [vmem:[%s8093_s13 + $0x38] sm:$0xff] }
  0x41   :  { %8207 = vst [vmem:[#allocation112_spill] sm:$0xff] %v6406_v55  ;;  %8208 = vst [vmem:[#allocation113_spill] sm:$0xff] %v6411_v47  ;;  %v6416_v38 = vld [vmem:[%s8093_s13 + $0x40] sm:$0xff]  ;;  %v6421_v63 = vld [vmem:[%s8093_s13 + $0x48] sm:$0xff] }
  0x42   :  { %8209 = vst [vmem:[#allocation114_spill] sm:$0xff] %v6416_v38  ;;  %8210 = vst [vmem:[#allocation115_spill] sm:$0xff] %v6421_v63  ;;  %v6426_v39 = vld [vmem:[%s8093_s13 + $0x50] sm:$0xff]  ;;  %v6431_v55 = vld [vmem:[%s8093_s13 + $0x58] sm:$0xff] }
  0x43   :  { %8211 = vst [vmem:[#allocation116_spill] sm:$0xff] %v6426_v39  ;;  %8212 = vst [vmem:[#allocation117_spill] sm:$0xff] %v6431_v55  ;;  %v6436_v47 = vld [vmem:[%s8093_s13 + $0x60] sm:$0xff]  ;;  %v6441_v38 = vld [vmem:[%s8093_s13 + $0x68] sm:$0xff] }
  0x44   :  { %8213 = vst [vmem:[#allocation118_spill] sm:$0xff] %v6436_v47  ;;  %8214 = vst [vmem:[#allocation119_spill] sm:$0xff] %v6441_v38  ;;  %v6446_v63 = vld [vmem:[%s8093_s13 + $0x70] sm:$0xff]  ;;  %v6451_v39 = vld [vmem:[%s8093_s13 + $0x78] sm:$0xff] }
  0x45   :  { %8215 = vst [vmem:[#allocation120_spill] sm:$0xff] %v6446_v63  ;;  %8216 = vst [vmem:[#allocation121_spill] sm:$0xff] %v6451_v39  ;;  %v6456_v55 = vld [vmem:[%s8093_s13 + $0x80] sm:$0xff]  ;;  %v6461_v47 = vld [vmem:[%s8093_s13 + $0x88] sm:$0xff] }
  0x46   :  { %8217 = vst [vmem:[#allocation122_spill] sm:$0xff] %v6456_v55  ;;  %8218 = vst [vmem:[#allocation123_spill] sm:$0xff] %v6461_v47  ;;  %v6466_v38 = vld [vmem:[%s8093_s13 + $0x90] sm:$0xff]  ;;  %v6471_v63 = vld [vmem:[%s8093_s13 + $0x98] sm:$0xff] }
  0x47   :  { %8219 = vst [vmem:[#allocation124_spill] sm:$0xff] %v6466_v38  ;;  %8220 = vst [vmem:[#allocation125_spill] sm:$0xff] %v6471_v63  ;;  %v6476_v39 = vld [vmem:[%s8093_s13 + $0xa0] sm:$0xff]  ;;  %v6481_v55 = vld [vmem:[%s8093_s13 + $0xa8] sm:$0xff] }
  0x48   :  { %8221 = vst [vmem:[#allocation126_spill] sm:$0xff] %v6476_v39  ;;  %8222 = vst [vmem:[#allocation127_spill] sm:$0xff] %v6481_v55  ;;  %v6486_v47 = vld [vmem:[%s8093_s13 + $0xb0] sm:$0xff]  ;;  %v6491_v38 = vld [vmem:[%s8093_s13 + $0xb8] sm:$0xff] }
  0x49   :  { %8223 = vst [vmem:[#allocation128_spill] sm:$0xff] %v6486_v47  ;;  %8224 = vst [vmem:[#allocation129_spill] sm:$0xff] %v6491_v38  ;;  %v6496_v63 = vld [vmem:[%s8093_s13 + $0xc0] sm:$0xff]  ;;  %v6501_v39 = vld [vmem:[%s8093_s13 + $0xc8] sm:$0xff] }
  0x4a   :  { %8225 = vst [vmem:[#allocation130_spill] sm:$0xff] %v6496_v63  ;;  %8226 = vst [vmem:[#allocation131_spill] sm:$0xff] %v6501_v39  ;;  %v6506_v55 = vld [vmem:[%s8093_s13 + $0xd0] sm:$0xff]  ;;  %v6511_v47 = vld [vmem:[%s8093_s13 + $0xd8] sm:$0xff] }
  0x4b   :  { %8227 = vst [vmem:[#allocation132_spill] sm:$0xff] %v6506_v55  ;;  %8228 = vst [vmem:[#allocation133_spill] sm:$0xff] %v6511_v47  ;;  %v6516_v38 = vld [vmem:[%s8093_s13 + $0xe0] sm:$0xff]  ;;  %v6521_v63 = vld [vmem:[%s8093_s13 + $0xe8] sm:$0xff] }
  0x4c   :  { %8229 = vst [vmem:[#allocation134_spill] sm:$0xff] %v6516_v38  ;;  %8230 = vst [vmem:[#allocation135_spill] sm:$0xff] %v6521_v63  ;;  %v6526_v39 = vld [vmem:[%s8093_s13 + $0xf0] sm:$0xff]  ;;  %v6531_v55 = vld [vmem:[%s8093_s13 + $0xf8] sm:$0xff] }
  0x4d   :  { %8231 = vst [vmem:[#allocation136_spill] sm:$0xff] %v6526_v39  ;;  %8232 = vst [vmem:[#allocation137_spill] sm:$0xff] %v6531_v55  ;;  %v6536_v47 = vld [vmem:[%s8093_s13 + $0x100] sm:$0xff]  ;;  %v6541_v38 = vld [vmem:[%s8093_s13 + $0x108] sm:$0xff] }
  0x4e   :  { %8233 = vst [vmem:[#allocation138_spill] sm:$0xff] %v6536_v47  ;;  %8234 = vst [vmem:[#allocation139_spill] sm:$0xff] %v6541_v38  ;;  %v6546_v63 = vld [vmem:[%s8093_s13 + $0x110] sm:$0xff]  ;;  %v6551_v39 = vld [vmem:[%s8093_s13 + $0x118] sm:$0xff] }
  0x4f   :  { %8235 = vst [vmem:[#allocation140_spill] sm:$0xff] %v6546_v63  ;;  %8236 = vst [vmem:[#allocation141_spill] sm:$0xff] %v6551_v39  ;;  %v6556_v55 = vld [vmem:[%s8093_s13 + $0x120] sm:$0xff]  ;;  %v6561_v47 = vld [vmem:[%s8093_s13 + $0x128] sm:$0xff] }
  0x50   :  { %8237 = vst [vmem:[#allocation142_spill] sm:$0xff] %v6556_v55  ;;  %8238 = vst [vmem:[#allocation143_spill] sm:$0xff] %v6561_v47  ;;  %v6566_v38 = vld [vmem:[%s8093_s13 + $0x130] sm:$0xff]  ;;  %v6571_v63 = vld [vmem:[%s8093_s13 + $0x138] sm:$0xff] }
  0x51   :  { %8239 = vst [vmem:[#allocation144_spill] sm:$0xff] %v6566_v38  ;;  %8240 = vst [vmem:[#allocation145_spill] sm:$0xff] %v6571_v63  ;;  %v6576_v39 = vld [vmem:[%s8093_s13 + $0x140] sm:$0xff]  ;;  %v6581_v55 = vld [vmem:[%s8093_s13 + $0x148] sm:$0xff] }
  0x52   :  { %8241 = vst [vmem:[#allocation146_spill] sm:$0xff] %v6576_v39  ;;  %8242 = vst [vmem:[#allocation147_spill] sm:$0xff] %v6581_v55  ;;  %v6586_v47 = vld [vmem:[%s8093_s13 + $0x150] sm:$0xff]  ;;  %v6591_v38 = vld [vmem:[%s8093_s13 + $0x158] sm:$0xff] }
  0x53   :  { %8243 = vst [vmem:[#allocation148_spill] sm:$0xff] %v6586_v47  ;;  %8244 = vst [vmem:[#allocation149_spill] sm:$0xff] %v6591_v38  ;;  %v6596_v63 = vld [vmem:[%s8093_s13 + $0x160] sm:$0xff]  ;;  %v6601_v39 = vld [vmem:[%s8093_s13 + $0x168] sm:$0xff] }
  0x54   :  { %8245 = vst [vmem:[#allocation150_spill] sm:$0xff] %v6596_v63  ;;  %8246 = vst [vmem:[#allocation151_spill] sm:$0xff] %v6601_v39  ;;  %v6606_v55 = vld [vmem:[%s8093_s13 + $0x170] sm:$0xff]  ;;  %v6611_v47 = vld [vmem:[%s8093_s13 + $0x178] sm:$0xff] }
  0x55   :  { %8247 = vst [vmem:[#allocation152_spill] sm:$0xff] %v6606_v55  ;;  %8248 = vst [vmem:[#allocation153_spill] sm:$0xff] %v6611_v47  ;;  %v6616_v38 = vld [vmem:[%s8093_s13 + $0x180] sm:$0xff]  ;;  %v6621_v63 = vld [vmem:[%s8093_s13 + $0x188] sm:$0xff] }
  0x56   :  { %8249 = vst [vmem:[#allocation154_spill] sm:$0xff] %v6616_v38  ;;  %8250 = vst [vmem:[#allocation155_spill] sm:$0xff] %v6621_v63  ;;  %v6626_v39 = vld [vmem:[%s8093_s13 + $0x190] sm:$0xff]  ;;  %v6631_v55 = vld [vmem:[%s8093_s13 + $0x198] sm:$0xff] }
  0x57   :  { %8251 = vst [vmem:[#allocation156_spill] sm:$0xff] %v6626_v39  ;;  %8252 = vst [vmem:[#allocation157_spill] sm:$0xff] %v6631_v55  ;;  %v6636_v47 = vld [vmem:[%s8093_s13 + $0x1a0] sm:$0xff]  ;;  %v6641_v38 = vld [vmem:[%s8093_s13 + $0x1a8] sm:$0xff] }
  0x58   :  { %8253 = vst [vmem:[#allocation158_spill] sm:$0xff] %v6636_v47  ;;  %8254 = vst [vmem:[#allocation159_spill] sm:$0xff] %v6641_v38  ;;  %v6646_v63 = vld [vmem:[%s8093_s13 + $0x1b0] sm:$0xff]  ;;  %v6651_v39 = vld [vmem:[%s8093_s13 + $0x1b8] sm:$0xff] }
  0x59   :  { %8255 = vst [vmem:[#allocation160_spill] sm:$0xff] %v6646_v63  ;;  %8256 = vst [vmem:[#allocation161_spill] sm:$0xff] %v6651_v39  ;;  %v6656_v55 = vld [vmem:[%s8093_s13 + $0x1c0] sm:$0xff]  ;;  %v6661_v47 = vld [vmem:[%s8093_s13 + $0x1c8] sm:$0xff] }
  0x5a   :  { %8257 = vst [vmem:[#allocation162_spill] sm:$0xff] %v6656_v55  ;;  %8258 = vst [vmem:[#allocation163_spill] sm:$0xff] %v6661_v47  ;;  %v6666_v38 = vld [vmem:[%s8093_s13 + $0x1d0] sm:$0xff]  ;;  %v6671_v63 = vld [vmem:[%s8093_s13 + $0x1d8] sm:$0xff] }
  0x5b   :  { %8259 = vst [vmem:[#allocation164_spill] sm:$0xff] %v6666_v38  ;;  %8260 = vst [vmem:[#allocation165_spill] sm:$0xff] %v6671_v63  ;;  %v6676_v39 = vld [vmem:[%s8093_s13 + $0x1e0] sm:$0xff]  ;;  %v6681_v55 = vld [vmem:[%s8093_s13 + $0x1e8] sm:$0xff] }
  0x5c   :  { %8261 = vst [vmem:[#allocation166_spill] sm:$0xff] %v6676_v39  ;;  %8262 = vst [vmem:[#allocation167_spill] sm:$0xff] %v6681_v55  ;;  %v6686_v47 = vld [vmem:[%s8093_s13 + $0x1f0] sm:$0xff]  ;;  %v6691_v38 = vld [vmem:[%s8093_s13 + $0x1f8] sm:$0xff] }
  0x5d   :  { %8263 = vst [vmem:[#allocation168_spill] sm:$0xff] %v6686_v47  ;;  %8264 = vst [vmem:[#allocation169_spill] sm:$0xff] %v6691_v38  ;;  %v6696_v63 = vld [vmem:[%s8093_s13 + $0x200] sm:$0xff]  ;;  %v6701_v39 = vld [vmem:[%s8093_s13 + $0x208] sm:$0xff] }
  0x5e   :  { %8265 = vst [vmem:[#allocation170_spill] sm:$0xff] %v6696_v63  ;;  %8266 = vst [vmem:[#allocation171_spill] sm:$0xff] %v6701_v39  ;;  %v6706_v55 = vld [vmem:[%s8093_s13 + $0x210] sm:$0xff]  ;;  %v6711_v47 = vld [vmem:[%s8093_s13 + $0x218] sm:$0xff] }
  0x5f   :  { %8267 = vst [vmem:[#allocation172_spill] sm:$0xff] %v6706_v55  ;;  %8268 = vst [vmem:[#allocation173_spill] sm:$0xff] %v6711_v47  ;;  %v6716_v38 = vld [vmem:[%s8093_s13 + $0x220] sm:$0xff]  ;;  %v6721_v63 = vld [vmem:[%s8093_s13 + $0x228] sm:$0xff] }
  0x60   :  { %8269 = vst [vmem:[#allocation174_spill] sm:$0xff] %v6716_v38  ;;  %8270 = vst [vmem:[#allocation175_spill] sm:$0xff] %v6721_v63  ;;  %v6726_v39 = vld [vmem:[%s8093_s13 + $0x230] sm:$0xff]  ;;  %v6731_v55 = vld [vmem:[%s8093_s13 + $0x238] sm:$0xff] }
  0x61   :  { %8271 = vst [vmem:[#allocation176_spill] sm:$0xff] %v6726_v39  ;;  %8272 = vst [vmem:[#allocation177_spill] sm:$0xff] %v6731_v55  ;;  %v6736_v47 = vld [vmem:[%s8093_s13 + $0x240] sm:$0xff]  ;;  %v6741_v38 = vld [vmem:[%s8093_s13 + $0x248] sm:$0xff] }
  0x62   :  { %8273 = vst [vmem:[#allocation178_spill] sm:$0xff] %v6736_v47  ;;  %8274 = vst [vmem:[#allocation179_spill] sm:$0xff] %v6741_v38  ;;  %v6746_v63 = vld [vmem:[%s8093_s13 + $0x250] sm:$0xff]  ;;  %v6751_v39 = vld [vmem:[%s8093_s13 + $0x258] sm:$0xff] }
  0x63   :  { %8275 = vst [vmem:[#allocation180_spill] sm:$0xff] %v6746_v63  ;;  %8276 = vst [vmem:[#allocation181_spill] sm:$0xff] %v6751_v39  ;;  %v6756_v55 = vld [vmem:[%s8093_s13 + $0x260] sm:$0xff]  ;;  %v6761_v47 = vld [vmem:[%s8093_s13 + $0x268] sm:$0xff] }
  0x64   :  { %8277 = vst [vmem:[#allocation182_spill] sm:$0xff] %v6756_v55  ;;  %8278 = vst [vmem:[#allocation183_spill] sm:$0xff] %v6761_v47  ;;  %v6766_v38 = vld [vmem:[%s8093_s13 + $0x270] sm:$0xff]  ;;  %v6771_v63 = vld [vmem:[%s8093_s13 + $0x278] sm:$0xff] }
  0x65   :  { %8279 = vst [vmem:[#allocation184_spill] sm:$0xff] %v6766_v38  ;;  %8280 = vst [vmem:[#allocation185_spill] sm:$0xff] %v6771_v63  ;;  %v6776_v39 = vld [vmem:[%s8093_s13 + $0x280] sm:$0xff]  ;;  %v6781_v55 = vld [vmem:[%s8093_s13 + $0x288] sm:$0xff] }
  0x66   :  { %8281 = vst [vmem:[#allocation186_spill] sm:$0xff] %v6776_v39  ;;  %8282 = vst [vmem:[#allocation187_spill] sm:$0xff] %v6781_v55  ;;  %v6786_v47 = vld [vmem:[%s8093_s13 + $0x290] sm:$0xff]  ;;  %v6791_v38 = vld [vmem:[%s8093_s13 + $0x298] sm:$0xff] }
  0x67   :  { %8283 = vst [vmem:[#allocation188_spill] sm:$0xff] %v6786_v47  ;;  %8284 = vst [vmem:[#allocation189_spill] sm:$0xff] %v6791_v38  ;;  %v6796_v63 = vld [vmem:[%s8093_s13 + $0x2a0] sm:$0xff]  ;;  %v6801_v39 = vld [vmem:[%s8093_s13 + $0x2a8] sm:$0xff] }
  0x68   :  { %8285 = vst [vmem:[#allocation190_spill] sm:$0xff] %v6796_v63  ;;  %8286 = vst [vmem:[#allocation191_spill] sm:$0xff] %v6801_v39  ;;  %v6806_v55 = vld [vmem:[%s8093_s13 + $0x2b0] sm:$0xff]  ;;  %v6811_v47 = vld [vmem:[%s8093_s13 + $0x2b8] sm:$0xff] }
  0x69   :  { %8287 = vst [vmem:[#allocation192_spill] sm:$0xff] %v6806_v55  ;;  %8288 = vst [vmem:[#allocation193_spill] sm:$0xff] %v6811_v47  ;;  %v6816_v38 = vld [vmem:[%s8093_s13 + $0x2c0] sm:$0xff]  ;;  %v6821_v63 = vld [vmem:[%s8093_s13 + $0x2c8] sm:$0xff] }
  0x6a   :  { %8289 = vst [vmem:[#allocation194_spill] sm:$0xff] %v6816_v38  ;;  %8290 = vst [vmem:[#allocation195_spill] sm:$0xff] %v6821_v63  ;;  %v6826_v39 = vld [vmem:[%s8093_s13 + $0x2d0] sm:$0xff]  ;;  %v6831_v55 = vld [vmem:[%s8093_s13 + $0x2d8] sm:$0xff] }
  0x6b   :  { %8291 = vst [vmem:[#allocation196_spill] sm:$0xff] %v6826_v39  ;;  %8292 = vst [vmem:[#allocation197_spill] sm:$0xff] %v6831_v55  ;;  %v6836_v47 = vld [vmem:[%s8093_s13 + $0x2e0] sm:$0xff]  ;;  %v6841_v38 = vld [vmem:[%s8093_s13 + $0x2e8] sm:$0xff] }
  0x6c   :  { %8293 = vst [vmem:[#allocation198_spill] sm:$0xff] %v6836_v47  ;;  %8294 = vst [vmem:[#allocation199_spill] sm:$0xff] %v6841_v38  ;;  %v6846_v63 = vld [vmem:[%s8093_s13 + $0x2f0] sm:$0xff]  ;;  %v6851_v39 = vld [vmem:[%s8093_s13 + $0x2f8] sm:$0xff] }
  0x6d   :  { %8295 = vst [vmem:[#allocation200_spill] sm:$0xff] %v6846_v63  ;;  %8296 = vst [vmem:[#allocation201_spill] sm:$0xff] %v6851_v39  ;;  %v6856_v55 = vld [vmem:[%s8093_s13 + $0x300] sm:$0xff]  ;;  %v6861_v47 = vld [vmem:[%s8093_s13 + $0x308] sm:$0xff] }
  0x6e   :  { %8297 = vst [vmem:[#allocation202_spill] sm:$0xff] %v6856_v55  ;;  %8298 = vst [vmem:[#allocation203_spill] sm:$0xff] %v6861_v47  ;;  %v6866_v38 = vld [vmem:[%s8093_s13 + $0x310] sm:$0xff]  ;;  %v6871_v63 = vld [vmem:[%s8093_s13 + $0x318] sm:$0xff] }
  0x6f   :  { %8299 = vst [vmem:[#allocation204_spill] sm:$0xff] %v6866_v38  ;;  %8300 = vst [vmem:[#allocation205_spill] sm:$0xff] %v6871_v63  ;;  %v6876_v39 = vld [vmem:[%s8093_s13 + $0x320] sm:$0xff]  ;;  %v6881_v55 = vld [vmem:[%s8093_s13 + $0x328] sm:$0xff] }
  0x70   :  { %8301 = vst [vmem:[#allocation206_spill] sm:$0xff] %v6876_v39  ;;  %8302 = vst [vmem:[#allocation207_spill] sm:$0xff] %v6881_v55  ;;  %v6886_v47 = vld [vmem:[%s8093_s13 + $0x330] sm:$0xff]  ;;  %v6891_v38 = vld [vmem:[%s8093_s13 + $0x338] sm:$0xff] }
  0x71   :  { %8303 = vst [vmem:[#allocation208_spill] sm:$0xff] %v6886_v47  ;;  %8304 = vst [vmem:[#allocation209_spill] sm:$0xff] %v6891_v38  ;;  %v6896_v63 = vld [vmem:[%s8093_s13 + $0x340] sm:$0xff]  ;;  %v6901_v39 = vld [vmem:[%s8093_s13 + $0x348] sm:$0xff] }
  0x72   :  { %8305 = vst [vmem:[#allocation210_spill] sm:$0xff] %v6896_v63  ;;  %8306 = vst [vmem:[#allocation211_spill] sm:$0xff] %v6901_v39  ;;  %v6906_v55 = vld [vmem:[%s8093_s13 + $0x350] sm:$0xff]  ;;  %v6911_v47 = vld [vmem:[%s8093_s13 + $0x358] sm:$0xff] }
  0x73   :  { %8307 = vst [vmem:[#allocation212_spill] sm:$0xff] %v6906_v55  ;;  %8308 = vst [vmem:[#allocation213_spill] sm:$0xff] %v6911_v47  ;;  %v6916_v38 = vld [vmem:[%s8093_s13 + $0x360] sm:$0xff]  ;;  %v6921_v63 = vld [vmem:[%s8093_s13 + $0x368] sm:$0xff] }
  0x74   :  { %8309 = vst [vmem:[#allocation214_spill] sm:$0xff] %v6916_v38  ;;  %8310 = vst [vmem:[#allocation215_spill] sm:$0xff] %v6921_v63  ;;  %v6926_v39 = vld [vmem:[%s8093_s13 + $0x370] sm:$0xff]  ;;  %v6931_v55 = vld [vmem:[%s8093_s13 + $0x378] sm:$0xff] }
  0x75   :  { %8311 = vst [vmem:[#allocation216_spill] sm:$0xff] %v6926_v39  ;;  %8312 = vst [vmem:[#allocation217_spill] sm:$0xff] %v6931_v55  ;;  %v6936_v47 = vld [vmem:[%s8093_s13 + $0x380] sm:$0xff]  ;;  %v6941_v38 = vld [vmem:[%s8093_s13 + $0x388] sm:$0xff] }
  0x76   :  { %8313 = vst [vmem:[#allocation218_spill] sm:$0xff] %v6936_v47  ;;  %8314 = vst [vmem:[#allocation219_spill] sm:$0xff] %v6941_v38  ;;  %v6946_v63 = vld [vmem:[%s8093_s13 + $0x390] sm:$0xff]  ;;  %v6951_v39 = vld [vmem:[%s8093_s13 + $0x398] sm:$0xff] }
  0x77   :  { %8315 = vst [vmem:[#allocation220_spill] sm:$0xff] %v6946_v63  ;;  %8316 = vst [vmem:[#allocation221_spill] sm:$0xff] %v6951_v39  ;;  %v6956_v55 = vld [vmem:[%s8093_s13 + $0x3a0] sm:$0xff]  ;;  %v6961_v47 = vld [vmem:[%s8093_s13 + $0x3a8] sm:$0xff] }
  0x78   :  { %8317 = vst [vmem:[#allocation222_spill] sm:$0xff] %v6956_v55  ;;  %8318 = vst [vmem:[#allocation223_spill] sm:$0xff] %v6961_v47  ;;  %v6966_v38 = vld [vmem:[%s8093_s13 + $0x3b0] sm:$0xff]  ;;  %v6971_v63 = vld [vmem:[%s8093_s13 + $0x3b8] sm:$0xff] }
  0x79   :  { %8319 = vst [vmem:[#allocation224_spill] sm:$0xff] %v6966_v38  ;;  %8320 = vst [vmem:[#allocation225_spill] sm:$0xff] %v6971_v63  ;;  %v6976_v39 = vld [vmem:[%s8093_s13 + $0x3c0] sm:$0xff]  ;;  %v6981_v55 = vld [vmem:[%s8093_s13 + $0x3c8] sm:$0xff] }
  0x7a   :  { %8321 = vst [vmem:[#allocation226_spill] sm:$0xff] %v6976_v39  ;;  %8322 = vst [vmem:[#allocation227_spill] sm:$0xff] %v6981_v55  ;;  %v6986_v47 = vld [vmem:[%s8093_s13 + $0x3d0] sm:$0xff]  ;;  %v6991_v38 = vld [vmem:[%s8093_s13 + $0x3d8] sm:$0xff] }
  0x7b   :  { %8323 = vst [vmem:[#allocation228_spill] sm:$0xff] %v6986_v47  ;;  %8324 = vst [vmem:[#allocation229_spill] sm:$0xff] %v6991_v38  ;;  %v6996_v63 = vld [vmem:[%s8093_s13 + $0x3e0] sm:$0xff]  ;;  %v7001_v39 = vld [vmem:[%s8093_s13 + $0x3e8] sm:$0xff] }
  0x7c   :  { %8325 = vst [vmem:[#allocation230_spill] sm:$0xff] %v6996_v63  ;;  %8326 = vst [vmem:[#allocation231_spill] sm:$0xff] %v7001_v39  ;;  %v7006_v55 = vld [vmem:[%s8093_s13 + $0x3f0] sm:$0xff]  ;;  %v7011_v47 = vld [vmem:[%s8093_s13 + $0x3f8] sm:$0xff] }
  0x7d   :  { %8327 = vst [vmem:[#allocation232_spill] sm:$0xff] %v7006_v55  ;;  %8328 = vst [vmem:[#allocation233_spill] sm:$0xff] %v7011_v47 }
  0x7e   :  { %648 = vsyncadd [#allocation4 + $0x1], 16384  ;;  %s8329_s30 = sld [smem:[#allocation235_spill]]  ;;  %s8330_s2 = sld [smem:[#allocation234_spill]]  ;;  %v5571_v57 = vld [vmem:[%s8085_s5 + $0x280] sm:$0xff]  }
  0x7f   :  { %s8331_s20 = sld [smem:[#allocation236_spill]] }
  0x84   :  { %v5438_v63 = vld [vmem:[%s8329_s30] sm:$0xff]   ;;  %v5439_v38 = vld [vmem:[%s8329_s30 + $0x8] sm:$0xff]   ;;  %v5440_v55 = vld [vmem:[%s8329_s30 + $0x10] sm:$0xff]  }
  0x85   :  { %5277 = vmatprep.subr.bf16.mxu0 %v5438_v63  ;;  %v5441_v47 = vld [vmem:[%s8329_s30 + $0x18] sm:$0xff]   ;;  %v5446_v39 = vld [vmem:[%s8330_s2] sm:$0xff]   ;;  %v5444_v54 = vld [vmem:[%s8329_s30 + $0x30] sm:$0xff]  }
  0x86   :  { %5278 = vmatpush3.bf16.msra.mxu0 %v5438_v63  ;;  %5293 = vmatprep.mubr.bf16.mxu0 %v5446_v39  ;;  %v5442_v63 = vld [vmem:[%s8329_s30 + $0x20] sm:$0xff]   ;;  %v5445_v39 = vld [vmem:[%s8329_s30 + $0x38] sm:$0xff]  }
  0x87   :  { %5279 = vmatprep.subr.bf16.mxu0 %v5439_v38 }
  0x8a   :  { %5280 = vmatpush3.bf16.msra.mxu0 %v5439_v38  ;;  %v5443_v38 = vld [vmem:[%s8329_s30 + $0x28] sm:$0xff]  }
  0x8b   :  { %5281 = vmatprep.subr.bf16.mxu0 %v5440_v55 }
  0x8e   :  { %5282 = vmatpush3.bf16.msra.mxu0 %v5440_v55  ;;  %v5448_v55 = vld [vmem:[%s8330_s2 + $0x10] sm:$0xff]  }
  0x8f   :  { %5283 = vmatprep.subr.bf16.mxu0 %v5441_v47 }
  0x92   :  { %5284 = vmatpush3.bf16.msra.mxu0 %v5441_v47  ;;  %v5447_v47 = vld [vmem:[%s8330_s2 + $0x8] sm:$0xff]  }
  0x93   :  { %5285 = vmatprep.subr.bf16.mxu0 %v5442_v63 }
  0x96   :  { %5286 = vmatpush3.bf16.msra.mxu0 %v5442_v63  ;;  %v5449_v63 = vld [vmem:[%s8330_s2 + $0x18] sm:$0xff]  }
  0x97   :  { %5287 = vmatprep.subr.bf16.mxu0 %v5443_v38 }
  0x9a   :  { %5288 = vmatpush3.bf16.msra.mxu0 %v5443_v38  ;;  %v5451_v38 = vld [vmem:[%s8330_s2 + $0x28] sm:$0xff]  }
  0x9b   :  { %5289 = vmatprep.subr.bf16.mxu0 %v5444_v54 }
  0x9e   :  { %5290 = vmatpush3.bf16.msra.mxu0 %v5444_v54  ;;  %v5450_v54 = vld [vmem:[%s8330_s2 + $0x20] sm:$0xff]  }
  0x9f   :  { %5291 = vmatprep.subr.bf16.mxu0 %v5445_v39 }
  0xa2   :  { %5292 = vmatpush3.bf16.msra.mxu0 %v5445_v39  ;;  %v5452_v39 = vld [vmem:[%s8330_s2 + $0x30] sm:$0xff]  }
  0xa5   :  { %5294 = vmatmul.mubr.bf16.vlgmr.msra.gmra.mrb[0].mxu0 %v5447_v47  ;;  %v5453_v47 = vld [vmem:[%s8330_s2 + $0x38] sm:$0xff]  }
  0xa6   :  { %5297 = vmatprep.mubr.bf16.mxu0 %v5448_v55  ;;  %v5454_v55 = vld [vmem:[%s8084_s4] sm:$0xff]  }
  0xa7   :  { %5325 = vmatprep.mubr.bf16.mxu1 %v5454_v55 }
  0xad   :  { %5298 = vmatmul.mubr.bf16.gmra.mrb[4].mxu0 %v5449_v63  ;;  %v7067_v63 = vld [vmem:[%s8331_s20] ss:$0 sm:$0xff] }
  0xae   :  { %5301 = vmatprep.mubr.bf16.mxu0 %v5450_v54 }
  0xb5   :  { %5302 = vmatmul.mubr.bf16.gmra.mrb[8].mxu0 %v5451_v38  ;;  %v7072_v38 = vld [vmem:[%s8083_s3] ss:$0 sm:$0xff] }
  0xb6   :  { %5305 = vmatprep.mubr.bf16.mxu0 %v5452_v39 }
  0xbd   :  { %5306 = vmatmul.mubr.bf16.gmra.mrb[12].mxu0 %v5453_v47 }
 0x178   :  { %v5295_v54 = vpop.f32.mrb[0].mxu0 }
 0x179   :  { %v883_v39 = vmul.f32 %v5295_v54, %v7067_v63  ;;  %v811_v46 = vpop.f32.mrb[1].mxu0 }
 0x17a   :  { %v881_v47 = vmul.f32 %v7067_v63, %v811_v46  ;;  %v5296_v62 = vpop.f32.mrb[2].mxu0 }
 0x17b   :  { %v906_v37 = vadd.f32 %v7072_v38, %v883_v39  ;;  %v884_v55 = vmul.f32 %v5296_v62, %v7067_v63  ;;  %v814_v53 = vpop.f32.mrb[3].mxu0 }
 0x17c   :  { %v904_v45 = vadd.f32 %v7072_v38, %v881_v47  ;;  %v882_v61 = vmul.f32 %v7067_v63, %v814_v53 }
 0x17d   :  { %v938_v36 = vmul.f32 0.2, %v906_v37  ;;  %v907_v52 = vadd.f32 %v7072_v38, %v884_v55  ;;  %vm922_vm0 = vcmp.gt.f32.partialorder %v906_v37, 0.0 }
 0x17e   :  { %v905_v44 = vadd.f32 %v7072_v38, %v882_v61  ;;  %v936_v54 = vmul.f32 0.2, %v904_v45  ;;  %vm920_vm2 = vcmp.gt.f32.partialorder %v904_v45, 0.0 }
 0x17f   :  { %vm923_vm1 = vcmp.gt.f32.partialorder %v907_v52, 0.0  ;;  %v939_v60 = vmul.f32 0.2, %v907_v52  ;;  %v954_v51 = vsel %vm922_vm0, %v906_v37, %v938_v36 }
 0x180   :  { %v5299_v46 = vpop.f32.mrb[4].mxu0  ;;  %vm921_vm3 = vcmp.gt.f32.partialorder %v905_v44, 0.0  ;;  %v937_v39 = vmul.f32 0.2, %v905_v44  ;;  %v952_v59 = vsel %vm920_vm2, %v904_v45, %v936_v54 }
 0x181   :  { %v887_v62 = vmul.f32 %v5299_v46, %v7067_v63  ;;  %v827_v35 = vpop.f32.mrb[5].mxu0  ;;  %v955_v47 = vsel %vm923_vm1, %v907_v52, %v939_v60 }
 0x182   :  { %v885_v53 = vmul.f32 %v7067_v63, %v827_v35  ;;  %v5300_v43 = vpop.f32.mrb[6].mxu0  ;;  %v953_v55 = vsel %vm921_vm3, %v905_v44, %v937_v39  ;;  %v969_v34 = vpack.c.bf16 %v955_v47, %v954_v51 }
 0x183   :  { %v910_v61 = vadd.f32 %v7072_v38, %v887_v62  ;;  %v888_v50 = vmul.f32 %v5300_v43, %v7067_v63  ;;  %v830_v42 = vpop.f32.mrb[7].mxu0  ;;  %v968_v58 = vpack.c.bf16 %v953_v55, %v952_v59 }
 0x184   :  { %v908_v33 = vadd.f32 %v7072_v38, %v885_v53  ;;  %v886_v49 = vmul.f32 %v7067_v63, %v830_v42 }
 0x185   :  { %v942_v46 = vmul.f32 0.2, %v910_v61  ;;  %v911_v36 = vadd.f32 %v7072_v38, %v888_v50  ;;  %5309 = vmatprep.subr.bf16.mxu1 %v968_v58  ;;  %vm926_vm4 = vcmp.gt.f32.partialorder %v910_v61, 0.0 }
 0x186   :  { %v940_v35 = vmul.f32 0.2, %v908_v33  ;;  %v909_v37 = vadd.f32 %v7072_v38, %v886_v49  ;;  %5310 = vmatpush3.bf16.msra.mxu1 %v968_v58  ;;  %vm924_vm5 = vcmp.gt.f32.partialorder %v908_v33, 0.0 }
 0x187   :  { %vm927_vm6 = vcmp.gt.f32.partialorder %v911_v36, 0.0  ;;  %v943_v44 = vmul.f32 0.2, %v911_v36  ;;  %5311 = vmatprep.subr.bf16.mxu1 %v969_v34  ;;  %v958_v42 = vsel %vm926_vm4, %v910_v61, %v942_v46 }
 0x188   :  { %vm925_vm7 = vcmp.gt.f32.partialorder %v909_v37, 0.0  ;;  %v941_v43 = vmul.f32 0.2, %v909_v37  ;;  %v5303_v45 = vpop.f32.mrb[8].mxu0  ;;  %v956_v54 = vsel %vm924_vm5, %v908_v33, %v940_v35 }
 0x189   :  { %v891_v51 = vmul.f32 %v5303_v45, %v7067_v63  ;;  %v843_v52 = vpop.f32.mrb[9].mxu0  ;;  %v959_v59 = vsel %vm927_vm6, %v911_v36, %v943_v44 }
 0x18a   :  { %v889_v50 = vmul.f32 %v7067_v63, %v843_v52  ;;  %v5304_v60 = vpop.f32.mrb[10].mxu0  ;;  %5312 = vmatpush3.bf16.msra.mxu1 %v969_v34  ;;  %v957_v39 = vsel %vm925_vm7, %v909_v37, %v941_v43  ;;  %v971_v49 = vpack.c.bf16 %v959_v59, %v958_v42 }
 0x18b   :  { %v914_v58 = vadd.f32 %v7072_v38, %v891_v51  ;;  %v892_v62 = vmul.f32 %v5304_v60, %v7067_v63  ;;  %v846_v47 = vpop.f32.mrb[11].mxu0  ;;  %v970_v53 = vpack.c.bf16 %v957_v39, %v956_v54 }
 0x18c   :  { %v912_v55 = vadd.f32 %v7072_v38, %v889_v50  ;;  %v890_v45 = vmul.f32 %v7067_v63, %v846_v47 }
 0x18d   :  { %v946_v41 = vmul.f32 0.2, %v914_v58  ;;  %v915_v61 = vadd.f32 %v7072_v38, %v892_v62  ;;  %5313 = vmatprep.subr.bf16.mxu1 %v970_v53  ;;  %vm930_vm8 = vcmp.gt.f32.partialorder %v914_v58, 0.0 }
 0x18e   :  { %v944_v46 = vmul.f32 0.2, %v912_v55  ;;  %v913_v33 = vadd.f32 %v7072_v38, %v890_v45  ;;  %5314 = vmatpush3.bf16.msra.mxu1 %v970_v53  ;;  %vm928_vm9 = vcmp.gt.f32.partialorder %v912_v55, 0.0 }
 0x18f   :  { %vm931_vm10 = vcmp.gt.f32.partialorder %v915_v61, 0.0  ;;  %v947_v34 = vmul.f32 0.2, %v915_v61  ;;  %5315 = vmatprep.subr.bf16.mxu1 %v971_v49  ;;  %v962_v43 = vsel %vm930_vm8, %v914_v58, %v946_v41 }
 0x190   :  { %vm929_vm11 = vcmp.gt.f32.partialorder %v913_v33, 0.0  ;;  %v945_v36 = vmul.f32 0.2, %v913_v33  ;;  %v5307_v35 = vpop.f32.mrb[12].mxu0  ;;  %v960_v59 = vsel %vm928_vm9, %v912_v55, %v944_v46 }
 0x191   :  { %v895_v37 = vmul.f32 %v5307_v35, %v7067_v63  ;;  %v859_v44 = vpop.f32.mrb[13].mxu0  ;;  %v963_v51 = vsel %vm931_vm10, %v915_v61, %v947_v34 }
 0x192   :  { %v893_v52 = vmul.f32 %v7067_v63, %v859_v44  ;;  %v5308_v42 = vpop.f32.mrb[14].mxu0  ;;  %5316 = vmatpush3.bf16.msra.mxu1 %v971_v49  ;;  %v961_v50 = vsel %vm929_vm11, %v913_v33, %v945_v36  ;;  %v973_v60 = vpack.c.bf16 %v963_v51, %v962_v43  ;;  %v5486_v44 = vld [vmem:[%s8085_s5 + $0x40] sm:$0xff]   ;;  %v5488_v43 = vld [vmem:[%s8085_s5 + $0x48] sm:$0xff]  }
 0x193   :  { %v918_v54 = vadd.f32 %v7072_v38, %v895_v37  ;;  %v896_v39 = vmul.f32 %v5308_v42, %v7067_v63  ;;  %v862_v62 = vpop.f32.mrb[15].mxu0  ;;  %v972_v47 = vpack.c.bf16 %v961_v50, %v960_v59  ;;  %4679 = vmatprep.subr.bf16.mxu0 %v5486_v44  ;;  %v5489_v51 = vld [vmem:[%s8085_s5 + $0x8] sm:$0xff]   ;;  %v5490_v42 = vld [vmem:[%s8085_s5 + $0x50] sm:$0xff]  }
 0x194   :  { %v916_v53 = vadd.f32 %v7072_v38, %v893_v52  ;;  %v894_v45 = vmul.f32 %v7067_v63, %v862_v62  ;;  %v5455_v52 = vld [vmem:[%s8084_s4 + $0x8] sm:$0xff]   ;;  %v5456_v59 = vld [vmem:[%s8084_s4 + $0x10] sm:$0xff]   ;;  %v5494_v62 = vld [vmem:[%s8085_s5 + $0x60] sm:$0xff]  }
 0x195   :  { %v950_v35 = vmul.f32 0.2, %v918_v54  ;;  %v919_v41 = vadd.f32 %v7072_v38, %v896_v39  ;;  %5317 = vmatprep.subr.bf16.mxu1 %v972_v47  ;;  %vm934_vm12 = vcmp.gt.f32.partialorder %v918_v54, 0.0  ;;  %v5491_v50 = vld [vmem:[%s8085_s5 + $0x10] sm:$0xff]   ;;  %v5457_v39 = vld [vmem:[%s8084_s4 + $0x18] sm:$0xff]  }
 0x196   :  { %v948_v58 = vmul.f32 0.2, %v916_v53  ;;  %v917_v49 = vadd.f32 %v7072_v38, %v894_v45  ;;  %5318 = vmatpush3.bf16.msra.mxu1 %v972_v47  ;;  %vm932_vm13 = vcmp.gt.f32.partialorder %v916_v53, 0.0  ;;  %v5487_v38 = vld [vmem:[%s8085_s5] sm:$0xff]   ;;  %v5459_v45 = vld [vmem:[%s8084_s4 + $0x28] sm:$0xff]   ;;  %v5472_v44 = vld [vmem:[%s8084_s4 + $0x90] sm:$0xff]  }
 0x197   :  { %vm935_vm14 = vcmp.gt.f32.partialorder %v919_v41, 0.0  ;;  %v951_v55 = vmul.f32 0.2, %v919_v41  ;;  %5319 = vmatprep.subr.bf16.mxu1 %v973_v60  ;;  %v966_v46 = vsel %vm934_vm12, %v918_v54, %v950_v35  ;;  %4680 = vmatpush3.bf16.msra.mxu0 %v5487_v38  ;;  %v5493_v54 = vld [vmem:[%s8085_s5 + $0x18] sm:$0xff]   ;;  %v5458_v47 = vld [vmem:[%s8084_s4 + $0x20] sm:$0xff]   ;;  %v5460_v35 = vld [vmem:[%s8084_s4 + $0x30] sm:$0xff]  }
 0x198   :  { %vm933_vm15 = vcmp.gt.f32.partialorder %v917_v49, 0.0  ;;  %v949_v61 = vmul.f32 0.2, %v917_v49  ;;  %v964_v34 = vsel %vm932_vm13, %v916_v53, %v948_v58  ;;  %4681 = vmatprep.subr.bf16.mxu0 %v5488_v43  ;;  %v5495_v53 = vld [vmem:[%s8085_s5 + $0x20] sm:$0xff]   ;;  %v5473_v38 = vld [vmem:[%s8084_s4 + $0x98] sm:$0xff]  }
 0x199   :  { %v967_v33 = vsel %vm935_vm14, %v919_v41, %v951_v55  ;;  %v5461_v41 = vld [vmem:[%s8084_s4 + $0x38] sm:$0xff]   ;;  %v5462_v58 = vld [vmem:[%s8084_s4 + $0x40] sm:$0xff]   ;;  %v5464_v55 = vld [vmem:[%s8084_s4 + $0x50] sm:$0xff]  }
 0x19a   :  { %5320 = vmatpush3.bf16.msra.mxu1 %v973_v60  ;;  %v965_v63 = vsel %vm933_vm15, %v917_v49, %v949_v61  ;;  %v975_v36 = vpack.c.bf16 %v967_v33, %v966_v46  ;;  %v5492_v60 = vld [vmem:[%s8085_s5 + $0x58] sm:$0xff]   ;;  %v5463_v49 = vld [vmem:[%s8084_s4 + $0x48] sm:$0xff]   ;;  %v5466_v46 = vld [vmem:[%s8084_s4 + $0x60] sm:$0xff]  }
 0x19b   :  { %v974_v37 = vpack.c.bf16 %v965_v63, %v964_v34  ;;  %4682 = vmatpush3.bf16.msra.mxu0 %v5489_v51  ;;  %v5465_v61 = vld [vmem:[%s8084_s4 + $0x58] sm:$0xff]   ;;  %v5467_v33 = vld [vmem:[%s8084_s4 + $0x68] sm:$0xff]   ;;  %v5468_v34 = vld [vmem:[%s8084_s4 + $0x70] sm:$0xff]  }
 0x19c   :  { %4683 = vmatprep.subr.bf16.mxu0 %v5490_v42  ;;  %v5469_v63 = vld [vmem:[%s8084_s4 + $0x78] sm:$0xff]   ;;  %v5474_v43 = vld [vmem:[%s8084_s4 + $0xa0] sm:$0xff]   ;;  %v5475_v51 = vld [vmem:[%s8084_s4 + $0xa8] sm:$0xff]  }
 0x19d   :  { %5321 = vmatprep.subr.bf16.mxu1 %v974_v37  ;;  %v5496_v42 = vld [vmem:[%s8085_s5 + $0x68] sm:$0xff]  }
 0x19e   :  { %5322 = vmatpush3.bf16.msra.mxu1 %v974_v37  ;;  %v5471_v37 = vld [vmem:[%s8084_s4 + $0x88] sm:$0xff]  }
 0x19f   :  { %5323 = vmatprep.subr.bf16.mxu1 %v975_v36  ;;  %4684 = vmatpush3.bf16.msra.mxu0 %v5491_v50  ;;  %v5497_v50 = vld [vmem:[%s8085_s5 + $0x28] sm:$0xff]  }
 0x1a0   :  { %4685 = vmatprep.subr.bf16.mxu0 %v5492_v60  ;;  %v5478_v60 = vld [vmem:[%s8084_s4 + $0xc0] sm:$0xff]  }
 0x1a2   :  { %5324 = vmatpush3.bf16.msra.mxu1 %v975_v36  ;;  %v5470_v36 = vld [vmem:[%s8084_s4 + $0x80] sm:$0xff]  }
 0x1a3   :  { %4686 = vmatpush3.bf16.msra.mxu0 %v5493_v54  ;;  %v5498_v54 = vld [vmem:[%s8085_s5 + $0x70] sm:$0xff]  }
 0x1a4   :  { %4687 = vmatprep.subr.bf16.mxu0 %v5494_v62  ;;  %v5500_v62 = vld [vmem:[%s8085_s5 + $0x78] sm:$0xff]  }
 0x1a5   :  { %5326 = vmatmul.mubr.bf16.vlgmr.msra.gmra.mrb[0].mxu1 %v5455_v52  ;;  %v5476_v52 = vld [vmem:[%s8084_s4 + $0xb0] sm:$0xff]  }
 0x1a6   :  { %5329 = vmatprep.mubr.bf16.mxu1 %v5456_v59  ;;  %v5477_v59 = vld [vmem:[%s8084_s4 + $0xb8] sm:$0xff]  }
 0x1a7   :  { %4688 = vmatpush3.bf16.msra.mxu0 %v5495_v53  ;;  %v5501_v53 = vld [vmem:[%s8085_s5 + $0x38] sm:$0xff]  }
 0x1a8   :  { %4689 = vmatprep.subr.bf16.mxu0 %v5496_v42  ;;  %v5553_v42 = vld [vmem:[%s8085_s5 + $0x228] sm:$0xff]  }
 0x1ab   :  { %4690 = vmatpush3.bf16.msra.mxu0 %v5497_v50  ;;  %v5557_v50 = vld [vmem:[%s8085_s5 + $0x230] sm:$0xff]  }
 0x1ac   :  { %4691 = vmatprep.subr.bf16.mxu0 %v5498_v54  ;;  %v5561_v54 = vld [vmem:[%s8085_s5 + $0x238] sm:$0xff]  }
 0x1ad   :  { %5330 = vmatmul.mubr.bf16.gmra.mrb[4].mxu1 %v5457_v39  ;;  %v5499_v39 = vld [vmem:[%s8085_s5 + $0x30] sm:$0xff]  }
 0x1ae   :  { %5333 = vmatprep.mubr.bf16.mxu1 %v5458_v47  ;;  %v5479_v47 = vld [vmem:[%s8084_s4 + $0xc8] sm:$0xff]  }
 0x1af   :  { %4692 = vmatpush3.bf16.msra.mxu0 %v5499_v39  ;;  %v5564_v39 = vld [vmem:[%s8085_s5 + $0x340] sm:$0xff]  }
 0x1b0   :  { %4693 = vmatprep.subr.bf16.mxu0 %v5500_v62 }
 0x1b3   :  { %4694 = vmatpush3.bf16.msra.mxu0 %v5501_v53 }
 0x1b5   :  { %5334 = vmatmul.mubr.bf16.gmra.mrb[8].mxu1 %v5459_v45  ;;  %v5480_v45 = vld [vmem:[%s8084_s4 + $0xd0] sm:$0xff]  }
 0x1b6   :  { %5337 = vmatprep.mubr.bf16.mxu1 %v5460_v35  ;;  %v5502_v35 = vld [vmem:[%s8085_s5 + $0x240] sm:$0xff]  }
 0x1b7   :  { %4791 = vmatprep.subr.bf16.mxu1 %v5502_v35 }
 0x1bd   :  { %5338 = vmatmul.mubr.bf16.gmra.mrb[12].mxu1 %v5461_v41  ;;  %v5503_v41 = vld [vmem:[%s8085_s5 + $0x200] sm:$0xff]  }
 0x1be   :  { %5341 = vmatprep.mubr.bf16.mxu1 %v5462_v58  ;;  %v5504_v58 = vld [vmem:[%s8085_s5 + $0xc0] sm:$0xff]   ;;  %4792 = vmatpush3.bf16.msra.mxu1 %v5503_v41 }
 0x1bf   :  { %4707 = vmatprep.subr.bf16.mxu0 %v5504_v58 }
 0x1c5   :  { %5342 = vmatmul.mubr.bf16.gmra.mrb[16].mxu1 %v5463_v49  ;;  %v5481_v49 = vld [vmem:[%s8084_s4 + $0xd8] sm:$0xff]  }
 0x1c6   :  { %5345 = vmatprep.mubr.bf16.mxu1 %v5464_v55  ;;  %v5482_v55 = vld [vmem:[%s8084_s4 + $0xe0] sm:$0xff]  }
 0x1cd   :  { %5346 = vmatmul.mubr.bf16.gmra.mrb[20].mxu1 %v5465_v61  ;;  %v5483_v61 = vld [vmem:[%s8084_s4 + $0xe8] sm:$0xff]  }
 0x1ce   :  { %5349 = vmatprep.mubr.bf16.mxu1 %v5466_v46  ;;  %v5484_v46 = vld [vmem:[%s8084_s4 + $0xf0] sm:$0xff]  }
 0x1d5   :  { %5350 = vmatmul.mubr.bf16.gmra.mrb[24].mxu1 %v5467_v33  ;;  %v5512_v33 = vld [vmem:[%s8085_s5 + $0x248] sm:$0xff]  }
 0x1d6   :  { %5353 = vmatprep.mubr.bf16.mxu1 %v5468_v34  ;;  %v5513_v34 = vld [vmem:[%s8085_s5 + $0x208] sm:$0xff]   ;;  %4793 = vmatprep.subr.bf16.mxu1 %v5512_v33 }
 0x1d7   :  { %4794 = vmatpush3.bf16.msra.mxu1 %v5513_v34  ;;  %v5505_v34 = vld [vmem:[%s8085_s5 + $0x80] sm:$0xff]  }
 0x1dd   :  { %5354 = vmatmul.mubr.bf16.gmra.mrb[28].mxu1 %v5469_v63  ;;  %v5485_v63 = vld [vmem:[%s8084_s4 + $0xf8] sm:$0xff]  }
 0x1de   :  { %5357 = vmatprep.mubr.bf16.mxu1 %v5470_v36  ;;  %v5522_v36 = vld [vmem:[%s8085_s5 + $0x250] sm:$0xff]  }
 0x1df   :  { %4795 = vmatprep.subr.bf16.mxu1 %v5522_v36  ;;  %v5507_v36 = vld [vmem:[%s8085_s5 + $0x88] sm:$0xff]  }
 0x1e5   :  { %5358 = vmatmul.mubr.bf16.gmra.mrb[32].mxu1 %v5471_v37  ;;  %v5523_v37 = vld [vmem:[%s8085_s5 + $0x210] sm:$0xff]  }
 0x1e6   :  { %5361 = vmatprep.mubr.bf16.mxu1 %v5472_v44  ;;  %4796 = vmatpush3.bf16.msra.mxu1 %v5523_v37  ;;  %v5532_v44 = vld [vmem:[%s8085_s5 + $0x258] sm:$0xff]  }
 0x1e7   :  { %4797 = vmatprep.subr.bf16.mxu1 %v5532_v44  ;;  %v5508_v44 = vld [vmem:[%s8085_s5 + $0xd0] sm:$0xff]  }
 0x1ed   :  { %5362 = vmatmul.mubr.bf16.gmra.mrb[36].mxu1 %v5473_v38  ;;  %v5533_v38 = vld [vmem:[%s8085_s5 + $0x218] sm:$0xff]  }
 0x1ee   :  { %5365 = vmatprep.mubr.bf16.mxu1 %v5474_v43  ;;  %4798 = vmatpush3.bf16.msra.mxu1 %v5533_v38  ;;  %v5542_v43 = vld [vmem:[%s8085_s5 + $0x260] sm:$0xff]  }
 0x1ef   :  { %4799 = vmatprep.subr.bf16.mxu1 %v5542_v43 }
 0x1f5   :  { %5366 = vmatmul.mubr.bf16.gmra.mrb[40].mxu1 %v5475_v51  ;;  %v5543_v51 = vld [vmem:[%s8085_s5 + $0x220] sm:$0xff]  }
 0x1f6   :  { %5369 = vmatprep.mubr.bf16.mxu1 %v5476_v52  ;;  %4800 = vmatpush3.bf16.msra.mxu1 %v5543_v51  ;;  %v5552_v52 = vld [vmem:[%s8085_s5 + $0x268] sm:$0xff]  }
 0x1f7   :  { %4801 = vmatprep.subr.bf16.mxu1 %v5552_v52 }
 0x1fa   :  { %4802 = vmatpush3.bf16.msra.mxu1 %v5553_v42  ;;  %v5509_v42 = vld [vmem:[%s8085_s5 + $0x90] sm:$0xff]  }
 0x1fd   :  { %5370 = vmatmul.mubr.bf16.gmra.mrb[44].mxu1 %v5477_v59  ;;  %v5556_v59 = vld [vmem:[%s8085_s5 + $0x270] sm:$0xff]  }
 0x1fe   :  { %5373 = vmatprep.mubr.bf16.mxu1 %v5478_v60  ;;  %4803 = vmatprep.subr.bf16.mxu1 %v5556_v59  ;;  %v5560_v60 = vld [vmem:[%s8085_s5 + $0x278] sm:$0xff]  }
 0x1ff   :  { %4804 = vmatpush3.bf16.msra.mxu1 %v5557_v50  ;;  %v5510_v50 = vld [vmem:[%s8085_s5 + $0xd8] sm:$0xff]  }
 0x200   :  { %4805 = vmatprep.subr.bf16.mxu1 %v5560_v60  ;;  %v5511_v60 = vld [vmem:[%s8085_s5 + $0x98] sm:$0xff]  }
 0x203   :  { %4806 = vmatpush3.bf16.msra.mxu1 %v5561_v54 }
 0x204   :  { %4847 = vmatprep.subr.bf16.mxu1 %v5564_v39  ;;  %v5514_v39 = vld [vmem:[%s8085_s5 + $0xe0] sm:$0xff]  }
 0x205   :  { %5374 = vmatmul.mubr.bf16.gmra.mrb[48].mxu1 %v5479_v47 }
 0x206   :  { %5377 = vmatprep.mubr.bf16.mxu1 %v5480_v45 }
 0x20d   :  { %5378 = vmatmul.mubr.bf16.gmra.mrb[52].mxu1 %v5481_v49 }
 0x20e   :  { %5381 = vmatprep.mubr.bf16.mxu1 %v5482_v55 }
 0x215   :  { %5382 = vmatmul.mubr.bf16.gmra.mrb[56].mxu1 %v5483_v61 }
 0x216   :  { %5385 = vmatprep.mubr.bf16.mxu1 %v5484_v46 }
 0x21d   :  { %5386 = vmatmul.mubr.bf16.gmra.mrb[60].mxu1 %v5485_v63  ;;  %v5506_v63 = vld [vmem:[%s8085_s5 + $0xc8] sm:$0xff]  }
 0x278   :  { %v5327_v62 = vpop.f32.mrb[0].mxu1 }
 0x279   :  { %v1266_v47 = vpop.f32.mrb[1].mxu1 }
 0x27a   :  { %v5328_v53 = vpop.f32.mrb[2].mxu1 }
 0x27b   :  { %v1522_v45 = vpack.c.bf16 %v5328_v53, %v5327_v62  ;;  %v1269_v35 = vpop.f32.mrb[3].mxu1 }
 0x27c   :  { %v1521_v41 = vpack.c.bf16 %v1269_v35, %v1266_v47 }
 0x280   :  { %v5331_v58 = vpop.f32.mrb[4].mxu1 }
 0x281   :  { %v1282_v49 = vpop.f32.mrb[5].mxu1 }
 0x282   :  { %v5332_v55 = vpop.f32.mrb[6].mxu1 }
 0x283   :  { %v1524_v61 = vpack.c.bf16 %v5332_v55, %v5331_v58  ;;  %v1285_v46 = vpop.f32.mrb[7].mxu1  ;;  %v5516_v58 = vld [vmem:[%s8085_s5 + $0xe8] sm:$0xff]  }
 0x284   :  { %v1523_v33 = vpack.c.bf16 %v1285_v46, %v1282_v49  ;;  %v5517_v49 = vld [vmem:[%s8085_s5 + $0xa8] sm:$0xff]  }
 0x286   :  { %2609 = vmatprep.mubr.bf16.mxu0 %v1523_v33 }
 0x287   :  { %2610 = vmatmul.mubr.bf16.vlgmr.msra.gmra.mrb[16].mxu0 %v1521_v41 }
 0x288   :  { %4708 = vmatpush3.bf16.msra.mxu0 %v5505_v34  ;;  %2617 = vmatprep.mubr.bf16.mxu0 %v1524_v61  ;;  %v7310_v37 = vpop.f32.mrb[8].mxu1  ;;  %v5518_v61 = vld [vmem:[%s8085_s5 + $0xf0] sm:$0xff]   ;;  %v5540_v34 = vld [vmem:[%s8085_s5 + $0x178] sm:$0xff]  }
 0x289   :  { %4709 = vmatprep.subr.bf16.mxu0 %v5506_v63  ;;  %v1298_v38 = vpop.f32.mrb[9].mxu1 }
 0x28a   :  { %v7315_v43 = vpop.f32.mrb[10].mxu1 }
 0x28b   :  { %v1526_v51 = vpack.c.bf16 %v7315_v43, %v7310_v37  ;;  %v1301_v52 = vpop.f32.mrb[11].mxu1 }
 0x28c   :  { %4710 = vmatpush3.bf16.msra.mxu0 %v5507_v36  ;;  %v1525_v59 = vpack.c.bf16 %v1301_v52, %v1298_v38  ;;  %v5519_v36 = vld [vmem:[%s8085_s5 + $0xb0] sm:$0xff]   ;;  %v5520_v38 = vld [vmem:[%s8085_s5 + $0xf8] sm:$0xff]  }
 0x28d   :  { %4711 = vmatprep.subr.bf16.mxu0 %v5508_v44  ;;  %v5521_v52 = vld [vmem:[%s8085_s5 + $0xb8] sm:$0xff]  }
 0x28f   :  { %2618 = vmatmul.mubr.bf16.gmra.mrb[20].mxu0 %v1522_v45  ;;  %v5515_v45 = vld [vmem:[%s8085_s5 + $0xa0] sm:$0xff]  }
 0x290   :  { %4712 = vmatpush3.bf16.msra.mxu0 %v5509_v42  ;;  %v5339_v54 = vpop.f32.mrb[12].mxu1 }
 0x291   :  { %4713 = vmatprep.subr.bf16.mxu0 %v5510_v50  ;;  %v1314_v62 = vpop.f32.mrb[13].mxu1  ;;  %v5524_v50 = vld [vmem:[%s8085_s5 + $0x140] sm:$0xff]  }
 0x292   :  { %v5340_v47 = vpop.f32.mrb[14].mxu1 }
 0x293   :  { %v1528_v53 = vpack.c.bf16 %v5340_v47, %v5339_v54  ;;  %v1317_v35 = vpop.f32.mrb[15].mxu1  ;;  %v5525_v47 = vld [vmem:[%s8085_s5 + $0x100] sm:$0xff]  }
 0x294   :  { %4714 = vmatpush3.bf16.msra.mxu0 %v5511_v60  ;;  %v1527_v41 = vpack.c.bf16 %v1317_v35, %v1314_v62 }
 0x295   :  { %4715 = vmatprep.subr.bf16.mxu0 %v5514_v39 }
 0x296   :  { %2658 = vmatprep.mubr.bf16.mxu0 %v1527_v41  ;;  %v5527_v41 = vld [vmem:[%s8085_s5 + $0x108] sm:$0xff]  }
 0x298   :  { %4716 = vmatpush3.bf16.msra.mxu0 %v5515_v45  ;;  %v7340_v55 = vpop.f32.mrb[16].mxu1  ;;  %v5526_v45 = vld [vmem:[%s8085_s5 + $0x148] sm:$0xff]  }
 0x299   :  { %4717 = vmatprep.subr.bf16.mxu0 %v5516_v58  ;;  %v7345_v46 = vpop.f32.mrb[17].mxu1 }
 0x29a   :  { %v7347_v33 = vpop.f32.mrb[18].mxu1 }
 0x29b   :  { %v7351_v63 = vpop.f32.mrb[19].mxu1 }
 0x29c   :  { %4718 = vmatpush3.bf16.msra.mxu0 %v5517_v49  ;;  %v5528_v49 = vld [vmem:[%s8085_s5 + $0x150] sm:$0xff]  }
 0x29d   :  { %4719 = vmatprep.subr.bf16.mxu0 %v5518_v61 }
 0x2a0   :  { %4720 = vmatpush3.bf16.msra.mxu0 %v5519_v36  ;;  %v7364_v42 = vpop.f32.mrb[20].mxu1 }
 0x2a1   :  { %4721 = vmatprep.subr.bf16.mxu0 %v5520_v38  ;;  %v1346_v60 = vpop.f32.mrb[21].mxu1  ;;  %v5529_v38 = vld [vmem:[%s8085_s5 + $0x110] sm:$0xff]  }
 0x2a2   :  { %v7369_v54 = vpop.f32.mrb[22].mxu1 }
 0x2a3   :  { %v1349_v62 = vpop.f32.mrb[23].mxu1 }
 0x2a4   :  { %4722 = vmatpush3.bf16.msra.mxu0 %v5521_v52  ;;  %v1531_v35 = vpack.c.bf16 %v1349_v62, %v1346_v60  ;;  %v5531_v60 = vld [vmem:[%s8085_s5 + $0x118] sm:$0xff]  }
 0x2a5   :  { %4735 = vmatprep.subr.bf16.mxu0 %v5524_v50  ;;  %v5530_v50 = vld [vmem:[%s8085_s5 + $0x158] sm:$0xff]  }
 0x2a7   :  { %2659 = vmatmul.mubr.bf16.vlgmr.msra.gmra.mrb[24].mxu0 %v1525_v59 }
 0x2a8   :  { %2666 = vmatprep.mubr.bf16.mxu0 %v1528_v53  ;;  %4736 = vmatpush3.bf16.msra.mxu0 %v5525_v47  ;;  %v7382_v58 = vpop.f32.mrb[24].mxu1  ;;  %v5534_v47 = vld [vmem:[%s8085_s5 + $0x160] sm:$0xff]  }
 0x2a9   :  { %4737 = vmatprep.subr.bf16.mxu0 %v5526_v45  ;;  %v7387_v61 = vpop.f32.mrb[25].mxu1 }
 0x2aa   :  { %v7389_v36 = vpop.f32.mrb[26].mxu1 }
 0x2ab   :  { %v7393_v53 = vpop.f32.mrb[27].mxu1 }
 0x2ac   :  { %4738 = vmatpush3.bf16.msra.mxu0 %v5527_v41  ;;  %v8336_v32 = vpack.c.bf16 %v7393_v53, %v7387_v61  ;;  %v5579_v53 = vld [vmem:[%s8085_s5 + $0x290] sm:$0xff]  }
 0x2ad   :  { %4739 = vmatprep.subr.bf16.mxu0 %v5528_v49  ;;  %v5536_v49 = vld [vmem:[%s8085_s5 + $0x168] sm:$0xff]  }
 0x2af   :  { %2667 = vmatmul.mubr.bf16.gmra.mrb[28].mxu0 %v1526_v51  ;;  %v5535_v51 = vld [vmem:[%s8085_s5 + $0x120] sm:$0xff]  }
 0x2b0   :  { %4740 = vmatpush3.bf16.msra.mxu0 %v5529_v38  ;;  %2707 = vmatprep.mubr.bf16.mxu0 %v1531_v35  ;;  %v7409_v62 = vpop.f32.mrb[28].mxu1  ;;  %v5537_v38 = vld [vmem:[%s8085_s5 + $0x128] sm:$0xff]  }
 0x2b1   :  { %4741 = vmatprep.subr.bf16.mxu0 %v5530_v50  ;;  %v7414_v45 = vpop.f32.mrb[29].mxu1 }
 0x2b2   :  { %v7416_v41 = vpop.f32.mrb[30].mxu1 }
 0x2b3   :  { %v7420_v43 = vpop.f32.mrb[31].mxu1 }
 0x2b4   :  { %4742 = vmatpush3.bf16.msra.mxu0 %v5531_v60  ;;  %v5538_v60 = vld [vmem:[%s8085_s5 + $0x170] sm:$0xff]  }
 0x2b5   :  { %4743 = vmatprep.subr.bf16.mxu0 %v5534_v47  ;;  %v5539_v47 = vld [vmem:[%s8085_s5 + $0x130] sm:$0xff]  }
 0x2b8   :  { %4744 = vmatpush3.bf16.msra.mxu0 %v5535_v51  ;;  %v5359_v50 = vpop.f32.mrb[32].mxu1 }
 0x2b9   :  { %4745 = vmatprep.subr.bf16.mxu0 %v5536_v49  ;;  %v1394_v59 = vpop.f32.mrb[33].mxu1  ;;  %v5541_v49 = vld [vmem:[%s8085_s5 + $0x138] sm:$0xff]  }
 0x2ba   :  { %v5360_v37 = vpop.f32.mrb[34].mxu1 }
 0x2bb   :  { %v1538_v52 = vpack.c.bf16 %v5360_v37, %v5359_v50  ;;  %v1397_v35 = vpop.f32.mrb[35].mxu1  ;;  %v5544_v37 = vld [vmem:[%s8085_s5 + $0x1c0] sm:$0xff]  }
 0x2bc   :  { %4746 = vmatpush3.bf16.msra.mxu0 %v5537_v38  ;;  %v1537_v51 = vpack.c.bf16 %v1397_v35, %v1394_v59  ;;  %v5545_v35 = vld [vmem:[%s8085_s5 + $0x180] sm:$0xff]  }
 0x2bd   :  { %4747 = vmatprep.subr.bf16.mxu0 %v5538_v60 }
 0x2c0   :  { %4748 = vmatpush3.bf16.msra.mxu0 %v5539_v47  ;;  %v5363_v39 = vpop.f32.mrb[36].mxu1  ;;  %v5546_v47 = vld [vmem:[%s8085_s5 + $0x1c8] sm:$0xff]  }
 0x2c1   :  { %4749 = vmatprep.subr.bf16.mxu0 %v5540_v34  ;;  %v1410_v38 = vpop.f32.mrb[37].mxu1  ;;  %v5565_v34 = vld [vmem:[%s8085_s5 + $0x300] sm:$0xff]  }
 0x2c2   :  { %v5364_v50 = vpop.f32.mrb[38].mxu1 }
 0x2c3   :  { %v1540_v44 = vpack.c.bf16 %v5364_v50, %v5363_v39  ;;  %v1413_v59 = vpop.f32.mrb[39].mxu1  ;;  %v5568_v39 = vld [vmem:[%s8085_s5 + $0x348] sm:$0xff]  }
 0x2c4   :  { %4750 = vmatpush3.bf16.msra.mxu0 %v5541_v49  ;;  %v1539_v60 = vpack.c.bf16 %v1413_v59, %v1410_v38  ;;  %v8332_v49 = vpack.c.bf16 %v7351_v63, %v7345_v46  ;;  %v5547_v38 = vld [vmem:[%s8085_s5 + $0x188] sm:$0xff]   ;;  %v5548_v59 = vld [vmem:[%s8085_s5 + $0x1d0] sm:$0xff]  }
 0x2c5   :  { %4763 = vmatprep.subr.bf16.mxu0 %v5544_v37  ;;  %v8333_v37 = vpack.c.bf16 %v7369_v54, %v7364_v42  ;;  %v5569_v46 = vld [vmem:[%s8085_s5 + $0x308] sm:$0xff]   ;;  %v5572_v42 = vld [vmem:[%s8085_s5 + $0x350] sm:$0xff]  }
 0x2c6   :  { %2805 = vmatprep.mubr.bf16.mxu1 %v1539_v60  ;;  %v5549_v60 = vld [vmem:[%s8085_s5 + $0x190] sm:$0xff]  }
 0x2c7   :  { %2708 = vmatmul.mubr.bf16.vlgmr.msra.gmra.mrb[32].mxu0 %v8332_v49  ;;  %2806 = vmatmul.mubr.bf16.vlgmr.msra.gmra.mrb[64].mxu1 %v1537_v51  ;;  %v8334_v49 = vpack.c.bf16 %v7347_v33, %v7340_v55  ;;  %v5577_v55 = vld [vmem:[%s8085_s5 + $0x318] sm:$0xff]  }
 0x2c8   :  { %2715 = vmatprep.mubr.bf16.mxu0 %v8333_v37  ;;  %4764 = vmatpush3.bf16.msra.mxu0 %v5545_v35  ;;  %v7469_v50 = vpop.f32.mrb[40].mxu1  ;;  %v5551_v37 = vld [vmem:[%s8085_s5 + $0x198] sm:$0xff]  }
 0x2c9   :  { %4765 = vmatprep.subr.bf16.mxu0 %v5546_v47  ;;  %4848 = vmatpush3.bf16.msra.mxu1 %v5565_v34  ;;  %v7477_v63 = vpop.f32.mrb[41].mxu1  ;;  %v5573_v34 = vld [vmem:[%s8085_s5 + $0x310] sm:$0xff]  }
 0x2ca   :  { %4849 = vmatprep.subr.bf16.mxu1 %v5568_v39  ;;  %2813 = vmatprep.mubr.bf16.mxu1 %v1540_v44  ;;  %v7482_v54 = vpop.f32.mrb[42].mxu1  ;;  %v5550_v44 = vld [vmem:[%s8085_s5 + $0x1d8] sm:$0xff]  }
 0x2cb   :  { %v7486_v35 = vpop.f32.mrb[43].mxu1  ;;  %v5576_v39 = vld [vmem:[%s8085_s5 + $0x358] sm:$0xff]  }
 0x2cc   :  { %4766 = vmatpush3.bf16.msra.mxu0 %v5547_v38  ;;  %v8335_v38 = vpack.c.bf16 %v7420_v43, %v7414_v45 }
 0x2cd   :  { %4767 = vmatprep.subr.bf16.mxu0 %v5548_v59  ;;  %4850 = vmatpush3.bf16.msra.mxu1 %v5569_v46  ;;  %v5554_v46 = vld [vmem:[%s8085_s5 + $0x1e0] sm:$0xff]  }
 0x2ce   :  { %4851 = vmatprep.subr.bf16.mxu1 %v5572_v42 }
 0x2cf   :  { %2716 = vmatmul.mubr.bf16.gmra.mrb[36].mxu0 %v8334_v49  ;;  %2814 = vmatmul.mubr.bf16.gmra.mrb[68].mxu1 %v1538_v52  ;;  %v5580_v52 = vld [vmem:[%s8085_s5 + $0x360] sm:$0xff]   ;;  %v5584_v49 = vld [vmem:[%s8085_s5 + $0x368] sm:$0xff]  }
 0x2d0   :  { %4768 = vmatpush3.bf16.msra.mxu0 %v5549_v60  ;;  %2756 = vmatprep.mubr.bf16.mxu0 %v8335_v38  ;;  %v7511_v59 = vpop.f32.mrb[44].mxu1  ;;  %v5555_v60 = vld [vmem:[%s8085_s5 + $0x1a0] sm:$0xff]  }
 0x2d1   :  { %4769 = vmatprep.subr.bf16.mxu0 %v5550_v44  ;;  %4852 = vmatpush3.bf16.msra.mxu1 %v5573_v34  ;;  %v7519_v33 = vpop.f32.mrb[45].mxu1  ;;  %v5558_v34 = vld [vmem:[%s8085_s5 + $0x1e8] sm:$0xff]   ;;  %v5566_v44 = vld [vmem:[%s8085_s5 + $0x1f8] sm:$0xff]  }
 0x2d2   :  { %4853 = vmatprep.subr.bf16.mxu1 %v5576_v39  ;;  %v7524_v45 = vpop.f32.mrb[46].mxu1  ;;  %v5581_v39 = vld [vmem:[%s8085_s5 + $0x320] sm:$0xff]  }
 0x2d3   :  { %v7528_v42 = vpop.f32.mrb[47].mxu1 }
 0x2d4   :  { %4770 = vmatpush3.bf16.msra.mxu0 %v5551_v37  ;;  %v5559_v37 = vld [vmem:[%s8085_s5 + $0x1a8] sm:$0xff]  }
 0x2d5   :  { %4771 = vmatprep.subr.bf16.mxu0 %v5554_v46  ;;  %4854 = vmatpush3.bf16.msra.mxu1 %v5577_v55  ;;  %v5562_v46 = vld [vmem:[%s8085_s5 + $0x1f0] sm:$0xff]   ;;  %v5585_v55 = vld [vmem:[%s8085_s5 + $0x328] sm:$0xff]  }
 0x2d6   :  { %4855 = vmatprep.subr.bf16.mxu1 %v5580_v52 }
 0x2d8   :  { %4772 = vmatpush3.bf16.msra.mxu0 %v5555_v60  ;;  %v7547_v38 = vpop.f32.mrb[48].mxu1  ;;  %v5588_v60 = vld [vmem:[%s8085_s5 + $0x370] sm:$0xff]  }
 0x2d9   :  { %4773 = vmatprep.subr.bf16.mxu0 %v5558_v34  ;;  %4856 = vmatpush3.bf16.msra.mxu1 %v5581_v39  ;;  %v1458_v52 = vpop.f32.mrb[49].mxu1  ;;  %v5563_v34 = vld [vmem:[%s8085_s5 + $0x1b0] sm:$0xff]  }
 0x2da   :  { %4857 = vmatprep.subr.bf16.mxu1 %v5584_v49  ;;  %v5376_v51 = vpop.f32.mrb[50].mxu1  ;;  %v5589_v49 = vld [vmem:[%s8085_s5 + $0x330] sm:$0xff]  }
 0x2db   :  { %v1546_v43 = vpack.c.bf16 %v5376_v51, %v7547_v38  ;;  %v1461_v47 = vpop.f32.mrb[51].mxu1  ;;  %v5592_v51 = vld [vmem:[%s8085_s5 + $0x378] sm:$0xff]   ;;  %v5570_v38 = vld [vmem:[%s8085_s5 + $0x2c0] sm:$0xff]  }
 0x2dc   :  { %4774 = vmatpush3.bf16.msra.mxu0 %v5559_v37  ;;  %v1545_v39 = vpack.c.bf16 %v1461_v47, %v1458_v52  ;;  %v5567_v47 = vld [vmem:[%s8085_s5 + $0x1b8] sm:$0xff]  }
 0x2dd   :  { %4775 = vmatprep.subr.bf16.mxu0 %v5562_v46  ;;  %4858 = vmatpush3.bf16.msra.mxu1 %v5585_v55  ;;  %v5593_v55 = vld [vmem:[%s8085_s5 + $0x338] sm:$0xff]  }
 0x2de   :  { %4859 = vmatprep.subr.bf16.mxu1 %v5588_v60 }
 0x2e0   :  { %4776 = vmatpush3.bf16.msra.mxu0 %v5563_v34  ;;  %v5379_v37 = vpop.f32.mrb[52].mxu1 }
 0x2e1   :  { %4777 = vmatprep.subr.bf16.mxu0 %v5566_v44  ;;  %4860 = vmatpush3.bf16.msra.mxu1 %v5589_v49  ;;  %v1474_v46 = vpop.f32.mrb[53].mxu1  ;;  %v5574_v49 = vld [vmem:[%s8085_s5 + $0x2c8] sm:$0xff]  }
 0x2e2   :  { %v5380_v52 = vpop.f32.mrb[54].mxu1  ;;  %4861 = vmatprep.subr.bf16.mxu1 %v5592_v51  ;;  %v8337_v51 = vpack.c.bf16 %v7416_v41, %v7409_v62  ;;  %v5582_v41 = vld [vmem:[%s8085_s5 + $0x2d8] sm:$0xff]  }
 0x2e3   :  { %v1548_v60 = vpack.c.bf16 %v5380_v52, %v5379_v37  ;;  %v1477_v34 = vpop.f32.mrb[55].mxu1  ;;  %v8339_v52 = vpack.c.bf16 %v7528_v42, %v7519_v33  ;;  %v5590_v33 = vld [vmem:[%s8085_s5 + $0x2e8] sm:$0xff]   ;;  %v5594_v42 = vld [vmem:[%s8085_s5 + $0x2f0] sm:$0xff]  }
 0x2e4   :  { %4778 = vmatpush3.bf16.msra.mxu0 %v5567_v47  ;;  %v1547_v44 = vpack.c.bf16 %v1477_v34, %v1474_v46  ;;  %v5575_v47 = vld [vmem:[%s8085_s5 + $0x288] sm:$0xff]   ;;  %v5586_v34 = vld [vmem:[%s8085_s5 + $0x2e0] sm:$0xff]  }
 0x2e5   :  { %4819 = vmatprep.subr.bf16.mxu0 %v5570_v38  ;;  %4862 = vmatpush3.bf16.msra.mxu1 %v5593_v55  ;;  %v5578_v38 = vld [vmem:[%s8085_s5 + $0x2d0] sm:$0xff]   ;;  %v5583_v55 = vld [vmem:[%s8085_s5 + $0x298] sm:$0xff]  }
 0x2e6   :  { %2903 = vmatprep.mubr.bf16.mxu1 %v1547_v44 }
 0x2e7   :  { %2757 = vmatmul.mubr.bf16.vlgmr.msra.gmra.mrb[40].mxu0 %v8336_v32 }
 0x2e8   :  { %2764 = vmatprep.mubr.bf16.mxu0 %v8337_v51  ;;  %4820 = vmatpush3.bf16.msra.mxu0 %v5571_v57  ;;  %v7595_v37 = vpop.f32.mrb[56].mxu1  ;;  %v5587_v51 = vld [vmem:[%s8085_s5 + $0x2a0] sm:$0xff]  }
 0x2e9   :  { %4821 = vmatprep.subr.bf16.mxu0 %v5574_v49  ;;  %2904 = vmatmul.mubr.bf16.vlgmr.msra.gmra.mrb[72].mxu1 %v1545_v39  ;;  %v7600_v46 = vpop.f32.mrb[57].mxu1  ;;  %v8338_v39 = vpack.c.bf16 %v7389_v36, %v7382_v58 }
 0x2ea   :  { %2911 = vmatprep.mubr.bf16.mxu1 %v1548_v60  ;;  %v7602_v32 = vpop.f32.mrb[58].mxu1 }
 0x2eb   :  { %v1550_v57 = vpack.c.bf16 %v7602_v32, %v7595_v37  ;;  %v7606_v61 = vpop.f32.mrb[59].mxu1 }
 0x2ec   :  { %4822 = vmatpush3.bf16.msra.mxu0 %v5575_v47  ;;  %v1549_v62 = vpack.c.bf16 %v7606_v61, %v7600_v46 }
 0x2ed   :  { %4823 = vmatprep.subr.bf16.mxu0 %v5578_v38  ;;  %v5595_v38 = vld [vmem:[%s8085_s5 + $0x2b0] sm:$0xff]  }
 0x2ef   :  { %2765 = vmatmul.mubr.bf16.gmra.mrb[44].mxu0 %v8338_v39  ;;  %v5598_v39 = vld [vmem:[%s8085_s5 + $0x3c0] sm:$0xff]  }
 0x2f0   :  { %4824 = vmatpush3.bf16.msra.mxu0 %v5579_v53  ;;  %2854 = vmatprep.mubr.bf16.mxu0 %v8339_v52  ;;  %v5387_v60 = vpop.f32.mrb[60].mxu1  ;;  %v5596_v53 = vld [vmem:[%s8085_s5 + $0x2f8] sm:$0xff]   ;;  %v5600_v52 = vld [vmem:[%s8085_s5 + $0x3c8] sm:$0xff]  }
 0x2f1   :  { %4825 = vmatprep.subr.bf16.mxu0 %v5582_v41  ;;  %2912 = vmatmul.mubr.bf16.gmra.mrb[76].mxu1 %v1546_v43  ;;  %v1506_v44 = vpop.f32.mrb[61].mxu1  ;;  %v5591_v43 = vld [vmem:[%s8085_s5 + $0x2a8] sm:$0xff]   ;;  %v5597_v41 = vld [vmem:[%s8085_s5 + $0x2b8] sm:$0xff]  }
 0x2f2   :  { %v5388_v49 = vpop.f32.mrb[62].mxu1 }
 0x2f3   :  { %v1552_v58 = vpack.c.bf16 %v5388_v49, %v5387_v60  ;;  %v1509_v36 = vpop.f32.mrb[63].mxu1  ;;  %v8340_v60 = vpack.c.bf16 %v7486_v35, %v7477_v63  ;;  %v5602_v49 = vld [vmem:[%s8085_s5 + $0x3d0] sm:$0xff]   ;;  %v5604_v35 = vld [vmem:[%s8085_s5 + $0x3d8] sm:$0xff]  }
 0x2f4   :  { %4826 = vmatpush3.bf16.msra.mxu0 %v5583_v55  ;;  %v1551_v47 = vpack.c.bf16 %v1509_v36, %v1506_v44  ;;  %v5599_v55 = vld [vmem:[%s8085_s5 + $0x380] sm:$0xff]   ;;  %v5601_v44 = vld [vmem:[%s8085_s5 + $0x388] sm:$0xff]   ;;  %v5603_v63 = vld [vmem:[%s8085_s5 + $0x390] sm:$0xff]  }
 0x2f5   :  { %4827 = vmatprep.subr.bf16.mxu0 %v5586_v34  ;;  %v8341_v34 = vpack.c.bf16 %v7524_v45, %v7511_v59  ;;  %v8342_v59 = vpack.c.bf16 %v7482_v54, %v7469_v50  ;;  %v5605_v45 = vld [vmem:[%s8085_s5 + $0x398] sm:$0xff]   ;;  %v5606_v36 = vld [vmem:[%s8085_s5 + $0x3e0] sm:$0xff]   ;;  %v5608_v50 = vld [vmem:[%s8085_s5 + $0x3e8] sm:$0xff]  }
 0x2f6   :  { %v5609_v54 = vld [vmem:[%s8085_s5 + $0x3a8] sm:$0xff]  }
 0x2f8   :  { %4828 = vmatpush3.bf16.msra.mxu0 %v5587_v51  ;;  %v5607_v51 = vld [vmem:[%s8085_s5 + $0x3a0] sm:$0xff]  }
 0x2f9   :  { %4829 = vmatprep.subr.bf16.mxu0 %v5590_v33  ;;  %v5611_v33 = vld [vmem:[%s8085_s5 + $0x3b0] sm:$0xff]  }
 0x2fc   :  { %4830 = vmatpush3.bf16.msra.mxu0 %v5591_v43  ;;  %v5612_v43 = vld [vmem:[%s8085_s5 + $0x3f8] sm:$0xff]  }
 0x2fd   :  { %4831 = vmatprep.subr.bf16.mxu0 %v5594_v42  ;;  %v5613_v42 = vld [vmem:[%s8085_s5 + $0x3b8] sm:$0xff]  }
 0x300   :  { %4832 = vmatpush3.bf16.msra.mxu0 %v5595_v38 }
 0x301   :  { %4833 = vmatprep.subr.bf16.mxu0 %v5596_v53 }
 0x304   :  { %4834 = vmatpush3.bf16.msra.mxu0 %v5597_v41 }
 0x305   :  { %4875 = vmatprep.subr.bf16.mxu0 %v5598_v39 }
 0x307   :  { %2855 = vmatmul.mubr.bf16.vlgmr.msra.gmra.mrb[48].mxu0 %v8340_v60 }
 0x308   :  { %2862 = vmatprep.mubr.bf16.mxu0 %v8341_v34  ;;  %4876 = vmatpush3.bf16.msra.mxu0 %v5599_v55 }
 0x309   :  { %4877 = vmatprep.subr.bf16.mxu0 %v5600_v52 }
 0x30c   :  { %4878 = vmatpush3.bf16.msra.mxu0 %v5601_v44 }
 0x30d   :  { %4879 = vmatprep.subr.bf16.mxu0 %v5602_v49 }
 0x30f   :  { %2863 = vmatmul.mubr.bf16.gmra.mrb[52].mxu0 %v8342_v59 }
 0x310   :  { %4880 = vmatpush3.bf16.msra.mxu0 %v5603_v63  ;;  %2952 = vmatprep.mubr.bf16.mxu0 %v1551_v47  ;;  %v5610_v47 = vld [vmem:[%s8085_s5 + $0x3f0] sm:$0xff]  }
 0x311   :  { %4881 = vmatprep.subr.bf16.mxu0 %v5604_v35 }
 0x314   :  { %4882 = vmatpush3.bf16.msra.mxu0 %v5605_v45 }
 0x315   :  { %4883 = vmatprep.subr.bf16.mxu0 %v5606_v36 }
 0x318   :  { %4884 = vmatpush3.bf16.msra.mxu0 %v5607_v51 }
 0x319   :  { %4885 = vmatprep.subr.bf16.mxu0 %v5608_v50 }
 0x31c   :  { %4886 = vmatpush3.bf16.msra.mxu0 %v5609_v54 }
 0x31d   :  { %4887 = vmatprep.subr.bf16.mxu0 %v5610_v47 }
 0x320   :  { %4888 = vmatpush3.bf16.msra.mxu0 %v5611_v33 }
 0x321   :  { %4889 = vmatprep.subr.bf16.mxu0 %v5612_v43 }
 0x324   :  { %4890 = vmatpush3.bf16.msra.mxu0 %v5613_v42 }
 0x327   :  { %2953 = vmatmul.mubr.bf16.vlgmr.msra.gmra.mrb[56].mxu0 %v1549_v62 }
 0x328   :  { %2960 = vmatprep.mubr.bf16.mxu0 %v1552_v58 }
 0x32f   :  { %2961 = vmatmul.mubr.bf16.gmra.mrb[60].mxu0 %v1550_v57 }
 0x35a   :  { %v4695_v38 = vpop.f32.mrb[16].mxu0 }
 0x35b   :  { %v4696_v53 = vpop.f32.mrb[17].mxu0 }
 0x35c   :  { %v4697_v41 = vadd.f32 %v4696_v53, %v4695_v38  ;;  %v4698_v39 = vpop.f32.mrb[18].mxu0 }
 0x35d   :  { %v4699_v55 = vpop.f32.mrb[19].mxu0 }
 0x35e   :  { %v4700_v52 = vadd.f32 %v4699_v55, %v4698_v39 }
 0x362   :  { %v4701_v60 = vpop.f32.mrb[20].mxu0 }
 0x363   :  { %v4702_v34 = vpop.f32.mrb[21].mxu0 }
 0x364   :  { %v4703_v44 = vadd.f32 %v4702_v34, %v4701_v60  ;;  %v4704_v49 = vpop.f32.mrb[22].mxu0 }
 0x365   :  { %v4705_v63 = vpop.f32.mrb[23].mxu0 }
 0x366   :  { %v4706_v35 = vadd.f32 %v4705_v63, %v4704_v49 }
 0x37a   :  { %v4723_v59 = vpop.f32.mrb[24].mxu0 }
 0x37b   :  { %v4724_v46 = vpop.f32.mrb[25].mxu0 }
 0x37c   :  { %v4725_v61 = vadd.f32 %v4724_v46, %v4723_v59  ;;  %v4726_v62 = vpop.f32.mrb[26].mxu0 }
 0x37d   :  { %v4727_v58 = vpop.f32.mrb[27].mxu0 }
 0x37e   :  { %v2661_v45 = vadd.f32 %v4725_v61, %v4697_v41  ;;  %v4728_v37 = vadd.f32 %v4727_v58, %v4726_v62 }
 0x380   :  { %v2664_v32 = vadd.f32 %v4728_v37, %v4700_v52 }
 0x382   :  { %v4729_v57 = vpop.f32.mrb[28].mxu0 }
 0x383   :  { %v4730_v36 = vpop.f32.mrb[29].mxu0 }
 0x384   :  { %v4731_v51 = vadd.f32 %v4730_v36, %v4729_v57  ;;  %v4732_v50 = vpop.f32.mrb[30].mxu0 }
 0x385   :  { %v4733_v54 = vpop.f32.mrb[31].mxu0 }
 0x386   :  { %v2669_v47 = vadd.f32 %v4731_v51, %v4703_v44  ;;  %v4734_v33 = vadd.f32 %v4733_v54, %v4732_v50 }
 0x388   :  { %v2672_v43 = vadd.f32 %v4734_v33, %v4706_v35 }
 0x39a   :  { %v4751_v42 = vpop.f32.mrb[32].mxu0  ;;  %v4807_v38 = vpop.f32.mrb[64].mxu1 }
 0x39b   :  { %v4752_v53 = vpop.f32.mrb[33].mxu0  ;;  %v4808_v39 = vpop.f32.mrb[65].mxu1 }
 0x39c   :  { %v4753_v55 = vadd.f32 %v4752_v53, %v4751_v42  ;;  %v4754_v60 = vpop.f32.mrb[34].mxu0  ;;  %v4809_v34 = vadd.f32 %v4808_v39, %v4807_v38  ;;  %v4810_v49 = vpop.f32.mrb[66].mxu1 }
 0x39d   :  { %v4755_v63 = vpop.f32.mrb[35].mxu0  ;;  %v4811_v41 = vpop.f32.mrb[67].mxu1 }
 0x39e   :  { %v2710_v59 = vadd.f32 %v4753_v55, %v2661_v45  ;;  %v4756_v52 = vadd.f32 %v4755_v63, %v4754_v60  ;;  %v4812_v46 = vadd.f32 %v4811_v41, %v4810_v49 }
 0x3a0   :  { %v2713_v61 = vadd.f32 %v4756_v52, %v2664_v32 }
 0x3a2   :  { %v4757_v62 = vpop.f32.mrb[36].mxu0  ;;  %v4813_v58 = vpop.f32.mrb[68].mxu1 }
 0x3a3   :  { %v4758_v37 = vpop.f32.mrb[37].mxu0  ;;  %v4814_v44 = vpop.f32.mrb[69].mxu1 }
 0x3a4   :  { %v4759_v57 = vadd.f32 %v4758_v37, %v4757_v62  ;;  %v4760_v35 = vpop.f32.mrb[38].mxu0  ;;  %v4815_v36 = vadd.f32 %v4814_v44, %v4813_v58  ;;  %v4816_v51 = vpop.f32.mrb[70].mxu1 }
 0x3a5   :  { %v4761_v50 = vpop.f32.mrb[39].mxu0  ;;  %v4817_v54 = vpop.f32.mrb[71].mxu1 }
 0x3a6   :  { %v2718_v33 = vadd.f32 %v4759_v57, %v2669_v47  ;;  %v4762_v42 = vadd.f32 %v4761_v50, %v4760_v35  ;;  %v4818_v38 = vadd.f32 %v4817_v54, %v4816_v51 }
 0x3a8   :  { %v2721_v53 = vadd.f32 %v4762_v42, %v2672_v43 }
 0x3ba   :  { %v4779_v39 = vpop.f32.mrb[40].mxu0 }
 0x3bb   :  { %v4780_v48 = vpop.f32.mrb[41].mxu0 }
 0x3bc   :  { %v4781_v45 = vadd.f32 %v4780_v48, %v4779_v39  ;;  %v4782_v55 = vpop.f32.mrb[42].mxu0  ;;  %v4863_v60 = vpop.f32.mrb[72].mxu1 }
 0x3bd   :  { %v4783_v32 = vpop.f32.mrb[43].mxu0  ;;  %v4864_v49 = vpop.f32.mrb[73].mxu1 }
 0x3be   :  { %v2759_v63 = vadd.f32 %v4781_v45, %v2710_v59  ;;  %v4784_v41 = vadd.f32 %v4783_v32, %v4782_v55  ;;  %v4865_v52 = vadd.f32 %v4864_v49, %v4863_v60  ;;  %v4866_v62 = vpop.f32.mrb[74].mxu1 }
 0x3bf   :  { %v4867_v37 = vpop.f32.mrb[75].mxu1 }
 0x3c0   :  { %v2762_v58 = vadd.f32 %v4784_v41, %v2713_v61  ;;  %v4868_v44 = vadd.f32 %v4867_v37, %v4866_v62  ;;  %v2808_v56 = vadd.f32 %v4809_v34, %v2759_v63 }
 0x3c2   :  { %v4785_v23 = vpop.f32.mrb[44].mxu0  ;;  %v2811_v47 = vadd.f32 %v4812_v46, %v2762_v58 }
 0x3c3   :  { %v4786_v57 = vpop.f32.mrb[45].mxu0 }
 0x3c4   :  { %v4787_v35 = vadd.f32 %v4786_v57, %v4785_v23  ;;  %v4788_v43 = vpop.f32.mrb[46].mxu0  ;;  %v4869_v51 = vpop.f32.mrb[76].mxu1 }
 0x3c5   :  { %v4789_v50 = vpop.f32.mrb[47].mxu0  ;;  %v4870_v48 = vpop.f32.mrb[77].mxu1 }
 0x3c6   :  { %v2767_v54 = vadd.f32 %v4787_v35, %v2718_v33  ;;  %v4790_v42 = vadd.f32 %v4789_v50, %v4788_v43  ;;  %v4871_v39 = vadd.f32 %v4870_v48, %v4869_v51  ;;  %v4872_v31 = vpop.f32.mrb[78].mxu1 }
 0x3c7   :  { %v4873_v59 = vpop.f32.mrb[79].mxu1 }
 0x3c8   :  { %v2770_v45 = vadd.f32 %v4790_v42, %v2721_v53  ;;  %v4874_v55 = vadd.f32 %v4873_v59, %v4872_v31  ;;  %v2816_v60 = vadd.f32 %v4815_v36, %v2767_v54 }
 0x3ca   :  { %v2819_v32 = vadd.f32 %v4818_v38, %v2770_v45  ;;  %v4587_v45 = vld [vmem:[%s8087_s7] ss:$0 sm:$0xff] }
 0x3da   :  { %v4835_v61 = vpop.f32.mrb[48].mxu0 }
 0x3db   :  { %v4836_v49 = vpop.f32.mrb[49].mxu0 }
 0x3dc   :  { %v4837_v34 = vadd.f32 %v4836_v49, %v4835_v61  ;;  %v4838_v63 = vpop.f32.mrb[50].mxu0 }
 0x3dd   :  { %v4839_v46 = vpop.f32.mrb[51].mxu0 }
 0x3de   :  { %v2857_v41 = vadd.f32 %v4837_v34, %v2808_v56  ;;  %v4840_v23 = vadd.f32 %v4839_v46, %v4838_v63  ;;  %v4586_v56 = vld [vmem:[%s8086_s6] ss:$0 sm:$0xff] }
 0x3e0   :  { %v2860_v62 = vadd.f32 %v4840_v23, %v2811_v47  ;;  %v2906_v37 = vadd.f32 %v4865_v52, %v2857_v41 }
 0x3e2   :  { %v4841_v58 = vpop.f32.mrb[52].mxu0  ;;  %v2909_v57 = vadd.f32 %v4868_v44, %v2860_v62 }
 0x3e3   :  { %v4842_v33 = vpop.f32.mrb[53].mxu0 }
 0x3e4   :  { %v4843_v35 = vadd.f32 %v4842_v33, %v4841_v58  ;;  %v4844_v43 = vpop.f32.mrb[54].mxu0 }
 0x3e5   :  { %v4845_v51 = vpop.f32.mrb[55].mxu0 }
 0x3e6   :  { %v2865_v50 = vadd.f32 %v4843_v35, %v2816_v60  ;;  %v4846_v53 = vadd.f32 %v4845_v51, %v4844_v43 }
 0x3e8   :  { %v2868_v31 = vadd.f32 %v4846_v53, %v2819_v32  ;;  %v2914_v36 = vadd.f32 %v4871_v39, %v2865_v50 }
 0x3ea   :  { %v2917_v38 = vadd.f32 %v4874_v55, %v2868_v31 }
 0x3fa   :  { %v4891_v48 = vpop.f32.mrb[56].mxu0 }
 0x3fb   :  { %v4892_v54 = vpop.f32.mrb[57].mxu0 }
 0x3fc   :  { %v4893_v42 = vadd.f32 %v4892_v54, %v4891_v48  ;;  %v4894_v59 = vpop.f32.mrb[58].mxu0 }
 0x3fd   :  { %v4895_v52 = vpop.f32.mrb[59].mxu0 }
 0x3fe   :  { %v2955_v47 = vadd.f32 %v4893_v42, %v2906_v37  ;;  %v4896_v44 = vadd.f32 %v4895_v52, %v4894_v59 }
 0x400   :  { %v2976_v60 = vmul.f32 %v4586_v56, %v2955_v47  ;;  %v2958_v61 = vadd.f32 %v4896_v44, %v2909_v57 }
 0x402   :  { %v2987_v32 = vadd.f32 %v4587_v45, %v2976_v60  ;;  %v2977_v39 = vmul.f32 %v4586_v56, %v2958_v61  ;;  %v4897_v55 = vpop.f32.mrb[60].mxu0 }
 0x403   :  { %v4898_v49 = vpop.f32.mrb[61].mxu0 }
 0x404   :  { %v2995_v34 = vmul.f32 0.2, %v2987_v32  ;;  %v2988_v63 = vadd.f32 %v4587_v45, %v2977_v39  ;;  %v4899_v46 = vadd.f32 %v4898_v49, %v4897_v55  ;;  %v4900_v41 = vpop.f32.mrb[62].mxu0  ;;  %vm2991_vm0 = vcmp.gt.f32.partialorder %v2987_v32, 0.0 }
 0x405   :  { %v4901_v23 = vpop.f32.mrb[63].mxu0 }
 0x406   :  { %vm2992_vm1 = vcmp.gt.f32.partialorder %v2988_v63, 0.0  ;;  %v2996_v62 = vmul.f32 0.2, %v2988_v63  ;;  %v2963_v37 = vadd.f32 %v4899_v46, %v2914_v36  ;;  %v4902_v58 = vadd.f32 %v4901_v23, %v4900_v41 }
 0x407   :  { %v2999_v33 = vsel %vm2991_vm0, %v2987_v32, %v2995_v34 }
 0x408   :  { %v3000_v35 = vsel %vm2992_vm1, %v2988_v63, %v2996_v62  ;;  %v2978_v43 = vmul.f32 %v4586_v56, %v2963_v37  ;;  %v2966_v50 = vadd.f32 %v4902_v58, %v2917_v38 }
 0x409   :  { %v3003_v51 = vpack.c.bf16 %v3000_v35, %v2999_v33 }
 0x40a   :  { %v2989_v57 = vadd.f32 %v4587_v45, %v2978_v43  ;;  %v2979_v53 = vmul.f32 %v4586_v56, %v2966_v50 }
 0x40c   :  { %v2997_v31 = vmul.f32 0.2, %v2989_v57  ;;  %v2990_v48 = vadd.f32 %v4587_v45, %v2979_v53  ;;  %vm2993_vm2 = vcmp.gt.f32.partialorder %v2989_v57, 0.0 }
 0x40e   :  { %vm2994_vm3 = vcmp.gt.f32.partialorder %v2990_v48, 0.0  ;;  %v2998_v54 = vmul.f32 0.2, %v2990_v48  ;;  %v3001_v42 = vsel %vm2993_vm2, %v2989_v57, %v2997_v31 }
 0x410   :  { %v3002_v59 = vsel %vm2994_vm3, %v2990_v48, %v2998_v54 }
 0x411   :  { %v3004_v52 = vpack.c.bf16 %v3002_v59, %v3001_v42 }
 0x412   :  { %5632 = dma.done.wait [#allocation4], 16384 }
 0x413   :  { %5633 = vsyncadd [#allocation4], 4294950912  ;;  %5389 = vmatprep.subr.bf16.mxu0 %v3003_v51  ;;  %4913 = vmatprep.subr.bf16.mxu1 %v5776_v8  ;;  %vm3065_vm4 = vcmask 261120   ;;  %v5614_v36 = vld [vmem:[%s8088_s8] sm:$0xff]   ;;  %v5615_v8 = vld [vmem:[%s8088_s8 + $0x8] sm:$0xff]  }
 0x414   :  { %5390 = vmatpush3.bf16.msra.mxu0 %v3003_v51  ;;  %4914 = vmatpush3.bf16.msra.mxu1 %v5736_v0  ;;  %v5616_v0 = vld [vmem:[%s8088_s8 + $0x10] sm:$0xff]   ;;  %v8352_v38 = vld [vmem:[#allocation36_spill] sm:$0xff]  ;;  %v8355_v61 = vld [vmem:[#allocation13_spill] sm:$0xff] }
 0x415   :  { %5391 = vmatprep.subr.bf16.mxu0 %v3004_v52  ;;  %4915 = vmatprep.subr.bf16.mxu1 %v5781_v9  ;;  %v8344_v9 = vld [vmem:[#allocation9_spill] sm:$0xff]  ;;  %v8353_v47 = vld [vmem:[#allocation20_spill] sm:$0xff]  ;;  %v8359_v41 = vld [vmem:[#allocation14_spill] sm:$0xff] }
 0x416   :  { %5393 = vmatprep.mubr.msk.bf16.mxu0 %vm3065_vm4, %v5614_v36  ;;  %v8354_v45 = vld [vmem:[#allocation28_spill] sm:$0xff]  ;;  %v8356_v32 = vld [vmem:[#allocation37_spill] sm:$0xff]  ;;  %v8360_v23 = vld [vmem:[#allocation38_spill] sm:$0xff] }
 0x417   :  { %v8357_v55 = vld [vmem:[#allocation21_spill] sm:$0xff]  ;;  %v8361_v62 = vld [vmem:[#allocation22_spill] sm:$0xff]  ;;  %v8363_v35 = vld [vmem:[#allocation15_spill] sm:$0xff] }
 0x418   :  { %5392 = vmatpush3.bf16.msra.mxu0 %v3004_v52  ;;  %4916 = vmatpush3.bf16.msra.mxu1 %v5741_v1  ;;  %v5617_v1 = vld [vmem:[%s8088_s8 + $0x18] sm:$0xff]   ;;  %v8358_v46 = vld [vmem:[#allocation29_spill] sm:$0xff]  ;;  %v8362_v58 = vld [vmem:[#allocation30_spill] sm:$0xff] }
 0x419   :  { %4935 = vmatprep.subr.bf16.mxu0 %v5856_v24  ;;  %4917 = vmatprep.subr.bf16.mxu1 %v5786_v10  ;;  %v8345_v10 = vld [vmem:[#allocation34_spill] sm:$0xff]  ;;  %v8364_v43 = vld [vmem:[#allocation39_spill] sm:$0xff]  ;;  %v8367_v54 = vld [vmem:[#allocation16_spill] sm:$0xff] }
 0x41a   :  { %v8365_v50 = vld [vmem:[#allocation23_spill] sm:$0xff]  ;;  %v8368_v42 = vld [vmem:[#allocation40_spill] sm:$0xff]  ;;  %v8371_v36 = vld [vmem:[#allocation17_spill] sm:$0xff] }
 0x41b   :  { %5394 = vmatmul.mubr.msk.bf16.vlgmr.msra.gmra.mrb[64].mxu0 %vm3065_vm4, %v5615_v8  ;;  %v8366_v48 = vld [vmem:[#allocation31_spill] sm:$0xff]  ;;  %v8369_v59 = vld [vmem:[#allocation24_spill] sm:$0xff]  ;;  %v8372_v8 = vld [vmem:[#allocation41_spill] sm:$0xff] }
 0x41c   :  { %4918 = vmatpush3.bf16.msra.mxu1 %v5746_v2  ;;  %5397 = vmatprep.mubr.msk.bf16.mxu0 %vm3065_vm4, %v5616_v0  ;;  %v5618_v2 = vld [vmem:[%s8088_s8 + $0x20] sm:$0xff]   ;;  %v8370_v52 = vld [vmem:[#allocation32_spill] sm:$0xff] }
 0x41d   :  { %4919 = vmatprep.subr.bf16.mxu1 %v5791_v11  ;;  %4936 = vmatpush3.bf16.msra.mxu0 %v5816_v16  ;;  %v8373_v0 = vld [vmem:[#allocation25_spill] sm:$0xff] }
 0x41e   :  { %4937 = vmatprep.subr.bf16.mxu0 %v5861_v25  ;;  %v8349_v25 = vld [vmem:[#allocation19_spill] sm:$0xff] }
 0x420   :  { %4920 = vmatpush3.bf16.msra.mxu1 %v5751_v3  ;;  %v5619_v3 = vld [vmem:[%s8088_s8 + $0x28] sm:$0xff]  }
 0x421   :  { %4921 = vmatprep.subr.bf16.mxu1 %v5796_v12  ;;  %4938 = vmatpush3.bf16.msra.mxu0 %v5821_v17 }
 0x422   :  { %4939 = vmatprep.subr.bf16.mxu0 %v5866_v26 }
 0x423   :  { %5398 = vmatmul.mubr.msk.bf16.gmra.mrb[68].mxu0 %vm3065_vm4, %v5617_v1  ;;  %v8374_v1 = vld [vmem:[#allocation33_spill] sm:$0xff] }
 0x424   :  { %4922 = vmatpush3.bf16.msra.mxu1 %v5756_v4  ;;  %5401 = vmatprep.mubr.msk.bf16.mxu0 %vm3065_vm4, %v5618_v2  ;;  %v5620_v4 = vld [vmem:[%s8088_s8 + $0x30] sm:$0xff]   ;;  %v8375_v2 = vld [vmem:[#allocation18_spill] sm:$0xff] }
 0x425   :  { %4923 = vmatprep.subr.bf16.mxu1 %v5801_v13  ;;  %4940 = vmatpush3.bf16.msra.mxu0 %v5826_v18 }
 0x426   :  { %4941 = vmatprep.subr.bf16.mxu0 %v5871_v27 }
 0x428   :  { %4924 = vmatpush3.bf16.msra.mxu1 %v5761_v5  ;;  %v5621_v5 = vld [vmem:[%s8088_s8 + $0x38] sm:$0xff]  }
 0x429   :  { %4925 = vmatprep.subr.bf16.mxu1 %v5806_v14  ;;  %4942 = vmatpush3.bf16.msra.mxu0 %v5831_v19  ;;  %v8346_v19 = vld [vmem:[#allocation26_spill] sm:$0xff] }
 0x42a   :  { %4943 = vmatprep.subr.bf16.mxu0 %v5876_v28 }
 0x42b   :  { %5402 = vmatmul.mubr.msk.bf16.gmra.mrb[72].mxu0 %vm3065_vm4, %v5619_v3  ;;  %v8376_v3 = vld [vmem:[#allocation66_spill] sm:$0xff] }
 0x42c   :  { %4926 = vmatpush3.bf16.msra.mxu1 %v5766_v6  ;;  %5405 = vmatprep.mubr.msk.bf16.mxu0 %vm3065_vm4, %v5620_v4  ;;  %v8343_v6 = vld [vmem:[#allocation10_spill] sm:$0xff] }
 0x42d   :  { %4927 = vmatprep.subr.bf16.mxu1 %v5811_v15  ;;  %4944 = vmatpush3.bf16.msra.mxu0 %v5836_v20  ;;  %v8377_v4 = vld [vmem:[#allocation50_spill] sm:$0xff] }
 0x42e   :  { %4945 = vmatprep.subr.bf16.mxu0 %v5881_v29  ;;  %v8350_v29 = vld [vmem:[#allocation27_spill] sm:$0xff] }
 0x430   :  { %4928 = vmatpush3.bf16.msra.mxu1 %v5771_v7 }
 0x431   :  { %4957 = vmatprep.subr.bf16.mxu1 %v5936_v40  ;;  %4946 = vmatpush3.bf16.msra.mxu0 %v5841_v21  ;;  %v8347_v21 = vld [vmem:[#allocation11_spill] sm:$0xff]  ;;  %v8351_v40 = vld [vmem:[#allocation12_spill] sm:$0xff] }
 0x432   :  { %4947 = vmatprep.subr.bf16.mxu0 %v5886_v30 }
 0x433   :  { %5406 = vmatmul.mubr.msk.bf16.gmra.mrb[76].mxu0 %vm3065_vm4, %v5621_v5 }
 0x435   :  { %4948 = vmatpush3.bf16.msra.mxu0 %v5846_v22  ;;  %v8348_v22 = vld [vmem:[#allocation35_spill] sm:$0xff] }
 0x436   :  { %4949 = vmatprep.subr.bf16.mxu0 %v8343_v6 }
 0x439   :  { %4950 = vmatpush3.bf16.msra.mxu0 %v8344_v9  ;;  %v8378_v9 = vld [vmem:[#allocation58_spill] sm:$0xff] }
 0x43a   :  { %4979 = vmatprep.subr.bf16.mxu0 %v8345_v10  ;;  %v8379_v10 = vld [vmem:[#allocation42_spill] sm:$0xff] }
 0x4ee   :  { %v5395_v7 = vpop.f32.mrb[64].mxu0 }
 0x4ef   :  { %v3124_v11 = vpop.f32.mrb[65].mxu0 }
 0x4f0   :  { %v5396_v12 = vpop.f32.mrb[66].mxu0 }
 0x4f1   :  { %v3188_v13 = vpack.c.bf16 %v5396_v12, %v5395_v7  ;;  %v3127_v14 = vpop.f32.mrb[67].mxu0  ;;  %v8380_v7 = vld [vmem:[#allocation67_spill] sm:$0xff] }
 0x4f2   :  { %v3187_v15 = vpack.c.bf16 %v3127_v14, %v3124_v11  ;;  %v8381_v11 = vld [vmem:[#allocation51_spill] sm:$0xff]  ;;  %v8384_v14 = vld [vmem:[#allocation68_spill] sm:$0xff] }
 0x4f3   :  { %v3199_v16 = vrot.slane %v3188_v13, 4  ;;  %v8382_v12 = vld [vmem:[#allocation59_spill] sm:$0xff] }
 0x4f4   :  { %v3196_v17 = vrot.slane %v3187_v15, 4 }
 0x4f5   :  { %3419 = vmatprep.mubr.bf16.mxu0 %v3199_v16  ;;  %v8386_v16 = vld [vmem:[#allocation60_spill] sm:$0xff] }
 0x4f6   :  { %3379 = vmatprep.mubr.bf16.mxu1 %v3196_v17  ;;  %3420 = vmatmul.mubr.bf16.vlgmr.msra.gmra.mrb[80].mxu0 %v3188_v13  ;;  %v5399_v18 = vpop.f32.mrb[68].mxu0  ;;  %v8383_v13 = vld [vmem:[#allocation43_spill] sm:$0xff]  ;;  %v8387_v17 = vld [vmem:[#allocation44_spill] sm:$0xff] }
 0x4f7   :  { %4980 = vmatpush3.bf16.msra.mxu0 %v8346_v19  ;;  %3380 = vmatmul.mubr.bf16.vlgmr.msra.gmra.mrb[80].mxu1 %v3187_v15  ;;  %v3140_v20 = vpop.f32.mrb[69].mxu0  ;;  %v8385_v15 = vld [vmem:[#allocation52_spill] sm:$0xff]  ;;  %v8389_v19 = vld [vmem:[#allocation53_spill] sm:$0xff] }
 0x4f8   :  { %4958 = vmatpush3.bf16.msra.mxu1 %v8347_v21  ;;  %4981 = vmatprep.subr.bf16.mxu0 %v8348_v22  ;;  %v5400_v24 = vpop.f32.mrb[70].mxu0  ;;  %v8391_v21 = vld [vmem:[#allocation45_spill] sm:$0xff]  ;;  %v8392_v22 = vld [vmem:[#allocation70_spill] sm:$0xff] }
 0x4f9   :  { %4959 = vmatprep.subr.bf16.mxu1 %v8349_v25  ;;  %v3190_v26 = vpack.c.bf16 %v5400_v24, %v5399_v18  ;;  %v3143_v27 = vpop.f32.mrb[71].mxu0  ;;  %v8388_v18 = vld [vmem:[#allocation69_spill] sm:$0xff]  ;;  %v8393_v24 = vld [vmem:[#allocation54_spill] sm:$0xff] }
 0x4fa   :  { %v3189_v28 = vpack.c.bf16 %v3143_v27, %v3140_v20  ;;  %v8390_v20 = vld [vmem:[#allocation61_spill] sm:$0xff]  ;;  %v8394_v25 = vld [vmem:[#allocation62_spill] sm:$0xff]  ;;  %v8396_v27 = vld [vmem:[#allocation71_spill] sm:$0xff] }
 0x4fb   :  { %4982 = vmatpush3.bf16.msra.mxu0 %v8350_v29  ;;  %v3205_v30 = vrot.slane %v3190_v26, 4  ;;  %v8398_v29 = vld [vmem:[#allocation63_spill] sm:$0xff] }
 0x4fc   :  { %4960 = vmatpush3.bf16.msra.mxu1 %v8351_v40  ;;  %4983 = vmatprep.subr.bf16.mxu0 %v8352_v38  ;;  %v3202_v56 = vrot.slane %v3189_v28, 4  ;;  %v8400_v40 = vld [vmem:[#allocation72_spill] sm:$0xff] }
 0x4fd   :  { %4961 = vmatprep.subr.bf16.mxu1 %v8353_v47  ;;  %3499 = vmatprep.mubr.bf16.mxu0 %v3205_v30  ;;  %v8399_v30 = vld [vmem:[#allocation47_spill] sm:$0xff]  ;;  %v8401_v38 = vld [vmem:[#allocation56_spill] sm:$0xff] }
 0x4fe   :  { %3459 = vmatprep.mubr.bf16.mxu1 %v3202_v56  ;;  %v5403_v44 = vpop.f32.mrb[72].mxu0  ;;  %v8402_v56 = vld [vmem:[#allocation64_spill] sm:$0xff] }
 0x4ff   :  { %4984 = vmatpush3.bf16.msra.mxu0 %v8354_v45  ;;  %v3156_v60 = vpop.f32.mrb[73].mxu0  ;;  %v8403_v47 = vld [vmem:[#allocation48_spill] sm:$0xff]  ;;  %v8405_v45 = vld [vmem:[#allocation57_spill] sm:$0xff] }
 0x500   :  { %4962 = vmatpush3.bf16.msra.mxu1 %v8355_v61  ;;  %4985 = vmatprep.subr.bf16.mxu0 %v8356_v32  ;;  %v5404_v39 = vpop.f32.mrb[74].mxu0  ;;  %v8407_v61 = vld [vmem:[#allocation49_spill] sm:$0xff]  ;;  %v8408_v32 = vld [vmem:[#allocation98_spill] sm:$0xff] }
 0x501   :  { %4963 = vmatprep.subr.bf16.mxu1 %v8357_v55  ;;  %v7796_v49 = vpack.c.bf16 %v5404_v39, %v5403_v44  ;;  %v3159_v34 = vpop.f32.mrb[75].mxu0  ;;  %v8404_v44 = vld [vmem:[#allocation73_spill] sm:$0xff]  ;;  %v8409_v39 = vld [vmem:[#allocation82_spill] sm:$0xff] }
 0x502   :  { %v7798_v63 = vpack.c.bf16 %v3159_v34, %v3156_v60  ;;  %v8406_v60 = vld [vmem:[#allocation65_spill] sm:$0xff] }
 0x503   :  { %4986 = vmatpush3.bf16.msra.mxu0 %v8358_v46  ;;  %v3211_v6 = vrot.slane %v7796_v49, 4  ;;  %v8410_v46 = vld [vmem:[#allocation90_spill] sm:$0xff] }
 0x504   :  { %4964 = vmatpush3.bf16.msra.mxu1 %v8359_v41  ;;  %4987 = vmatprep.subr.bf16.mxu0 %v8360_v23  ;;  %v3208_v5 = vrot.slane %v7798_v63, 4  ;;  %v8411_v41 = vld [vmem:[#allocation74_spill] sm:$0xff]  ;;  %v8412_v23 = vld [vmem:[#allocation99_spill] sm:$0xff] }
 0x505   :  { %4965 = vmatprep.subr.bf16.mxu1 %v8361_v62  ;;  %v8413_v62 = vld [vmem:[#allocation83_spill] sm:$0xff] }
 0x506   :  { %v5407_v37 = vpop.f32.mrb[76].mxu0 }
 0x507   :  { %4988 = vmatpush3.bf16.msra.mxu0 %v8362_v58  ;;  %v3172_v33 = vpop.f32.mrb[77].mxu0  ;;  %v8415_v58 = vld [vmem:[#allocation75_spill] sm:$0xff] }
 0x508   :  { %4966 = vmatpush3.bf16.msra.mxu1 %v8363_v35  ;;  %4989 = vmatprep.subr.bf16.mxu0 %v8364_v43  ;;  %v5408_v51 = vpop.f32.mrb[78].mxu0  ;;  %v8418_v35 = vld [vmem:[#allocation92_spill] sm:$0xff]  ;;  %v8420_v43 = vld [vmem:[#allocation101_spill] sm:$0xff] }
 0x509   :  { %4967 = vmatprep.subr.bf16.mxu1 %v8365_v50  ;;  %v7808_v57 = vpack.c.bf16 %v5408_v51, %v5407_v37  ;;  %v3175_v53 = vpop.f32.mrb[79].mxu0  ;;  %v8414_v37 = vld [vmem:[#allocation91_spill] sm:$0xff]  ;;  %v8421_v51 = vld [vmem:[#allocation85_spill] sm:$0xff] }
 0x50a   :  { %v7810_v31 = vpack.c.bf16 %v3175_v53, %v3172_v33  ;;  %v8416_v33 = vld [vmem:[#allocation100_spill] sm:$0xff]  ;;  %v8422_v50 = vld [vmem:[#allocation93_spill] sm:$0xff] }
 0x50b   :  { %4990 = vmatpush3.bf16.msra.mxu0 %v8366_v48  ;;  %v3217_v34 = vrot.slane %v7808_v57, 4  ;;  %v8423_v53 = vld [vmem:[#allocation77_spill] sm:$0xff]  ;;  %v8424_v48 = vld [vmem:[#allocation102_spill] sm:$0xff] }
 0x50c   :  { %4968 = vmatpush3.bf16.msra.mxu1 %v8367_v54  ;;  %4991 = vmatprep.subr.bf16.mxu0 %v8368_v42  ;;  %v3214_v55 = vrot.slane %v7810_v31, 4  ;;  %v8425_v54 = vld [vmem:[#allocation86_spill] sm:$0xff] }
 0x50d   :  { %4969 = vmatprep.subr.bf16.mxu1 %v8369_v59  ;;  %v8426_v42 = vld [vmem:[#allocation94_spill] sm:$0xff] }
 0x50e   :  { %v8427_v59 = vld [vmem:[#allocation78_spill] sm:$0xff] }
 0x50f   :  { %4992 = vmatpush3.bf16.msra.mxu0 %v8370_v52  ;;  %v8428_v52 = vld [vmem:[#allocation103_spill] sm:$0xff] }
 0x510   :  { %4970 = vmatpush3.bf16.msra.mxu1 %v8371_v36  ;;  %4993 = vmatprep.subr.bf16.mxu0 %v8372_v8  ;;  %v8429_v36 = vld [vmem:[#allocation87_spill] sm:$0xff] }
 0x511   :  { %4971 = vmatprep.subr.bf16.mxu1 %v8373_v0  ;;  %v8430_v8 = vld [vmem:[#allocation95_spill] sm:$0xff] }
 0x512   :  { %v8431_v0 = vld [vmem:[#allocation79_spill] sm:$0xff] }
 0x513   :  { %4994 = vmatpush3.bf16.msra.mxu0 %v8374_v1  ;;  %v8432_v1 = vld [vmem:[#allocation104_spill] sm:$0xff] }
 0x514   :  { %4972 = vmatpush3.bf16.msra.mxu1 %v8375_v2  ;;  %5023 = vmatprep.subr.bf16.mxu0 %v8376_v3  ;;  %v8433_v2 = vld [vmem:[#allocation88_spill] sm:$0xff] }
 0x515   :  { %5001 = vmatprep.subr.bf16.mxu1 %v8377_v4  ;;  %v8434_v3 = vld [vmem:[#allocation96_spill] sm:$0xff] }
 0x516   :  { %3500 = vmatmul.mubr.bf16.vlgmr.msra.gmra.mrb[84].mxu0 %v3190_v26  ;;  %v8395_v26 = vld [vmem:[#allocation46_spill] sm:$0xff]  ;;  %v8435_v4 = vld [vmem:[#allocation80_spill] sm:$0xff] }
 0x517   :  { %3460 = vmatmul.mubr.bf16.vlgmr.msra.gmra.mrb[84].mxu1 %v3189_v28  ;;  %5024 = vmatpush3.bf16.msra.mxu0 %v8378_v9  ;;  %v8397_v28 = vld [vmem:[#allocation55_spill] sm:$0xff]  ;;  %v8438_v9 = vld [vmem:[#allocation97_spill] sm:$0xff] }
 0x518   :  { %5002 = vmatpush3.bf16.msra.mxu1 %v8379_v10  ;;  %5025 = vmatprep.subr.bf16.mxu0 %v8380_v7  ;;  %v8439_v10 = vld [vmem:[#allocation81_spill] sm:$0xff] }
 0x519   :  { %5003 = vmatprep.subr.bf16.mxu1 %v8381_v11  ;;  %3539 = vmatprep.mubr.bf16.mxu1 %v3208_v5  ;;  %v8436_v5 = vld [vmem:[#allocation105_spill] sm:$0xff] }
 0x51a   :  { %3579 = vmatprep.mubr.bf16.mxu0 %v3211_v6  ;;  %v8437_v6 = vld [vmem:[#allocation89_spill] sm:$0xff] }
 0x51b   :  { %5026 = vmatpush3.bf16.msra.mxu0 %v8382_v12 }
 0x51c   :  { %5004 = vmatpush3.bf16.msra.mxu1 %v8383_v13  ;;  %5027 = vmatprep.subr.bf16.mxu0 %v8384_v14 }
 0x51d   :  { %5005 = vmatprep.subr.bf16.mxu1 %v8385_v15 }
 0x51f   :  { %5028 = vmatpush3.bf16.msra.mxu0 %v8386_v16 }
 0x520   :  { %5006 = vmatpush3.bf16.msra.mxu1 %v8387_v17  ;;  %5029 = vmatprep.subr.bf16.mxu0 %v8388_v18 }
 0x521   :  { %5007 = vmatprep.subr.bf16.mxu1 %v8389_v19 }
 0x523   :  { %5030 = vmatpush3.bf16.msra.mxu0 %v8390_v20 }
 0x524   :  { %5008 = vmatpush3.bf16.msra.mxu1 %v8391_v21  ;;  %5031 = vmatprep.subr.bf16.mxu0 %v8392_v22 }
 0x525   :  { %5009 = vmatprep.subr.bf16.mxu1 %v8393_v24 }
 0x527   :  { %5032 = vmatpush3.bf16.msra.mxu0 %v8394_v25 }
 0x528   :  { %5010 = vmatpush3.bf16.msra.mxu1 %v8395_v26  ;;  %5033 = vmatprep.subr.bf16.mxu0 %v8396_v27 }
 0x529   :  { %5011 = vmatprep.subr.bf16.mxu1 %v8397_v28 }
 0x52b   :  { %5034 = vmatpush3.bf16.msra.mxu0 %v8398_v29 }
 0x52c   :  { %5012 = vmatpush3.bf16.msra.mxu1 %v8399_v30  ;;  %5035 = vmatprep.subr.bf16.mxu0 %v8400_v40 }
 0x52d   :  { %5013 = vmatprep.subr.bf16.mxu1 %v8401_v38 }
 0x52f   :  { %5036 = vmatpush3.bf16.msra.mxu0 %v8402_v56 }
 0x530   :  { %5014 = vmatpush3.bf16.msra.mxu1 %v8403_v47  ;;  %5037 = vmatprep.subr.bf16.mxu0 %v8404_v44 }
 0x531   :  { %5015 = vmatprep.subr.bf16.mxu1 %v8405_v45 }
 0x533   :  { %5038 = vmatpush3.bf16.msra.mxu0 %v8406_v60 }
 0x534   :  { %5016 = vmatpush3.bf16.msra.mxu1 %v8407_v61  ;;  %5067 = vmatprep.subr.bf16.mxu0 %v8408_v32 }
 0x535   :  { %5045 = vmatprep.subr.bf16.mxu1 %v8409_v39 }
 0x536   :  { %3580 = vmatmul.mubr.bf16.vlgmr.msra.gmra.mrb[88].mxu0 %v7796_v49  ;;  %v8417_v49 = vld [vmem:[#allocation84_spill] sm:$0xff] }
 0x537   :  { %3540 = vmatmul.mubr.bf16.vlgmr.msra.gmra.mrb[88].mxu1 %v7798_v63  ;;  %5068 = vmatpush3.bf16.msra.mxu0 %v8410_v46  ;;  %v8419_v63 = vld [vmem:[#allocation76_spill] sm:$0xff] }
 0x538   :  { %5046 = vmatpush3.bf16.msra.mxu1 %v8411_v41  ;;  %5069 = vmatprep.subr.bf16.mxu0 %v8412_v23 }
 0x539   :  { %5047 = vmatprep.subr.bf16.mxu1 %v8413_v62  ;;  %3619 = vmatprep.mubr.bf16.mxu1 %v3214_v55 }
 0x53a   :  { %3659 = vmatprep.mubr.bf16.mxu0 %v3217_v34 }
 0x53b   :  { %5070 = vmatpush3.bf16.msra.mxu0 %v8414_v37 }
 0x53c   :  { %5048 = vmatpush3.bf16.msra.mxu1 %v8415_v58  ;;  %5071 = vmatprep.subr.bf16.mxu0 %v8416_v33 }
 0x53d   :  { %5049 = vmatprep.subr.bf16.mxu1 %v8417_v49 }
 0x53f   :  { %5072 = vmatpush3.bf16.msra.mxu0 %v8418_v35 }
 0x540   :  { %5050 = vmatpush3.bf16.msra.mxu1 %v8419_v63  ;;  %5073 = vmatprep.subr.bf16.mxu0 %v8420_v43 }
 0x541   :  { %5051 = vmatprep.subr.bf16.mxu1 %v8421_v51 }
 0x543   :  { %5074 = vmatpush3.bf16.msra.mxu0 %v8422_v50  ;;  %v4604_v50 = vld [vmem:[%s8090_s10] ss:$0 sm:$0xff] }
 0x544   :  { %5052 = vmatpush3.bf16.msra.mxu1 %v8423_v53  ;;  %5075 = vmatprep.subr.bf16.mxu0 %v8424_v48  ;;  %v4605_v48 = vld [vmem:[%s8091_s11] ss:$0 sm:$0xff] }
 0x545   :  { %5053 = vmatprep.subr.bf16.mxu1 %v8425_v54 }
 0x547   :  { %5076 = vmatpush3.bf16.msra.mxu0 %v8426_v42 }
 0x548   :  { %5054 = vmatpush3.bf16.msra.mxu1 %v8427_v59  ;;  %5077 = vmatprep.subr.bf16.mxu0 %v8428_v52 }
 0x549   :  { %5055 = vmatprep.subr.bf16.mxu1 %v8429_v36 }
 0x54b   :  { %5078 = vmatpush3.bf16.msra.mxu0 %v8430_v8 }
 0x54c   :  { %5056 = vmatpush3.bf16.msra.mxu1 %v8431_v0  ;;  %5079 = vmatprep.subr.bf16.mxu0 %v8432_v1 }
 0x54d   :  { %5057 = vmatprep.subr.bf16.mxu1 %v8433_v2 }
 0x54f   :  { %5080 = vmatpush3.bf16.msra.mxu0 %v8434_v3 }
 0x550   :  { %5058 = vmatpush3.bf16.msra.mxu1 %v8435_v4  ;;  %5081 = vmatprep.subr.bf16.mxu0 %v8436_v5 }
 0x551   :  { %5059 = vmatprep.subr.bf16.mxu1 %v8437_v6 }
 0x553   :  { %5082 = vmatpush3.bf16.msra.mxu0 %v8438_v9 }
 0x554   :  { %5060 = vmatpush3.bf16.msra.mxu1 %v8439_v10 }
 0x556   :  { %3660 = vmatmul.mubr.bf16.vlgmr.msra.gmra.mrb[92].mxu0 %v7808_v57 }
 0x557   :  { %3620 = vmatmul.mubr.bf16.vlgmr.msra.gmra.mrb[92].mxu1 %v7810_v31 }
 0x5c9   :  { %v4951_v7 = vpop.f32.mrb[80].mxu0 }
 0x5ca   :  { %v4929_v11 = vpop.f32.mrb[80].mxu1  ;;  %v4952_v12 = vpop.f32.mrb[81].mxu0 }
 0x5cb   :  { %v4953_v13 = vadd.f32 %v4952_v12, %v4951_v7  ;;  %v4930_v14 = vpop.f32.mrb[81].mxu1  ;;  %v4954_v15 = vpop.f32.mrb[82].mxu0 }
 0x5cc   :  { %v4931_v16 = vadd.f32 %v4930_v14, %v4929_v11  ;;  %v4932_v17 = vpop.f32.mrb[82].mxu1  ;;  %v4955_v18 = vpop.f32.mrb[83].mxu0 }
 0x5cd   :  { %v4933_v19 = vpop.f32.mrb[83].mxu1 }
 0x5ce   :  { %v3422_v20 = vadd.f32 %v4953_v13, %v4931_v16 }
 0x5e9   :  { %v4995_v21 = vpop.f32.mrb[84].mxu0 }
 0x5ea   :  { %v4973_v22 = vpop.f32.mrb[84].mxu1  ;;  %v4996_v24 = vpop.f32.mrb[85].mxu0 }
 0x5eb   :  { %v4997_v25 = vadd.f32 %v4996_v24, %v4995_v21  ;;  %v4974_v26 = vpop.f32.mrb[85].mxu1  ;;  %v4998_v27 = vpop.f32.mrb[86].mxu0 }
 0x5ec   :  { %v4975_v57 = vadd.f32 %v4974_v26, %v4973_v22  ;;  %v4976_v28 = vpop.f32.mrb[86].mxu1  ;;  %v4999_v31 = vpop.f32.mrb[87].mxu0 }
 0x5ed   :  { %v4977_v29 = vpop.f32.mrb[87].mxu1 }
 0x5ee   :  { %v3462_v30 = vadd.f32 %v4975_v57, %v3422_v20 }
 0x5f0   :  { %v3502_v40 = vadd.f32 %v4997_v25, %v3462_v30 }
 0x609   :  { %v5039_v38 = vpop.f32.mrb[88].mxu0 }
 0x60a   :  { %v5017_v56 = vpop.f32.mrb[88].mxu1  ;;  %v5040_v47 = vpop.f32.mrb[89].mxu0 }
 0x60b   :  { %v5041_v44 = vadd.f32 %v5040_v47, %v5039_v38  ;;  %v5018_v45 = vpop.f32.mrb[89].mxu1  ;;  %v5042_v60 = vpop.f32.mrb[90].mxu0 }
 0x60c   :  { %v5019_v61 = vadd.f32 %v5018_v45, %v5017_v56  ;;  %v5020_v32 = vpop.f32.mrb[90].mxu1  ;;  %v5043_v39 = vpop.f32.mrb[91].mxu0 }
 0x60d   :  { %v5021_v55 = vpop.f32.mrb[91].mxu1 }
 0x60e   :  { %v3542_v34 = vadd.f32 %v5019_v61, %v3502_v40 }
 0x610   :  { %v3582_v46 = vadd.f32 %v5041_v44, %v3542_v34 }
 0x629   :  { %v5083_v41 = vpop.f32.mrb[92].mxu0 }
 0x62a   :  { %v5061_v23 = vpop.f32.mrb[92].mxu1  ;;  %v5084_v62 = vpop.f32.mrb[93].mxu0 }
 0x62b   :  { %v5085_v37 = vadd.f32 %v5084_v62, %v5083_v41  ;;  %v5062_v58 = vpop.f32.mrb[93].mxu1  ;;  %v5086_v33 = vpop.f32.mrb[94].mxu0 }
 0x62c   :  { %v5063_v49 = vadd.f32 %v5062_v58, %v5061_v23  ;;  %v5064_v35 = vpop.f32.mrb[94].mxu1  ;;  %v5087_v63 = vpop.f32.mrb[95].mxu0 }
 0x62d   :  { %v5065_v43 = vpop.f32.mrb[95].mxu1 }
 0x62e   :  { %v3622_v51 = vadd.f32 %v5063_v49, %v3582_v46 }
 0x630   :  { %v3662_v53 = vadd.f32 %v5085_v37, %v3622_v51 }
 0x632   :  { %v3674_v54 = vmul.f32 %v4604_v50, %v3662_v53 }
 0x634   :  { %v3682_v42 = vadd.f32 %v4605_v48, %v3674_v54 }
 0x636   :  { %vm3683_vm5 = vcmp.gt.f32.partialorder %v3682_v42, 0.0  ;;  %v3684_v59 = vmul.f32 0.2, %v3682_v42 }
 0x638   :  { %v3685_v52 = vsel %vm3683_vm5, %v3682_v42, %v3684_v59 }
 0x639   :  { %v3686_v36 = vpack.c.bf16 %v3685_v52, %v3685_v52 }
 0x63a   :  { %5634 = dma.done.wait [#allocation4 + $0x1], 16384 }
 0x63b   :  { %5635 = vsyncadd [#allocation4 + $0x1], 4294950912  ;;  %vm3710_vm6 = vcmask 1043456   ;;  %v8440_v8 = vld [vmem:[#allocation130_spill] sm:$0xff]  ;;  %v8442_v2 = vld [vmem:[#allocation131_spill] sm:$0xff]  ;;  %vm3703_vm7 = vcmask 64512  }
 0x63c   :  { %5114 = vmatprep.subr.bf16.mxu0 %v8440_v8  ;;  %5435 = vmatprep.subr.msk.bf16.mxu1 %vm3710_vm6, %v3686_v36  ;;  %v3712_v0 = vsel %vm3710_vm6, %v3686_v36, 0  ;;  %v8441_v1 = vld [vmem:[#allocation122_spill] sm:$0xff]  ;;  %v8444_v4 = vld [vmem:[#allocation123_spill] sm:$0xff]  ;;  %v8445_v5 = vld [vmem:[#allocation132_spill] sm:$0xff]  ;;  %vm5637_vm8 = vmmov 0  }
 0x63d   :  { %5115 = vmatpush3.bf16.msra.mxu0 %v8441_v1  ;;  %5410 = vmatpush3.bf16.msra.mxu1 %v3712_v0  ;;  %v8443_v3 = vld [vmem:[#allocation114_spill] sm:$0xff]  ;;  %v5622_v6 = vld [vmem:[%s8092_s12] sm:$0xff]   ;;  %v8446_v10 = vld [vmem:[#allocation124_spill] sm:$0xff] }
 0x63e   :  { %5116 = vmatprep.subr.bf16.mxu0 %v8442_v2  ;;  %5092 = vmatprep.subr.bf16.mxu1 %v8443_v3  ;;  %v5623_v9 = vld [vmem:[%s8092_s12 + $0x8] sm:$0xff]   ;;  %v8447_v7 = vld [vmem:[#allocation133_spill] sm:$0xff]  ;;  %v8449_v12 = vld [vmem:[#allocation115_spill] sm:$0xff] }
 0x63f   :  { %5411 = vmatprep.mubr.msk.bf16.mxu1 %vm3703_vm7, %v5622_v6  ;;  %v8448_v11 = vld [vmem:[#allocation106_spill] sm:$0xff]  ;;  %v8450_v13 = vld [vmem:[#allocation125_spill] sm:$0xff]  ;;  %v8452_v15 = vld [vmem:[#allocation107_spill] sm:$0xff] }
 0x640   :  { %5412 = vmatmul.mubr.msk.bf16.vlgmr.msra.gmra.mrb[96].mxu1 %vm3703_vm7, %v5623_v9  ;;  %v8451_v14 = vld [vmem:[#allocation134_spill] sm:$0xff]  ;;  %v8453_v16 = vld [vmem:[#allocation116_spill] sm:$0xff]  ;;  %v8455_v18 = vld [vmem:[#allocation135_spill] sm:$0xff] }
 0x641   :  { %5117 = vmatpush3.bf16.msra.mxu0 %v8444_v4  ;;  %5093 = vmatpush3.bf16.msra.mxu1 %v8448_v11  ;;  %v8454_v17 = vld [vmem:[#allocation126_spill] sm:$0xff]  ;;  %v8456_v19 = vld [vmem:[#allocation108_spill] sm:$0xff]  ;;  %v8457_v20 = vld [vmem:[#allocation117_spill] sm:$0xff] }
 0x642   :  { %5118 = vmatprep.subr.bf16.mxu0 %v8445_v5  ;;  %5094 = vmatprep.subr.bf16.mxu1 %v8449_v12  ;;  %v8458_v21 = vld [vmem:[#allocation127_spill] sm:$0xff]  ;;  %v8459_v22 = vld [vmem:[#allocation136_spill] sm:$0xff]  ;;  %v8460_v24 = vld [vmem:[#allocation109_spill] sm:$0xff] }
 0x643   :  { %v8461_v25 = vld [vmem:[#allocation118_spill] sm:$0xff]  ;;  %v8462_v26 = vld [vmem:[#allocation128_spill] sm:$0xff]  ;;  %v8463_v27 = vld [vmem:[#allocation137_spill] sm:$0xff] }
 0x644   :  { %v8464_v57 = vld [vmem:[#allocation110_spill] sm:$0xff]  ;;  %v8465_v28 = vld [vmem:[#allocation119_spill] sm:$0xff]  ;;  %v8466_v31 = vld [vmem:[#allocation129_spill] sm:$0xff] }
 0x645   :  { %5119 = vmatpush3.bf16.msra.mxu0 %v8446_v10  ;;  %5095 = vmatpush3.bf16.msra.mxu1 %v8452_v15  ;;  %v8467_v29 = vld [vmem:[#allocation162_spill] sm:$0xff]  ;;  %v8468_v30 = vld [vmem:[#allocation111_spill] sm:$0xff]  ;;  %v8469_v40 = vld [vmem:[#allocation120_spill] sm:$0xff] }
 0x646   :  { %5120 = vmatprep.subr.bf16.mxu0 %v8447_v7  ;;  %5096 = vmatprep.subr.bf16.mxu1 %v8453_v16  ;;  %v8470_v38 = vld [vmem:[#allocation112_spill] sm:$0xff]  ;;  %v8471_v56 = vld [vmem:[#allocation121_spill] sm:$0xff]  ;;  %v8473_v44 = vld [vmem:[#allocation146_spill] sm:$0xff] }
 0x647   :  { %v8472_v47 = vld [vmem:[#allocation113_spill] sm:$0xff]  ;;  %v8474_v37 = vld [vmem:[#allocation138_spill] sm:$0xff]  ;;  %v8476_v33 = vld [vmem:[#allocation147_spill] sm:$0xff] }
 0x648   :  { %v8475_v58 = vld [vmem:[#allocation154_spill] sm:$0xff]  ;;  %v8477_v49 = vld [vmem:[#allocation163_spill] sm:$0xff]  ;;  %v8480_v43 = vld [vmem:[#allocation148_spill] sm:$0xff] }
 0x649   :  { %5121 = vmatpush3.bf16.msra.mxu0 %v8450_v13  ;;  %5097 = vmatpush3.bf16.msra.mxu1 %v8456_v19  ;;  %v8478_v35 = vld [vmem:[#allocation139_spill] sm:$0xff]  ;;  %v8481_v51 = vld [vmem:[#allocation164_spill] sm:$0xff]  ;;  %v8484_v48 = vld [vmem:[#allocation149_spill] sm:$0xff] }
 0x64a   :  { %5122 = vmatprep.subr.bf16.mxu0 %v8451_v14  ;;  %5098 = vmatprep.subr.bf16.mxu1 %v8457_v20  ;;  %v8479_v63 = vld [vmem:[#allocation155_spill] sm:$0xff]  ;;  %v8482_v50 = vld [vmem:[#allocation140_spill] sm:$0xff]  ;;  %v8485_v54 = vld [vmem:[#allocation165_spill] sm:$0xff] }
 0x64b   :  { %v8483_v53 = vld [vmem:[#allocation156_spill] sm:$0xff]  ;;  %v8486_v42 = vld [vmem:[#allocation141_spill] sm:$0xff]  ;;  %v8488_v52 = vld [vmem:[#allocation150_spill] sm:$0xff] }
 0x64c   :  { %v8487_v59 = vld [vmem:[#allocation157_spill] sm:$0xff]  ;;  %v8489_v36 = vld [vmem:[#allocation166_spill] sm:$0xff]  ;;  %v8492_v1 = vld [vmem:[#allocation151_spill] sm:$0xff] }
 0x64d   :  { %5123 = vmatpush3.bf16.msra.mxu0 %v8454_v17  ;;  %5099 = vmatpush3.bf16.msra.mxu1 %v8460_v24  ;;  %v8490_v8 = vld [vmem:[#allocation142_spill] sm:$0xff]  ;;  %v8493_v2 = vld [vmem:[#allocation167_spill] sm:$0xff]  ;;  %v8496_v5 = vld [vmem:[#allocation152_spill] sm:$0xff] }
 0x64e   :  { %5124 = vmatprep.subr.bf16.mxu0 %v8455_v18  ;;  %5100 = vmatprep.subr.bf16.mxu1 %v8461_v25  ;;  %v8491_v0 = vld [vmem:[#allocation158_spill] sm:$0xff]  ;;  %v8494_v3 = vld [vmem:[#allocation143_spill] sm:$0xff]  ;;  %v8497_v6 = vld [vmem:[#allocation168_spill] sm:$0xff] }
 0x64f   :  { %v8495_v4 = vld [vmem:[#allocation159_spill] sm:$0xff]  ;;  %v8498_v9 = vld [vmem:[#allocation144_spill] sm:$0xff]  ;;  %v8500_v7 = vld [vmem:[#allocation153_spill] sm:$0xff] }
 0x650   :  { %v8499_v10 = vld [vmem:[#allocation160_spill] sm:$0xff]  ;;  %v8501_v11 = vld [vmem:[#allocation169_spill] sm:$0xff]  ;;  %v8504_v16 = vld [vmem:[#allocation178_spill] sm:$0xff] }
 0x651   :  { %5125 = vmatpush3.bf16.msra.mxu0 %v8458_v21  ;;  %5101 = vmatpush3.bf16.msra.mxu1 %v8464_v57  ;;  %v8502_v12 = vld [vmem:[#allocation145_spill] sm:$0xff]  ;;  %v8505_v17 = vld [vmem:[#allocation194_spill] sm:$0xff]  ;;  %v8509_v24 = vld [vmem:[#allocation195_spill] sm:$0xff] }
 0x652   :  { %5126 = vmatprep.subr.bf16.mxu0 %v8459_v22  ;;  %5102 = vmatprep.subr.bf16.mxu1 %v8465_v28  ;;  %v8503_v13 = vld [vmem:[#allocation161_spill] sm:$0xff]  ;;  %v8506_v20 = vld [vmem:[#allocation170_spill] sm:$0xff]  ;;  %v8508_v22 = vld [vmem:[#allocation179_spill] sm:$0xff] }
 0x653   :  { %v8507_v21 = vld [vmem:[#allocation186_spill] sm:$0xff]  ;;  %v8510_v25 = vld [vmem:[#allocation171_spill] sm:$0xff]  ;;  %v8513_v57 = vld [vmem:[#allocation196_spill] sm:$0xff] }
 0x654   :  { %v8514_v28 = vld [vmem:[#allocation172_spill] sm:$0xff] }
 0x655   :  { %5127 = vmatpush3.bf16.msra.mxu0 %v8462_v26  ;;  %5103 = vmatpush3.bf16.msra.mxu1 %v8468_v30  ;;  %v8511_v26 = vld [vmem:[#allocation187_spill] sm:$0xff]  ;;  %v8517_v30 = vld [vmem:[#allocation197_spill] sm:$0xff] }
 0x656   :  { %5128 = vmatprep.subr.bf16.mxu0 %v8463_v27  ;;  %5104 = vmatprep.subr.bf16.mxu1 %v8469_v40  ;;  %v8512_v27 = vld [vmem:[#allocation180_spill] sm:$0xff]  ;;  %v8518_v40 = vld [vmem:[#allocation173_spill] sm:$0xff] }
 0x659   :  { %5129 = vmatpush3.bf16.msra.mxu0 %v8466_v31  ;;  %5105 = vmatpush3.bf16.msra.mxu1 %v8470_v38  ;;  %v8515_v31 = vld [vmem:[#allocation188_spill] sm:$0xff]  ;;  %v8519_v38 = vld [vmem:[#allocation189_spill] sm:$0xff] }
 0x65a   :  { %5158 = vmatprep.subr.bf16.mxu0 %v8467_v29  ;;  %5106 = vmatprep.subr.bf16.mxu1 %v8471_v56  ;;  %v8516_v29 = vld [vmem:[#allocation181_spill] sm:$0xff]  ;;  %v8520_v56 = vld [vmem:[#allocation182_spill] sm:$0xff] }
 0x65d   :  { %5107 = vmatpush3.bf16.msra.mxu1 %v8472_v47  ;;  %v8521_v47 = vld [vmem:[#allocation198_spill] sm:$0xff] }
 0x65e   :  { %5136 = vmatprep.subr.bf16.mxu1 %v8473_v44  ;;  %v8522_v44 = vld [vmem:[#allocation174_spill] sm:$0xff] }
 0x713   :  { %v5413_v45 = vpop.f32.mrb[96].mxu1 }
 0x714   :  { %v3748_v60 = vpop.f32.mrb[97].mxu1 }
 0x715   :  { %v5414_v61 = vpop.f32.mrb[98].mxu1 }
 0x716   :  { %v7940_v32 = vpack.c.bf16 %v5414_v61, %v5413_v45  ;;  %v3751_v39 = vpop.f32.mrb[99].mxu1  ;;  %v8523_v45 = vld [vmem:[#allocation190_spill] sm:$0xff]  ;;  %v8525_v61 = vld [vmem:[#allocation199_spill] sm:$0xff] }
 0x717   :  { %v3763_v55 = vpack.c.bf16 %v3751_v39, %v3748_v60  ;;  %v8524_v60 = vld [vmem:[#allocation183_spill] sm:$0xff] }
 0x718   :  { %v3781_v18 = vrot.slane %v7940_v32, 1  ;;  %v3785_v19 = vrot.slane %v7940_v32, 3  ;;  %v8526_v39 = vld [vmem:[#allocation175_spill] sm:$0xff] }
 0x719   :  { %v3766_v34 = vrot.slane %v3763_v55, 1  ;;  %v3770_v46 = vrot.slane %v3763_v55, 3  ;;  %v3768_v41 = vrot.slane %v3763_v55, 2  ;;  %v3774_v23 = vrot.slane %v3763_v55, 5 }
 0x71a   :  { %v3778_v62 = vrot.slane %v3763_v55, 7  ;;  %v3772_v14 = vrot.slane %v3763_v55, 4  ;;  %v3776_v15 = vrot.slane %v3763_v55, 6 }
 0x71b   :  { %3955 = vmatprep.mubr.bf16.mxu1 %v3766_v34  ;;  %3995 = vmatprep.mubr.bf16.mxu0 %v3770_v46  ;;  %v8528_v34 = vld [vmem:[#allocation184_spill] sm:$0xff] }
 0x71c   :  { %3956 = vmatmul.mubr.bf16.vlgmr.msra.gmra.mrb[100].mxu1 %v3763_v55  ;;  %3996 = vmatmul.mubr.bf16.vlgmr.msra.gmra.mrb[96].mxu0 %v3768_v41  ;;  %v8527_v55 = vld [vmem:[#allocation191_spill] sm:$0xff]  ;;  %v8529_v46 = vld [vmem:[#allocation200_spill] sm:$0xff] }
 0x71d   :  { %5137 = vmatpush3.bf16.msra.mxu1 %v8474_v37  ;;  %5159 = vmatpush3.bf16.msra.mxu0 %v8475_v58  ;;  %v8530_v41 = vld [vmem:[#allocation176_spill] sm:$0xff]  ;;  %v8533_v37 = vld [vmem:[#allocation201_spill] sm:$0xff] }
 0x71e   :  { %4035 = vmatprep.mubr.bf16.mxu1 %v3774_v23  ;;  %4075 = vmatprep.mubr.bf16.mxu0 %v3778_v62  ;;  %v8531_v23 = vld [vmem:[#allocation192_spill] sm:$0xff]  ;;  %v8532_v62 = vld [vmem:[#allocation185_spill] sm:$0xff] }
 0x71f   :  { %5138 = vmatprep.subr.bf16.mxu1 %v8476_v33  ;;  %5160 = vmatprep.subr.bf16.mxu0 %v8477_v49  ;;  %v8534_v58 = vld [vmem:[#allocation177_spill] sm:$0xff]  ;;  %v8536_v49 = vld [vmem:[#allocation210_spill] sm:$0xff] }
 0x720   :  { %v8535_v33 = vld [vmem:[#allocation193_spill] sm:$0xff] }
 0x721   :  { %5139 = vmatpush3.bf16.msra.mxu1 %v8478_v35  ;;  %5161 = vmatpush3.bf16.msra.mxu0 %v8479_v63  ;;  %v3783_v35 = vrot.slane %v7940_v32, 2  ;;  %v8537_v63 = vld [vmem:[#allocation226_spill] sm:$0xff] }
 0x722   :  { %5140 = vmatprep.subr.bf16.mxu1 %v8480_v43  ;;  %5162 = vmatprep.subr.bf16.mxu0 %v8481_v51  ;;  %v3789_v43 = vrot.slane %v7940_v32, 5  ;;  %v8538_v51 = vld [vmem:[#allocation202_spill] sm:$0xff] }
 0x725   :  { %5141 = vmatpush3.bf16.msra.mxu1 %v8482_v50  ;;  %5163 = vmatpush3.bf16.msra.mxu0 %v8483_v53  ;;  %v3793_v50 = vrot.slane %v7940_v32, 7  ;;  %v8539_v53 = vld [vmem:[#allocation218_spill] sm:$0xff] }
 0x726   :  { %5142 = vmatprep.subr.bf16.mxu1 %v8484_v48  ;;  %5164 = vmatprep.subr.bf16.mxu0 %v8485_v54  ;;  %v8540_v48 = vld [vmem:[#allocation211_spill] sm:$0xff] }
 0x727   :  { %v8541_v54 = vld [vmem:[#allocation227_spill] sm:$0xff] }
 0x729   :  { %5143 = vmatpush3.bf16.msra.mxu1 %v8486_v42  ;;  %5165 = vmatpush3.bf16.msra.mxu0 %v8487_v59  ;;  %v8542_v42 = vld [vmem:[#allocation203_spill] sm:$0xff] }
 0x72a   :  { %5144 = vmatprep.subr.bf16.mxu1 %v8488_v52  ;;  %5166 = vmatprep.subr.bf16.mxu0 %v8489_v36  ;;  %v8543_v59 = vld [vmem:[#allocation219_spill] sm:$0xff]  ;;  %v8544_v52 = vld [vmem:[#allocation212_spill] sm:$0xff] }
 0x72b   :  { %v8545_v36 = vld [vmem:[#allocation228_spill] sm:$0xff] }
 0x72d   :  { %5145 = vmatpush3.bf16.msra.mxu1 %v8490_v8  ;;  %5167 = vmatpush3.bf16.msra.mxu0 %v8491_v0  ;;  %v8546_v8 = vld [vmem:[#allocation204_spill] sm:$0xff] }
 0x72e   :  { %5146 = vmatprep.subr.bf16.mxu1 %v8492_v1  ;;  %5168 = vmatprep.subr.bf16.mxu0 %v8493_v2  ;;  %v8547_v0 = vld [vmem:[#allocation220_spill] sm:$0xff]  ;;  %v8548_v1 = vld [vmem:[#allocation213_spill] sm:$0xff] }
 0x72f   :  { %v8549_v2 = vld [vmem:[#allocation229_spill] sm:$0xff] }
 0x731   :  { %5147 = vmatpush3.bf16.msra.mxu1 %v8494_v3  ;;  %5169 = vmatpush3.bf16.msra.mxu0 %v8495_v4  ;;  %v8550_v3 = vld [vmem:[#allocation205_spill] sm:$0xff] }
 0x732   :  { %5148 = vmatprep.subr.bf16.mxu1 %v8496_v5  ;;  %5170 = vmatprep.subr.bf16.mxu0 %v8497_v6  ;;  %v8551_v4 = vld [vmem:[#allocation221_spill] sm:$0xff]  ;;  %v8552_v5 = vld [vmem:[#allocation214_spill] sm:$0xff] }
 0x733   :  { %v8553_v6 = vld [vmem:[#allocation230_spill] sm:$0xff] }
 0x735   :  { %5149 = vmatpush3.bf16.msra.mxu1 %v8498_v9  ;;  %5171 = vmatpush3.bf16.msra.mxu0 %v8499_v10  ;;  %v8554_v9 = vld [vmem:[#allocation206_spill] sm:$0xff] }
 0x736   :  { %5150 = vmatprep.subr.bf16.mxu1 %v8500_v7  ;;  %5172 = vmatprep.subr.bf16.mxu0 %v8501_v11  ;;  %v8555_v10 = vld [vmem:[#allocation222_spill] sm:$0xff]  ;;  %v8556_v7 = vld [vmem:[#allocation215_spill] sm:$0xff] }
 0x737   :  { %v8557_v11 = vld [vmem:[#allocation231_spill] sm:$0xff] }
 0x739   :  { %5151 = vmatpush3.bf16.msra.mxu1 %v8502_v12  ;;  %5173 = vmatpush3.bf16.msra.mxu0 %v8503_v13  ;;  %v8558_v12 = vld [vmem:[#allocation207_spill] sm:$0xff] }
 0x73a   :  { %5180 = vmatprep.subr.bf16.mxu1 %v8504_v16  ;;  %5202 = vmatprep.subr.bf16.mxu0 %v8505_v17  ;;  %v8559_v13 = vld [vmem:[#allocation223_spill] sm:$0xff]  ;;  %v8562_v16 = vld [vmem:[#allocation208_spill] sm:$0xff] }
 0x73b   :  { %v8563_v17 = vld [vmem:[#allocation224_spill] sm:$0xff] }
 0x73c   :  { %4036 = vmatmul.mubr.bf16.vlgmr.msra.gmra.mrb[104].mxu1 %v3772_v14  ;;  %4076 = vmatmul.mubr.bf16.vlgmr.msra.gmra.mrb[100].mxu0 %v3776_v15  ;;  %v8560_v14 = vld [vmem:[#allocation216_spill] sm:$0xff] }
 0x73d   :  { %5181 = vmatpush3.bf16.msra.mxu1 %v8506_v20  ;;  %4115 = vmatprep.mubr.bf16.mxu1 %v3781_v18  ;;  %v8561_v15 = vld [vmem:[#allocation232_spill] sm:$0xff]  ;;  %v8564_v18 = vld [vmem:[#allocation217_spill] sm:$0xff] }
 0x73e   :  { %5203 = vmatpush3.bf16.msra.mxu0 %v8507_v21  ;;  %4155 = vmatprep.mubr.bf16.mxu0 %v3785_v19  ;;  %v8565_v19 = vld [vmem:[#allocation233_spill] sm:$0xff] }
 0x73f   :  { %5182 = vmatprep.subr.bf16.mxu1 %v8508_v22  ;;  %5204 = vmatprep.subr.bf16.mxu0 %v8509_v24  ;;  %v8566_v20 = vld [vmem:[#allocation209_spill] sm:$0xff]  ;;  %v3787_v22 = vrot.slane %v7940_v32, 4  ;;  %v3791_v24 = vrot.slane %v7940_v32, 6 }
 0x740   :  { %v8567_v21 = vld [vmem:[#allocation225_spill] sm:$0xff] }
 0x741   :  { %5183 = vmatpush3.bf16.msra.mxu1 %v8510_v25  ;;  %v5624_v25 = vld [vmem:[%s8096_s16] sm:$0xff]  }
 0x742   :  { %5205 = vmatpush3.bf16.msra.mxu0 %v8511_v26  ;;  %5184 = vmatprep.subr.bf16.mxu1 %v8512_v27  ;;  %v5636_v26 = vmov 0.0   ;;  %v5625_v27 = vld [vmem:[%s8096_s16 + $0x8] sm:$0xff]  }
 0x743   :  { %5206 = vmatprep.subr.bf16.mxu0 %v8513_v57  ;;  %v5626_v57 = vld [vmem:[%s8096_s16 + $0x10] sm:$0xff]  }
 0x745   :  { %5185 = vmatpush3.bf16.msra.mxu1 %v8514_v28  ;;  %v5628_v28 = vld [vmem:[%s8096_s16 + $0x20] sm:$0xff]  }
 0x746   :  { %5207 = vmatpush3.bf16.msra.mxu0 %v8515_v31  ;;  %5186 = vmatprep.subr.bf16.mxu1 %v8516_v29  ;;  %v5629_v31 = vld [vmem:[%s8096_s16 + $0x28] sm:$0xff]   ;;  %v5630_v29 = vld [vmem:[%s8096_s16 + $0x30] sm:$0xff]  }
 0x747   :  { %5208 = vmatprep.subr.bf16.mxu0 %v8517_v30  ;;  %v5631_v30 = vld [vmem:[%s8096_s16 + $0x38] sm:$0xff]  }
 0x749   :  { %5187 = vmatpush3.bf16.msra.mxu1 %v8518_v40 }
 0x74a   :  { %5209 = vmatpush3.bf16.msra.mxu0 %v8519_v38  ;;  %5188 = vmatprep.subr.bf16.mxu1 %v8520_v56 }
 0x74b   :  { %5210 = vmatprep.subr.bf16.mxu0 %v8521_v47 }
 0x74d   :  { %5189 = vmatpush3.bf16.msra.mxu1 %v8522_v44 }
 0x74e   :  { %5211 = vmatpush3.bf16.msra.mxu0 %v8523_v45  ;;  %5190 = vmatprep.subr.bf16.mxu1 %v8524_v60 }
 0x74f   :  { %5212 = vmatprep.subr.bf16.mxu0 %v8525_v61 }
 0x751   :  { %5191 = vmatpush3.bf16.msra.mxu1 %v8526_v39 }
 0x752   :  { %5213 = vmatpush3.bf16.msra.mxu0 %v8527_v55  ;;  %5192 = vmatprep.subr.bf16.mxu1 %v8528_v34 }
 0x753   :  { %5214 = vmatprep.subr.bf16.mxu0 %v8529_v46 }
 0x755   :  { %5193 = vmatpush3.bf16.msra.mxu1 %v8530_v41 }
 0x756   :  { %5215 = vmatpush3.bf16.msra.mxu0 %v8531_v23  ;;  %5194 = vmatprep.subr.bf16.mxu1 %v8532_v62 }
 0x757   :  { %5216 = vmatprep.subr.bf16.mxu0 %v8533_v37 }
 0x759   :  { %5195 = vmatpush3.bf16.msra.mxu1 %v8534_v58 }
 0x75a   :  { %5217 = vmatpush3.bf16.msra.mxu0 %v8535_v33  ;;  %5224 = vmatprep.subr.bf16.mxu1 %v8536_v49 }
 0x75b   :  { %5246 = vmatprep.subr.bf16.mxu0 %v8537_v63 }
 0x75c   :  { %4116 = vmatmul.mubr.bf16.vlgmr.msra.gmra.mrb[108].mxu1 %v7940_v32  ;;  %v5627_v32 = vld [vmem:[%s8096_s16 + $0x18] sm:$0xff]  }
 0x75d   :  { %4156 = vmatmul.mubr.bf16.vlgmr.msra.gmra.mrb[104].mxu0 %v3783_v35  ;;  %5225 = vmatpush3.bf16.msra.mxu1 %v8538_v51 }
 0x75e   :  { %4195 = vmatprep.mubr.bf16.mxu1 %v3789_v43  ;;  %5247 = vmatpush3.bf16.msra.mxu0 %v8539_v53 }
 0x75f   :  { %4235 = vmatprep.mubr.bf16.mxu0 %v3793_v50  ;;  %5226 = vmatprep.subr.bf16.mxu1 %v8540_v48 }
 0x760   :  { %5248 = vmatprep.subr.bf16.mxu0 %v8541_v54 }
 0x761   :  { %5227 = vmatpush3.bf16.msra.mxu1 %v8542_v42 }
 0x762   :  { %5249 = vmatpush3.bf16.msra.mxu0 %v8543_v59  ;;  %5228 = vmatprep.subr.bf16.mxu1 %v8544_v52 }
 0x763   :  { %5250 = vmatprep.subr.bf16.mxu0 %v8545_v36 }
 0x765   :  { %5229 = vmatpush3.bf16.msra.mxu1 %v8546_v8 }
 0x766   :  { %5251 = vmatpush3.bf16.msra.mxu0 %v8547_v0  ;;  %5230 = vmatprep.subr.bf16.mxu1 %v8548_v1 }
 0x767   :  { %5252 = vmatprep.subr.bf16.mxu0 %v8549_v2 }
 0x769   :  { %5231 = vmatpush3.bf16.msra.mxu1 %v8550_v3 }
 0x76a   :  { %5253 = vmatpush3.bf16.msra.mxu0 %v8551_v4  ;;  %5232 = vmatprep.subr.bf16.mxu1 %v8552_v5 }
 0x76b   :  { %5254 = vmatprep.subr.bf16.mxu0 %v8553_v6 }
 0x76d   :  { %5233 = vmatpush3.bf16.msra.mxu1 %v8554_v9 }
 0x76e   :  { %5255 = vmatpush3.bf16.msra.mxu0 %v8555_v10  ;;  %5234 = vmatprep.subr.bf16.mxu1 %v8556_v7 }
 0x76f   :  { %5256 = vmatprep.subr.bf16.mxu0 %v8557_v11 }
 0x771   :  { %5235 = vmatpush3.bf16.msra.mxu1 %v8558_v12 }
 0x772   :  { %5257 = vmatpush3.bf16.msra.mxu0 %v8559_v13  ;;  %5236 = vmatprep.subr.bf16.mxu1 %v8560_v14 }
 0x773   :  { %5258 = vmatprep.subr.bf16.mxu0 %v8561_v15  ;;  %v4610_v15 = vld [vmem:[%s8094_s14] ss:$0 sm:$0xff] }
 0x775   :  { %5237 = vmatpush3.bf16.msra.mxu1 %v8562_v16 }
 0x776   :  { %5259 = vmatpush3.bf16.msra.mxu0 %v8563_v17  ;;  %5238 = vmatprep.subr.bf16.mxu1 %v8564_v18  ;;  %v4611_v17 = vld [vmem:[%s8095_s15] ss:$0 sm:$0xff] }
 0x777   :  { %5260 = vmatprep.subr.bf16.mxu0 %v8565_v19 }
 0x779   :  { %5239 = vmatpush3.bf16.msra.mxu1 %v8566_v20 }
 0x77a   :  { %5261 = vmatpush3.bf16.msra.mxu0 %v8567_v21  ;;  %5415 = vmatprep.subr.bf16.mxu1 %v5636_v26 }
 0x77c   :  { %4196 = vmatmul.mubr.bf16.vlgmr.msra.gmra.mrb[112].mxu1 %v3787_v22 }
 0x77d   :  { %4236 = vmatmul.mubr.bf16.vlgmr.msra.gmra.mrb[108].mxu0 %v3791_v24  ;;  %5416 = vmatpush3.bf16.msra.mxu1 %v5624_v25  ;;  %v4612_v24 = vld [vmem:[%s8097_s17] ss:$0 sm:$0xff] }
 0x77e   :  { %5417 = vmatprep.subr.bf16.mxu1 %v5636_v26  ;;  %5431 = vmatprep.mubr.msk.bf16.mxu1 %vm5637_vm8, %v5636_v26 }
 0x781   :  { %5418 = vmatpush3.bf16.msra.mxu1 %v5625_v27 }
 0x782   :  { %5419 = vmatprep.subr.bf16.mxu1 %v5636_v26 }
 0x785   :  { %5420 = vmatpush3.bf16.msra.mxu1 %v5626_v57 }
 0x786   :  { %5421 = vmatprep.subr.bf16.mxu1 %v5636_v26 }
 0x789   :  { %5422 = vmatpush3.bf16.msra.mxu1 %v5627_v32 }
 0x78a   :  { %5423 = vmatprep.subr.bf16.mxu1 %v5636_v26 }
 0x78d   :  { %5424 = vmatpush3.bf16.msra.mxu1 %v5628_v28 }
 0x78e   :  { %5425 = vmatprep.subr.bf16.mxu1 %v5636_v26 }
 0x791   :  { %5426 = vmatpush3.bf16.msra.mxu1 %v5629_v31 }
 0x792   :  { %5427 = vmatprep.subr.bf16.mxu1 %v5636_v26 }
 0x795   :  { %5428 = vmatpush3.bf16.msra.mxu1 %v5630_v29 }
 0x796   :  { %5429 = vmatprep.subr.bf16.mxu1 %v5636_v26 }
 0x799   :  { %5430 = vmatpush3.bf16.msra.mxu1 %v5631_v30 }
 0x7ef   :  { %v5108_v40 = vpop.f32.mrb[100].mxu1  ;;  %v5130_v38 = vpop.f32.mrb[96].mxu0 }
 0x7f0   :  { %v5109_v56 = vpop.f32.mrb[101].mxu1  ;;  %v5131_v47 = vpop.f32.mrb[97].mxu0 }
 0x7f1   :  { %v5110_v44 = vadd.f32 %v5109_v56, %v5108_v40  ;;  %v5132_v45 = vadd.f32 %v5131_v47, %v5130_v38  ;;  %v5111_v60 = vpop.f32.mrb[102].mxu1  ;;  %v5133_v61 = vpop.f32.mrb[98].mxu0 }
 0x7f2   :  { %v5112_v39 = vpop.f32.mrb[103].mxu1  ;;  %v5134_v55 = vpop.f32.mrb[99].mxu0 }
 0x7f3   :  { %v3998_v34 = vadd.f32 %v5132_v45, %v5110_v44 }
 0x80f   :  { %v5152_v46 = vpop.f32.mrb[104].mxu1  ;;  %v5174_v41 = vpop.f32.mrb[100].mxu0 }
 0x810   :  { %v5153_v23 = vpop.f32.mrb[105].mxu1  ;;  %v5175_v62 = vpop.f32.mrb[101].mxu0 }
 0x811   :  { %v5154_v37 = vadd.f32 %v5153_v23, %v5152_v46  ;;  %v5176_v58 = vadd.f32 %v5175_v62, %v5174_v41  ;;  %v5155_v33 = vpop.f32.mrb[106].mxu1  ;;  %v5177_v49 = vpop.f32.mrb[102].mxu0 }
 0x812   :  { %v5156_v35 = vpop.f32.mrb[107].mxu1  ;;  %v5178_v63 = vpop.f32.mrb[103].mxu0 }
 0x813   :  { %v4038_v43 = vadd.f32 %v5154_v37, %v3998_v34 }
 0x815   :  { %v4078_v51 = vadd.f32 %v5176_v58, %v4038_v43 }
 0x82f   :  { %v5196_v50 = vpop.f32.mrb[108].mxu1 }
 0x830   :  { %v5218_v53 = vpop.f32.mrb[104].mxu0  ;;  %v5197_v48 = vpop.f32.mrb[109].mxu1 }
 0x831   :  { %v5198_v54 = vadd.f32 %v5197_v48, %v5196_v50  ;;  %v5219_v42 = vpop.f32.mrb[105].mxu0  ;;  %v5199_v59 = vpop.f32.mrb[110].mxu1 }
 0x832   :  { %v5220_v52 = vadd.f32 %v5219_v42, %v5218_v53  ;;  %v5221_v36 = vpop.f32.mrb[106].mxu0  ;;  %v5200_v8 = vpop.f32.mrb[111].mxu1 }
 0x833   :  { %v4118_v0 = vadd.f32 %v5198_v54, %v4078_v51  ;;  %v5222_v1 = vpop.f32.mrb[107].mxu0 }
 0x835   :  { %v4158_v2 = vadd.f32 %v5220_v52, %v4118_v0 }
 0x84f   :  { %v5240_v3 = vpop.f32.mrb[112].mxu1 }
 0x850   :  { %v5262_v4 = vpop.f32.mrb[108].mxu0  ;;  %v5241_v5 = vpop.f32.mrb[113].mxu1 }
 0x851   :  { %v5242_v6 = vadd.f32 %v5241_v5, %v5240_v3  ;;  %v5263_v9 = vpop.f32.mrb[109].mxu0  ;;  %v5243_v10 = vpop.f32.mrb[114].mxu1 }
 0x852   :  { %v5264_v7 = vadd.f32 %v5263_v9, %v5262_v4  ;;  %v5265_v11 = vpop.f32.mrb[110].mxu0  ;;  %v5244_v12 = vpop.f32.mrb[115].mxu1 }
 0x853   :  { %v4198_v13 = vadd.f32 %v5242_v6, %v4158_v2  ;;  %v5266_v14 = vpop.f32.mrb[111].mxu0 }
 0x855   :  { %v4238_v16 = vadd.f32 %v5264_v7, %v4198_v13 }
 0x857   :  { %v4250_v18 = vmul.f32 %v4610_v15, %v4238_v16 }
 0x859   :  { %v4258_v19 = vadd.f32 %v4611_v17, %v4250_v18 }
 0x85b   :  { %v4260_v20 = vmul.f32 0.2, %v4258_v19  ;;  %vm4259_vm9 = vcmp.gt.f32.partialorder %v4258_v19, 0.0 }
 0x85d   :  { %v4261_v21 = vsel %vm4259_vm9, %v4258_v19, %v4260_v20 }
 0x85e   :  { %v4262_v22 = vpack.c.bf16 %v4261_v21, %v4261_v21 }
 0x860   :  { %5432 = vmatmul.mubr.bf16.vlgmr.msra.gmra.mrb[116].mxu1 %v4262_v22 }
 0x933   :  { %v4368_v25 = vpop.f32.mrb[116].mxu1 }
 0x934   :  { %v4369_v26 = vadd.f32 %v4612_v24, %v4368_v25  ;;  %v5433_v27 = vpop.f32.mrb[117].mxu1 }
 0x935   :  { %v4371_v57 = vpop.f32.mrb[118].mxu1 }
 0x936   :  { %4374 = vst [vmem:[%s8098_s18] sm:$0x3] %v4369_v26  ;;  %v5434_v32 = vpop.f32.mrb[119].mxu1 }
 0x937   :  { %4379 = vsyncmov [#allocation4] }
 0x93a   :  { %s4380_s15 = vpop.sfrf %4379 }
 0x93b   :  { %p4621_p0 = scmp.ne.s32.totalorder %s4380_s15, 0 }
 0x93d   :  { %4384 = shalt.err (%p4621_p0)  }
 0x93e   :  { %4386 = vsyncmov [#allocation4 + $0x1] }
 0x941   :  { %s4387_s10 = vpop.sfrf %4386 }
 0x942   :  { %p4622_p1 = scmp.ne.s32.totalorder %s4387_s10, 0 }
 0x944   :  { %4391 = shalt.err (%p4622_p1)  }

</bundles_post_ra>
